<compile_context>
chip_gen: v5e
topology: v5e:2x2
jax: 0.10.0
libtpu: 0.0.40
codegen_flags: <defaults>
</compile_context>

<pallas_src>
import functools
import numpy as np
import jax
import jax.numpy as jnp
from jax.experimental import pallas as pl
from jax.experimental.pallas import tpu as pltpu  # noqa: F401  (hardware namespace)


# ----------------------------------------------------------------------------
# Fused PNAConv + BatchNorm + ReLU layer kernel (single VMEM block)
# ----------------------------------------------------------------------------

def _pna_layer_kernel(x_ref, ea_ref, srcc_ref, dstc_ref, dstr_ref,
                      w1_ref, w2_ref, wef_ref, bmsg_ref,
                      wpx_ref, wpa_ref, bpost_ref,
                      wlin_ref, blin_ref, g_ref, b_ref,
                      o_ref, *, inv_n, avg_log, eps):
    f32 = jnp.float32
    x = x_ref[...]                               # (N, F_in)
    ea = ea_ref[...]                             # (E, 4)
    n, f_in = x.shape
    e = ea.shape[0]

    # ---- build lane-dense incidence masks from int32 index rows -------------
    en_iota = jax.lax.broadcasted_iota(jnp.int32, (e, n), 1)      # node id on lanes
    dst_oh = (en_iota == dstc_ref[...]).astype(f32)               # (E, N)
    src_oh = (en_iota == srcc_ref[...]).astype(f32)               # (E, N)
    ne_iota = jax.lax.broadcasted_iota(jnp.int32, (n, e), 0)      # node id on sublanes
    adj = (ne_iota == dstr_ref[...]).astype(f32)                  # (N, E)

    # ---- gathers x_i = x[dst], x_j = x[src] as MXU matmuls -------------------
    x_i = jnp.dot(dst_oh, x, preferred_element_type=f32)          # (E, F_in)
    x_j = jnp.dot(src_oh, x, preferred_element_type=f32)          # (E, F_in)

    # ---- fused edge_encoder + pre_nn (weights pre-folded, no concat) --------
    msgs = (jnp.dot(x_i, w1_ref[...], preferred_element_type=f32)
            + jnp.dot(x_j, w2_ref[...], preferred_element_type=f32)
            + jnp.dot(ea, wef_ref[...], preferred_element_type=f32)
            + bmsg_ref[...])                                      # (E, F_in)

    # ---- PNA aggregation: mean / min / max / std ----------------------------
    cnt = jnp.sum(adj, axis=1, keepdims=True)                     # (N, 1) in-degree
    deg = jnp.maximum(cnt, 1.0)
    inv_deg = 1.0 / deg
    s = jnp.dot(adj, msgs, preferred_element_type=f32)            # (N, F) sums (MXU)
    sq = jnp.dot(adj, msgs * msgs, preferred_element_type=f32)    # (N, F) sum-of-sq
    mean = s * inv_deg
    var = sq * inv_deg - mean * mean
    std = jnp.sqrt(jnp.maximum(var, 0.0) + 1e-5)                  # PyG StdAggregation

    negm = (adj - 1.0) * 1e30                                     # 0 on edge, -1e30 off
    mx = jnp.max(msgs[None, :, :] + negm[:, :, None], axis=1)     # (N, F)
    mn = -jnp.max(negm[:, :, None] - msgs[None, :, :], axis=1)    # (N, F)
    has = cnt > 0.0
    mx = jnp.where(has, mx, 0.0)
    mn = jnp.where(has, mn, 0.0)

    # degree scalers (identity / amplification / attenuation)
    log_deg = jnp.log(deg + 1.0)
    amp = log_deg * (1.0 / avg_log)
    att = avg_log / log_deg

    agg = jnp.concatenate([mean, mn, mx, std], axis=-1)           # (N, 4F)
    agg = jnp.concatenate([agg, agg * amp, agg * att], axis=-1)   # (N, 12F)

    # ---- post_nn (concat [x, agg] folded into split weights) + PNAConv.lin --
    h = (jnp.dot(x, wpx_ref[...], preferred_element_type=f32)
         + jnp.dot(agg, wpa_ref[...], preferred_element_type=f32)
         + bpost_ref[...])                                        # (N, F_out)
    y = jnp.dot(h, wlin_ref[...], preferred_element_type=f32) + blin_ref[...]

    # ---- BatchNorm (training-mode batch stats, two-pass variance) + ReLU ----
    mu = jnp.sum(y, axis=0, keepdims=True) * inv_n
    d = y - mu
    var_bn = jnp.sum(d * d, axis=0, keepdims=True) * inv_n
    y = d * jax.lax.rsqrt(var_bn + eps) * g_ref[...] + b_ref[...]
    o_ref[...] = jnp.maximum(y, 0.0)


def pna_layer(x, edge_attr, src_col, dst_col, dst_row, conv_p, bn_g, bn_b, *, avg_log):
    n = x.shape[0]
    f_out = conv_p["wlin"].shape[1]
    kern = functools.partial(_pna_layer_kernel,
                             inv_n=1.0 / n, avg_log=float(avg_log), eps=1e-5)
    return pl.pallas_call(
        kern,
        out_shape=jax.ShapeDtypeStruct((n, f_out), jnp.float32),
    )(x, edge_attr, src_col, dst_col, dst_row,
      conv_p["w1"], conv_p["w2"], conv_p["wef"], conv_p["bmsg"],
      conv_p["wpx"], conv_p["wpa"], conv_p["bpost"],
      conv_p["wlin"], conv_p["blin"], bn_g, bn_b)


# ----------------------------------------------------------------------------
# Fused global max/mean pool + MLP head kernel (single VMEM block)
# ----------------------------------------------------------------------------

def _pool_head_kernel(x_ref, batch_ref,
                      w1x_ref, w1m_ref, b1_ref,
                      w2_ref, b2_ref, w3_ref, b3_ref,
                      o_ref, *, n_graphs):
    f32 = jnp.float32
    x = x_ref[...]                                                # (N, C)
    n, c = x.shape
    gm = (jax.lax.broadcasted_iota(jnp.int32, (n_graphs, n), 0)
          == batch_ref[...]).astype(f32)                          # (G, N) lane-dense
    cnt = jnp.sum(gm, axis=1, keepdims=True)                      # (G, 1)
    s = jnp.dot(gm, x, preferred_element_type=f32)                # (G, C) sums (MXU)
    mean = s / jnp.maximum(cnt, 1.0)
    negm = (gm - 1.0) * 1e30
    mx = jnp.max(x[None, :, :] + negm[:, :, None], axis=1)        # (G, C)
    mx = jnp.where(cnt > 0.0, mx, 0.0)

    # lin1 with cat([max, mean]) folded into split weights, then lin2, lin3
    h = jnp.maximum(jnp.dot(mx, w1x_ref[...], preferred_element_type=f32)
                    + jnp.dot(mean, w1m_ref[...], preferred_element_type=f32)
                    + b1_ref[...], 0.0)
    h = jnp.maximum(jnp.dot(h, w2_ref[...], preferred_element_type=f32)
                    + b2_ref[...], 0.0)
    o_ref[...] = jnp.dot(h, w3_ref[...], preferred_element_type=f32) + b3_ref[...]


def pool_head(x, batch_row, hp, *, n_graphs):
    kern = functools.partial(_pool_head_kernel, n_graphs=n_graphs)
    return pl.pallas_call(
        kern,
        out_shape=jax.ShapeDtypeStruct((n_graphs, hp["w3"].shape[1]), jnp.float32),
    )(x, batch_row, hp["w1x"], hp["w1m"], hp["b1"],
      hp["w2"], hp["b2"], hp["w3"], hp["b3"])


# ----------------------------------------------------------------------------
# Full model forward (5 pallas_calls total)
# ----------------------------------------------------------------------------

def simp_forward(params, x, edge_index, edge_attr, intarna_energy, batch,
                 covalent_edges, dropout_conv_1_2, dropout_conv_rest,
                 *, n_graphs, avg_log):
    del intarna_energy, covalent_edges, dropout_conv_1_2, dropout_conv_rest  # unused in ref
    n = x.shape[0]
    e = edge_attr.shape[0]
    src_col = edge_index[0].astype(jnp.int32).reshape(e, 1)   # for (E,N) source one-hot
    dst_col = edge_index[1].astype(jnp.int32).reshape(e, 1)   # for (E,N) target one-hot
    dst_row = edge_index[1].astype(jnp.int32).reshape(1, e)   # for (N,E) adjacency
    batch_row = batch.astype(jnp.int32).reshape(1, n)         # for (G,N) graph mask
    for i in range(1, 5):
        x = pna_layer(x, edge_attr, src_col, dst_col, dst_row,
                      params[f"conv{i}"], params[f"bn{i}_g"], params[f"bn{i}_b"],
                      avg_log=avg_log)
    return pool_head(x, batch_row, params["head"], n_graphs=n_graphs)


# ----------------------------------------------------------------------------
# Parameters: PyTorch-Linear-style init, then host-side folding/splitting
# ----------------------------------------------------------------------------

def make_params(key, num_node_features):
    keys = iter(jax.random.split(key, 64))

    def lin_init(fan_in, fan_out):
        k1, k2 = jax.random.split(next(keys))
        bound = 1.0 / np.sqrt(fan_in)
        w = jax.random.uniform(k1, (fan_in, fan_out), jnp.float32, -bound, bound)
        b = jax.random.uniform(k2, (fan_out,), jnp.float32, -bound, bound)
        return w, b

    params = {}
    edge_dim = 4
    for i in range(1, 5):
        f_in = num_node_features if i == 1 else 128
        f_out = 128
        c = {}
        c["edge_w"], c["edge_b"] = lin_init(edge_dim, f_in)               # edge_encoder
        c["pre_w"], c["pre_b"] = lin_init(3 * f_in, f_in)                 # pre_nn (1 layer)
        c["post_w"], c["post_b"] = lin_init((4 * 3 + 1) * f_in, f_out)    # post_nn (1 layer)
        c["lin_w"], c["lin_b"] = lin_init(f_out, f_out)                   # PNAConv.lin
        params[f"conv{i}"] = c
        params[f"bn{i}_g"] = jnp.ones((f_out,), jnp.float32)
        params[f"bn{i}_b"] = jnp.zeros((f_out,), jnp.float32)
    params["lin1_w"], params["lin1_b"] = lin_init(128 * 2, 128)
    params["lin2_w"], params["lin2_b"] = lin_init(128, 64)
    params["lin3_w"], params["lin3_b"] = lin_init(64, 2)
    return params


def fold_params(raw):
    """Precompute fused weights: edge_encoder folded into pre_nn, concats removed
    by splitting pre_nn / post_nn / lin1 weight matrices. Mathematically identical."""
    folded = {}
    for i in range(1, 5):
        c = raw[f"conv{i}"]
        f_in = c["pre_w"].shape[1]
        w1 = c["pre_w"][:f_in]              # multiplies x_i
        w2 = c["pre_w"][f_in:2 * f_in]      # multiplies x_j
        w3 = c["pre_w"][2 * f_in:]          # multiplies encoded edge_attr
        folded[f"conv{i}"] = dict(
            w1=w1, w2=w2,
            wef=c["edge_w"] @ w3,                                   # (4, F_in)
            bmsg=(c["edge_b"] @ w3 + c["pre_b"]).reshape(1, -1),
            wpx=c["post_w"][:f_in],                                 # multiplies x
            wpa=c["post_w"][f_in:],                                 # multiplies agg
            bpost=c["post_b"].reshape(1, -1),
            wlin=c["lin_w"], blin=c["lin_b"].reshape(1, -1),
        )
        folded[f"bn{i}_g"] = raw[f"bn{i}_g"].reshape(1, -1)
        folded[f"bn{i}_b"] = raw[f"bn{i}_b"].reshape(1, -1)
    cdim = raw["lin1_w"].shape[0] // 2
    folded["head"] = dict(
        w1x=raw["lin1_w"][:cdim], w1m=raw["lin1_w"][cdim:],         # [max | mean] split
        b1=raw["lin1_b"].reshape(1, -1),
        w2=raw["lin2_w"], b2=raw["lin2_b"].reshape(1, -1),
        w3=raw["lin3_w"], b3=raw["lin3_b"].reshape(1, -1),
    )
    return folded


# ----------------------------------------------------------------------------
# Example run
# ----------------------------------------------------------------------------

if __name__ == "__main__":
    key = jax.random.PRNGKey(0)
    k_param, k_x, k_ea, k_edges, k_en = jax.random.split(key, 5)

    num_node_features = 16
    n_graphs = 2
    n_per_graph = 6
    e_per_graph = 16
    n_nodes = n_graphs * n_per_graph
    n_edges = n_graphs * e_per_graph

    raw_params = make_params(k_param, num_node_features)
    params = fold_params(raw_params)

    x = jax.random.normal(k_x, (n_nodes, num_node_features), jnp.float32)
    edge_attr = jax.random.normal(k_ea, (n_edges, 4), jnp.float32)

    srcs, dsts = [], []
    for g in range(n_graphs):
        ks, kd = jax.random.split(jax.random.fold_in(k_edges, g))
        srcs.append(jax.random.randint(ks, (e_per_graph,), 0, n_per_graph) + g * n_per_graph)
        dsts.append(jax.random.randint(kd, (e_per_graph,), 0, n_per_graph) + g * n_per_graph)
    edge_index = jnp.stack([jnp.concatenate(srcs), jnp.concatenate(dsts)]).astype(jnp.int32)
    batch = jnp.repeat(jnp.arange(n_graphs, dtype=jnp.int32), n_per_graph)

    # PNAConv `deg` constructor arg: in-degree histogram -> avg log-degree scalar
    in_deg = np.bincount(np.asarray(edge_index[1]), minlength=n_nodes)
    deg_hist = np.bincount(in_deg).astype(np.float64)
    bins = np.arange(len(deg_hist), dtype=np.float64)
    avg_log = float((np.log(bins + 1.0) * deg_hist).sum() / deg_hist.sum())

    # args accepted by forward() but never used by the reference implementation
    intarna_energy = jax.random.normal(k_en, (n_graphs,), jnp.float32)
    covalent_edges = jnp.zeros((n_edges,), jnp.bool_)
    dropout_conv_1_2 = 0.1
    dropout_conv_rest = 0.1

    fwd = jax.jit(functools.partial(simp_forward, n_graphs=n_graphs, avg_log=avg_log))
    out = fwd(params, x, edge_index, edge_attr, intarna_energy, batch,
              covalent_edges, dropout_conv_1_2, dropout_conv_rest)
    out = jax.block_until_ready(out)
    assert out.shape == (n_graphs, 2) and out.dtype == jnp.float32
    print("KERNEL_OK")
</pallas_src>

<mosaic_0001>
module attributes {stable_mosaic.version = 11 : i64} {
  func.func @_pna_layer_kernel(%arg0: memref<12x16xf32, #tpu.memory_space<vmem>>, %arg1: memref<32x4xf32, #tpu.memory_space<vmem>>, %arg2: memref<32x1xi32, #tpu.memory_space<vmem>>, %arg3: memref<32x1xi32, #tpu.memory_space<vmem>>, %arg4: memref<1x32xi32, #tpu.memory_space<vmem>>, %arg5: memref<16x16xf32, #tpu.memory_space<vmem>>, %arg6: memref<16x16xf32, #tpu.memory_space<vmem>>, %arg7: memref<4x16xf32, #tpu.memory_space<vmem>>, %arg8: memref<1x16xf32, #tpu.memory_space<vmem>>, %arg9: memref<16x128xf32, #tpu.memory_space<vmem>>, %arg10: memref<192x128xf32, #tpu.memory_space<vmem>>, %arg11: memref<1x128xf32, #tpu.memory_space<vmem>>, %arg12: memref<128x128xf32, #tpu.memory_space<vmem>>, %arg13: memref<1x128xf32, #tpu.memory_space<vmem>>, %arg14: memref<1x128xf32, #tpu.memory_space<vmem>>, %arg15: memref<1x128xf32, #tpu.memory_space<vmem>>, %arg16: memref<12x128xf32, #tpu.memory_space<vmem>>) attributes {dimension_semantics = [], scalar_prefetch = 0 : i64, scratch_operands = 0 : i64, tpu.core_type = #tpu.core_type<tc>} {
    %c0 = arith.constant 0 : index
    %c0_0 = arith.constant 0 : index
    %0 = vector.load %arg0[%c0, %c0_0] : memref<12x16xf32, #tpu.memory_space<vmem>>, vector<12x16xf32>
    %c0_1 = arith.constant 0 : index
    %c0_2 = arith.constant 0 : index
    %1 = vector.load %arg1[%c0_1, %c0_2] : memref<32x4xf32, #tpu.memory_space<vmem>>, vector<32x4xf32>
    %2 = tpu.iota {dimensions = array<i32: 1>} : vector<32x12xi32>
    %c0_3 = arith.constant 0 : index
    %c0_4 = arith.constant 0 : index
    %3 = vector.load %arg3[%c0_3, %c0_4] : memref<32x1xi32, #tpu.memory_space<vmem>>, vector<32x1xi32>
    %4 = vector.broadcast %3 : vector<32x1xi32> to vector<32x12xi32>
    %5 = arith.cmpi eq, %2, %4 : vector<32x12xi32>
    %6 = arith.extui %5 : vector<32x12xi1> to vector<32x12xi32>
    %7 = arith.sitofp %6 : vector<32x12xi32> to vector<32x12xf32>
    %c0_5 = arith.constant 0 : index
    %c0_6 = arith.constant 0 : index
    %8 = vector.load %arg2[%c0_5, %c0_6] : memref<32x1xi32, #tpu.memory_space<vmem>>, vector<32x1xi32>
    %9 = vector.broadcast %8 : vector<32x1xi32> to vector<32x12xi32>
    %10 = arith.cmpi eq, %2, %9 : vector<32x12xi32>
    %11 = arith.extui %10 : vector<32x12xi1> to vector<32x12xi32>
    %12 = arith.sitofp %11 : vector<32x12xi32> to vector<32x12xf32>
    %13 = tpu.iota {dimensions = array<i32: 0>} : vector<12x32xi32>
    %c0_7 = arith.constant 0 : index
    %c0_8 = arith.constant 0 : index
    %14 = vector.load %arg4[%c0_7, %c0_8] : memref<1x32xi32, #tpu.memory_space<vmem>>, vector<1x32xi32>
    %15 = vector.broadcast %14 : vector<1x32xi32> to vector<12x32xi32>
    %16 = arith.cmpi eq, %13, %15 : vector<12x32xi32>
    %17 = arith.extui %16 : vector<12x32xi1> to vector<12x32xi32>
    %18 = arith.sitofp %17 : vector<12x32xi32> to vector<12x32xf32>
    %cst = arith.constant dense<0.000000e+00> : vector<32x16xf32>
    %19 = tpu.matmul %7, %0, %cst {dimension_numbers = #tpu.dot_dimension_numbers<[1], [0], [0], [1], [0, 0, 1, 1], [], []>} : vector<32x12xf32>, vector<12x16xf32>, vector<32x16xf32> -> vector<32x16xf32>
    %cst_9 = arith.constant dense<0.000000e+00> : vector<32x16xf32>
    %20 = tpu.matmul %12, %0, %cst_9 {dimension_numbers = #tpu.dot_dimension_numbers<[1], [0], [0], [1], [0, 0, 1, 1], [], []>} : vector<32x12xf32>, vector<12x16xf32>, vector<32x16xf32> -> vector<32x16xf32>
    %c0_10 = arith.constant 0 : index
    %c0_11 = arith.constant 0 : index
    %21 = vector.load %arg5[%c0_10, %c0_11] : memref<16x16xf32, #tpu.memory_space<vmem>>, vector<16x16xf32>
    %cst_12 = arith.constant dense<0.000000e+00> : vector<32x16xf32>
    %22 = tpu.matmul %19, %21, %cst_12 {dimension_numbers = #tpu.dot_dimension_numbers<[1], [0], [0], [1], [0, 0, 1, 1], [], []>} : vector<32x16xf32>, vector<16x16xf32>, vector<32x16xf32> -> vector<32x16xf32>
    %c0_13 = arith.constant 0 : index
    %c0_14 = arith.constant 0 : index
    %23 = vector.load %arg6[%c0_13, %c0_14] : memref<16x16xf32, #tpu.memory_space<vmem>>, vector<16x16xf32>
    %cst_15 = arith.constant dense<0.000000e+00> : vector<32x16xf32>
    %24 = tpu.matmul %20, %23, %cst_15 {dimension_numbers = #tpu.dot_dimension_numbers<[1], [0], [0], [1], [0, 0, 1, 1], [], []>} : vector<32x16xf32>, vector<16x16xf32>, vector<32x16xf32> -> vector<32x16xf32>
    %25 = arith.addf %22, %24 : vector<32x16xf32>
    %c0_16 = arith.constant 0 : index
    %c0_17 = arith.constant 0 : index
    %26 = vector.load %arg7[%c0_16, %c0_17] : memref<4x16xf32, #tpu.memory_space<vmem>>, vector<4x16xf32>
    %cst_18 = arith.constant dense<0.000000e+00> : vector<32x16xf32>
    %27 = tpu.matmul %1, %26, %cst_18 {dimension_numbers = #tpu.dot_dimension_numbers<[1], [0], [0], [1], [0, 0, 1, 1], [], []>} : vector<32x4xf32>, vector<4x16xf32>, vector<32x16xf32> -> vector<32x16xf32>
    %28 = arith.addf %25, %27 : vector<32x16xf32>
    %c0_19 = arith.constant 0 : index
    %c0_20 = arith.constant 0 : index
    %29 = vector.load %arg8[%c0_19, %c0_20] : memref<1x16xf32, #tpu.memory_space<vmem>>, vector<1x16xf32>
    %30 = vector.broadcast %29 : vector<1x16xf32> to vector<32x16xf32>
    %31 = arith.addf %28, %30 : vector<32x16xf32>
    %cst_21 = arith.constant dense<0.000000e+00> : vector<12xf32>
    %32 = vector.multi_reduction <add>, %18, %cst_21 [1] : vector<12x32xf32> to vector<12xf32>
    %33 = vector.shape_cast %32 : vector<12xf32> to vector<12x1xf32>
    %cst_22 = arith.constant 1.000000e+00 : f32
    %34 = vector.broadcast %cst_22 : f32 to vector<12x1xf32>
    %35 = arith.maximumf %33, %34 : vector<12x1xf32>
    %cst_23 = arith.constant 1.000000e+00 : f32
    %36 = vector.broadcast %cst_23 : f32 to vector<12x1xf32>
    %37 = arith.divf %36, %35 : vector<12x1xf32>
    %cst_24 = arith.constant dense<0.000000e+00> : vector<12x16xf32>
    %38 = tpu.matmul %18, %31, %cst_24 {dimension_numbers = #tpu.dot_dimension_numbers<[1], [0], [0], [1], [0, 0, 1, 1], [], []>} : vector<12x32xf32>, vector<32x16xf32>, vector<12x16xf32> -> vector<12x16xf32>
    %39 = arith.mulf %31, %31 : vector<32x16xf32>
    %cst_25 = arith.constant dense<0.000000e+00> : vector<12x16xf32>
    %40 = tpu.matmul %18, %39, %cst_25 {dimension_numbers = #tpu.dot_dimension_numbers<[1], [0], [0], [1], [0, 0, 1, 1], [], []>} : vector<12x32xf32>, vector<32x16xf32>, vector<12x16xf32> -> vector<12x16xf32>
    %41 = vector.broadcast %37 : vector<12x1xf32> to vector<12x16xf32>
    %42 = arith.mulf %38, %41 : vector<12x16xf32>
    %43 = vector.broadcast %37 : vector<12x1xf32> to vector<12x16xf32>
    %44 = arith.mulf %40, %43 : vector<12x16xf32>
    %45 = arith.mulf %42, %42 : vector<12x16xf32>
    %46 = arith.subf %44, %45 : vector<12x16xf32>
    %cst_26 = arith.constant 0.000000e+00 : f32
    %47 = vector.broadcast %cst_26 : f32 to vector<12x16xf32>
    %48 = arith.maximumf %46, %47 : vector<12x16xf32>
    %cst_27 = arith.constant 9.99999974E-6 : f32
    %49 = vector.broadcast %cst_27 : f32 to vector<12x16xf32>
    %50 = arith.addf %48, %49 : vector<12x16xf32>
    %51 = math.sqrt %50 : vector<12x16xf32>
    %cst_28 = arith.constant 1.000000e+00 : f32
    %52 = vector.broadcast %cst_28 : f32 to vector<12x32xf32>
    %53 = arith.subf %18, %52 : vector<12x32xf32>
    %cst_29 = arith.constant 1.000000e+30 : f32
    %54 = vector.broadcast %cst_29 : f32 to vector<12x32xf32>
    %55 = arith.mulf %53, %54 : vector<12x32xf32>
    %56 = vector.shape_cast %31 : vector<32x16xf32> to vector<1x32x16xf32>
    %57 = vector.shape_cast %55 : vector<12x32xf32> to vector<12x32x1xf32>
    %58 = vector.broadcast %56 : vector<1x32x16xf32> to vector<12x32x16xf32>
    %59 = vector.broadcast %57 : vector<12x32x1xf32> to vector<12x32x16xf32>
    %60 = arith.addf %58, %59 : vector<12x32x16xf32>
    %cst_30 = arith.constant dense<0xFF800000> : vector<12x16xf32>
    %61 = vector.multi_reduction <maximumf>, %60, %cst_30 [1] : vector<12x32x16xf32> to vector<12x16xf32>
    %62 = vector.shape_cast %55 : vector<12x32xf32> to vector<12x32x1xf32>
    %63 = vector.shape_cast %31 : vector<32x16xf32> to vector<1x32x16xf32>
    %64 = vector.broadcast %62 : vector<12x32x1xf32> to vector<12x32x16xf32>
    %65 = vector.broadcast %63 : vector<1x32x16xf32> to vector<12x32x16xf32>
    %66 = arith.subf %64, %65 : vector<12x32x16xf32>
    %cst_31 = arith.constant dense<0xFF800000> : vector<12x16xf32>
    %67 = vector.multi_reduction <maximumf>, %66, %cst_31 [1] : vector<12x32x16xf32> to vector<12x16xf32>
    %cst_32 = arith.constant 0.000000e+00 : f32
    %68 = vector.broadcast %cst_32 : f32 to vector<12x16xf32>
    %69 = arith.subf %68, %67 : vector<12x16xf32>
    %cst_33 = arith.constant 0.000000e+00 : f32
    %70 = vector.broadcast %cst_33 : f32 to vector<12x1xf32>
    %71 = arith.cmpf ogt, %33, %70 : vector<12x1xf32>
    %cst_34 = arith.constant 0.000000e+00 : f32
    %72 = vector.shape_cast %71 : vector<12x1xi1> to vector<12x1xi1>
    %73 = vector.broadcast %72 : vector<12x1xi1> to vector<12x16xi1>
    %74 = vector.broadcast %cst_34 : f32 to vector<12x16xf32>
    %75 = arith.select %73, %61, %74 : vector<12x16xi1>, vector<12x16xf32>
    %cst_35 = arith.constant 0.000000e+00 : f32
    %76 = vector.shape_cast %71 : vector<12x1xi1> to vector<12x1xi1>
    %77 = vector.broadcast %76 : vector<12x1xi1> to vector<12x16xi1>
    %78 = vector.broadcast %cst_35 : f32 to vector<12x16xf32>
    %79 = arith.select %77, %69, %78 : vector<12x16xi1>, vector<12x16xf32>
    %cst_36 = arith.constant 1.000000e+00 : f32
    %80 = vector.broadcast %cst_36 : f32 to vector<12x1xf32>
    %81 = arith.addf %35, %80 : vector<12x1xf32>
    %82 = math.log %81 : vector<12x1xf32>
    %cst_37 = arith.constant 0.80332905 : f32
    %83 = vector.broadcast %cst_37 : f32 to vector<12x1xf32>
    %84 = arith.mulf %82, %83 : vector<12x1xf32>
    %cst_38 = arith.constant 1.244820e+00 : f32
    %85 = vector.broadcast %cst_38 : f32 to vector<12x1xf32>
    %86 = arith.divf %85, %82 : vector<12x1xf32>
    %87 = tpu.concatenate %42, %79, %75, %51 in 1 : vector<12x16xf32>, vector<12x16xf32>, vector<12x16xf32>, vector<12x16xf32> -> vector<12x64xf32>
    %88 = vector.broadcast %84 : vector<12x1xf32> to vector<12x64xf32>
    %89 = arith.mulf %87, %88 : vector<12x64xf32>
    %90 = vector.broadcast %86 : vector<12x1xf32> to vector<12x64xf32>
    %91 = arith.mulf %87, %90 : vector<12x64xf32>
    %92 = tpu.concatenate %87, %89, %91 in 1 : vector<12x64xf32>, vector<12x64xf32>, vector<12x64xf32> -> vector<12x192xf32>
    %c0_39 = arith.constant 0 : index
    %c0_40 = arith.constant 0 : index
    %93 = vector.load %arg9[%c0_39, %c0_40] : memref<16x128xf32, #tpu.memory_space<vmem>>, vector<16x128xf32>
    %cst_41 = arith.constant dense<0.000000e+00> : vector<12x128xf32>
    %94 = tpu.matmul %0, %93, %cst_41 {dimension_numbers = #tpu.dot_dimension_numbers<[1], [0], [0], [1], [0, 0, 1, 1], [], []>} : vector<12x16xf32>, vector<16x128xf32>, vector<12x128xf32> -> vector<12x128xf32>
    %c0_42 = arith.constant 0 : index
    %c0_43 = arith.constant 0 : index
    %95 = vector.load %arg10[%c0_42, %c0_43] : memref<192x128xf32, #tpu.memory_space<vmem>>, vector<192x128xf32>
    %cst_44 = arith.constant dense<0.000000e+00> : vector<12x128xf32>
    %96 = tpu.matmul %92, %95, %cst_44 {dimension_numbers = #tpu.dot_dimension_numbers<[1], [0], [0], [1], [0, 0, 1, 1], [], []>} : vector<12x192xf32>, vector<192x128xf32>, vector<12x128xf32> -> vector<12x128xf32>
    %97 = arith.addf %94, %96 : vector<12x128xf32>
    %c0_45 = arith.constant 0 : index
    %c0_46 = arith.constant 0 : index
    %98 = vector.load %arg11[%c0_45, %c0_46] : memref<1x128xf32, #tpu.memory_space<vmem>>, vector<1x128xf32>
    %99 = vector.broadcast %98 : vector<1x128xf32> to vector<12x128xf32>
    %100 = arith.addf %97, %99 : vector<12x128xf32>
    %c0_47 = arith.constant 0 : index
    %c0_48 = arith.constant 0 : index
    %101 = vector.load %arg12[%c0_47, %c0_48] : memref<128x128xf32, #tpu.memory_space<vmem>>, vector<128x128xf32>
    %cst_49 = arith.constant dense<0.000000e+00> : vector<12x128xf32>
    %102 = tpu.matmul %100, %101, %cst_49 {dimension_numbers = #tpu.dot_dimension_numbers<[1], [0], [0], [1], [0, 0, 1, 1], [], []>} : vector<12x128xf32>, vector<128x128xf32>, vector<12x128xf32> -> vector<12x128xf32>
    %c0_50 = arith.constant 0 : index
    %c0_51 = arith.constant 0 : index
    %103 = vector.load %arg13[%c0_50, %c0_51] : memref<1x128xf32, #tpu.memory_space<vmem>>, vector<1x128xf32>
    %104 = vector.broadcast %103 : vector<1x128xf32> to vector<12x128xf32>
    %105 = arith.addf %102, %104 : vector<12x128xf32>
    %cst_52 = arith.constant dense<0.000000e+00> : vector<128xf32>
    %106 = vector.multi_reduction <add>, %105, %cst_52 [0] : vector<12x128xf32> to vector<128xf32>
    %107 = vector.shape_cast %106 : vector<128xf32> to vector<1x128xf32>
    %cst_53 = arith.constant 0.0833333358 : f32
    %108 = vector.broadcast %cst_53 : f32 to vector<1x128xf32>
    %109 = arith.mulf %107, %108 : vector<1x128xf32>
    %110 = vector.broadcast %109 : vector<1x128xf32> to vector<12x128xf32>
    %111 = arith.subf %105, %110 : vector<12x128xf32>
    %112 = arith.mulf %111, %111 : vector<12x128xf32>
    %cst_54 = arith.constant dense<0.000000e+00> : vector<128xf32>
    %113 = vector.multi_reduction <add>, %112, %cst_54 [0] : vector<12x128xf32> to vector<128xf32>
    %114 = vector.shape_cast %113 : vector<128xf32> to vector<1x128xf32>
    %cst_55 = arith.constant 0.0833333358 : f32
    %115 = vector.broadcast %cst_55 : f32 to vector<1x128xf32>
    %116 = arith.mulf %114, %115 : vector<1x128xf32>
    %cst_56 = arith.constant 9.99999974E-6 : f32
    %117 = vector.broadcast %cst_56 : f32 to vector<1x128xf32>
    %118 = arith.addf %116, %117 : vector<1x128xf32>
    %119 = math.rsqrt %118 : vector<1x128xf32>
    %120 = vector.broadcast %119 : vector<1x128xf32> to vector<12x128xf32>
    %121 = arith.mulf %111, %120 : vector<12x128xf32>
    %c0_57 = arith.constant 0 : index
    %c0_58 = arith.constant 0 : index
    %122 = vector.load %arg14[%c0_57, %c0_58] : memref<1x128xf32, #tpu.memory_space<vmem>>, vector<1x128xf32>
    %123 = vector.broadcast %122 : vector<1x128xf32> to vector<12x128xf32>
    %124 = arith.mulf %121, %123 : vector<12x128xf32>
    %c0_59 = arith.constant 0 : index
    %c0_60 = arith.constant 0 : index
    %125 = vector.load %arg15[%c0_59, %c0_60] : memref<1x128xf32, #tpu.memory_space<vmem>>, vector<1x128xf32>
    %126 = vector.broadcast %125 : vector<1x128xf32> to vector<12x128xf32>
    %127 = arith.addf %124, %126 : vector<12x128xf32>
    %cst_61 = arith.constant 0.000000e+00 : f32
    %128 = vector.broadcast %cst_61 : f32 to vector<12x128xf32>
    %129 = arith.maximumf %127, %128 : vector<12x128xf32>
    %c0_62 = arith.constant 0 : index
    %c0_63 = arith.constant 0 : index
    %130 = vector.load %arg16[%c0_62, %c0_63] : memref<12x128xf32, #tpu.memory_space<vmem>>, vector<12x128xf32>
    tpu.vector_store %arg16[%c0_62, %c0_63], %129 {strides = array<i32>} : memref<12x128xf32, #tpu.memory_space<vmem>>, vector<12x128xf32>,
    return
  }
}

module attributes {stable_mosaic.version = 11 : i64} {
  func.func @_pna_layer_kernel(%arg0: memref<12x128xf32, #tpu.memory_space<vmem>>, %arg1: memref<32x4xf32, #tpu.memory_space<vmem>>, %arg2: memref<32x1xi32, #tpu.memory_space<vmem>>, %arg3: memref<32x1xi32, #tpu.memory_space<vmem>>, %arg4: memref<1x32xi32, #tpu.memory_space<vmem>>, %arg5: memref<128x128xf32, #tpu.memory_space<vmem>>, %arg6: memref<128x128xf32, #tpu.memory_space<vmem>>, %arg7: memref<4x128xf32, #tpu.memory_space<vmem>>, %arg8: memref<1x128xf32, #tpu.memory_space<vmem>>, %arg9: memref<128x128xf32, #tpu.memory_space<vmem>>, %arg10: memref<1536x128xf32, #tpu.memory_space<vmem>>, %arg11: memref<1x128xf32, #tpu.memory_space<vmem>>, %arg12: memref<128x128xf32, #tpu.memory_space<vmem>>, %arg13: memref<1x128xf32, #tpu.memory_space<vmem>>, %arg14: memref<1x128xf32, #tpu.memory_space<vmem>>, %arg15: memref<1x128xf32, #tpu.memory_space<vmem>>, %arg16: memref<12x128xf32, #tpu.memory_space<vmem>>) attributes {dimension_semantics = [], scalar_prefetch = 0 : i64, scratch_operands = 0 : i64, tpu.core_type = #tpu.core_type<tc>} {
    %c0 = arith.constant 0 : index
    %c0_0 = arith.constant 0 : index
    %0 = vector.load %arg0[%c0, %c0_0] : memref<12x128xf32, #tpu.memory_space<vmem>>, vector<12x128xf32>
    %c0_1 = arith.constant 0 : index
    %c0_2 = arith.constant 0 : index
    %1 = vector.load %arg1[%c0_1, %c0_2] : memref<32x4xf32, #tpu.memory_space<vmem>>, vector<32x4xf32>
    %2 = tpu.iota {dimensions = array<i32: 1>} : vector<32x12xi32>
    %c0_3 = arith.constant 0 : index
    %c0_4 = arith.constant 0 : index
    %3 = vector.load %arg3[%c0_3, %c0_4] : memref<32x1xi32, #tpu.memory_space<vmem>>, vector<32x1xi32>
    %4 = vector.broadcast %3 : vector<32x1xi32> to vector<32x12xi32>
    %5 = arith.cmpi eq, %2, %4 : vector<32x12xi32>
    %6 = arith.extui %5 : vector<32x12xi1> to vector<32x12xi32>
    %7 = arith.sitofp %6 : vector<32x12xi32> to vector<32x12xf32>
    %c0_5 = arith.constant 0 : index
    %c0_6 = arith.constant 0 : index
    %8 = vector.load %arg2[%c0_5, %c0_6] : memref<32x1xi32, #tpu.memory_space<vmem>>, vector<32x1xi32>
    %9 = vector.broadcast %8 : vector<32x1xi32> to vector<32x12xi32>
    %10 = arith.cmpi eq, %2, %9 : vector<32x12xi32>
    %11 = arith.extui %10 : vector<32x12xi1> to vector<32x12xi32>
    %12 = arith.sitofp %11 : vector<32x12xi32> to vector<32x12xf32>
    %13 = tpu.iota {dimensions = array<i32: 0>} : vector<12x32xi32>
    %c0_7 = arith.constant 0 : index
    %c0_8 = arith.constant 0 : index
    %14 = vector.load %arg4[%c0_7, %c0_8] : memref<1x32xi32, #tpu.memory_space<vmem>>, vector<1x32xi32>
    %15 = vector.broadcast %14 : vector<1x32xi32> to vector<12x32xi32>
    %16 = arith.cmpi eq, %13, %15 : vector<12x32xi32>
    %17 = arith.extui %16 : vector<12x32xi1> to vector<12x32xi32>
    %18 = arith.sitofp %17 : vector<12x32xi32> to vector<12x32xf32>
    %cst = arith.constant dense<0.000000e+00> : vector<32x128xf32>
    %19 = tpu.matmul %7, %0, %cst {dimension_numbers = #tpu.dot_dimension_numbers<[1], [0], [0], [1], [0, 0, 1, 1], [], []>} : vector<32x12xf32>, vector<12x128xf32>, vector<32x128xf32> -> vector<32x128xf32>
    %cst_9 = arith.constant dense<0.000000e+00> : vector<32x128xf32>
    %20 = tpu.matmul %12, %0, %cst_9 {dimension_numbers = #tpu.dot_dimension_numbers<[1], [0], [0], [1], [0, 0, 1, 1], [], []>} : vector<32x12xf32>, vector<12x128xf32>, vector<32x128xf32> -> vector<32x128xf32>
    %c0_10 = arith.constant 0 : index
    %c0_11 = arith.constant 0 : index
    %21 = vector.load %arg5[%c0_10, %c0_11] : memref<128x128xf32, #tpu.memory_space<vmem>>, vector<128x128xf32>
    %cst_12 = arith.constant dense<0.000000e+00> : vector<32x128xf32>
    %22 = tpu.matmul %19, %21, %cst_12 {dimension_numbers = #tpu.dot_dimension_numbers<[1], [0], [0], [1], [0, 0, 1, 1], [], []>} : vector<32x128xf32>, vector<128x128xf32>, vector<32x128xf32> -> vector<32x128xf32>
    %c0_13 = arith.constant 0 : index
    %c0_14 = arith.constant 0 : index
    %23 = vector.load %arg6[%c0_13, %c0_14] : memref<128x128xf32, #tpu.memory_space<vmem>>, vector<128x128xf32>
    %cst_15 = arith.constant dense<0.000000e+00> : vector<32x128xf32>
    %24 = tpu.matmul %20, %23, %cst_15 {dimension_numbers = #tpu.dot_dimension_numbers<[1], [0], [0], [1], [0, 0, 1, 1], [], []>} : vector<32x128xf32>, vector<128x128xf32>, vector<32x128xf32> -> vector<32x128xf32>
    %25 = arith.addf %22, %24 : vector<32x128xf32>
    %c0_16 = arith.constant 0 : index
    %c0_17 = arith.constant 0 : index
    %26 = vector.load %arg7[%c0_16, %c0_17] : memref<4x128xf32, #tpu.memory_space<vmem>>, vector<4x128xf32>
    %cst_18 = arith.constant dense<0.000000e+00> : vector<32x128xf32>
    %27 = tpu.matmul %1, %26, %cst_18 {dimension_numbers = #tpu.dot_dimension_numbers<[1], [0], [0], [1], [0, 0, 1, 1], [], []>} : vector<32x4xf32>, vector<4x128xf32>, vector<32x128xf32> -> vector<32x128xf32>
    %28 = arith.addf %25, %27 : vector<32x128xf32>
    %c0_19 = arith.constant 0 : index
    %c0_20 = arith.constant 0 : index
    %29 = vector.load %arg8[%c0_19, %c0_20] : memref<1x128xf32, #tpu.memory_space<vmem>>, vector<1x128xf32>
    %30 = vector.broadcast %29 : vector<1x128xf32> to vector<32x128xf32>
    %31 = arith.addf %28, %30 : vector<32x128xf32>
    %cst_21 = arith.constant dense<0.000000e+00> : vector<12xf32>
    %32 = vector.multi_reduction <add>, %18, %cst_21 [1] : vector<12x32xf32> to vector<12xf32>
    %33 = vector.shape_cast %32 : vector<12xf32> to vector<12x1xf32>
    %cst_22 = arith.constant 1.000000e+00 : f32
    %34 = vector.broadcast %cst_22 : f32 to vector<12x1xf32>
    %35 = arith.maximumf %33, %34 : vector<12x1xf32>
    %cst_23 = arith.constant 1.000000e+00 : f32
    %36 = vector.broadcast %cst_23 : f32 to vector<12x1xf32>
    %37 = arith.divf %36, %35 : vector<12x1xf32>
    %cst_24 = arith.constant dense<0.000000e+00> : vector<12x128xf32>
    %38 = tpu.matmul %18, %31, %cst_24 {dimension_numbers = #tpu.dot_dimension_numbers<[1], [0], [0], [1], [0, 0, 1, 1], [], []>} : vector<12x32xf32>, vector<32x128xf32>, vector<12x128xf32> -> vector<12x128xf32>
    %39 = arith.mulf %31, %31 : vector<32x128xf32>
    %cst_25 = arith.constant dense<0.000000e+00> : vector<12x128xf32>
    %40 = tpu.matmul %18, %39, %cst_25 {dimension_numbers = #tpu.dot_dimension_numbers<[1], [0], [0], [1], [0, 0, 1, 1], [], []>} : vector<12x32xf32>, vector<32x128xf32>, vector<12x128xf32> -> vector<12x128xf32>
    %41 = vector.broadcast %37 : vector<12x1xf32> to vector<12x128xf32>
    %42 = arith.mulf %38, %41 : vector<12x128xf32>
    %43 = vector.broadcast %37 : vector<12x1xf32> to vector<12x128xf32>
    %44 = arith.mulf %40, %43 : vector<12x128xf32>
    %45 = arith.mulf %42, %42 : vector<12x128xf32>
    %46 = arith.subf %44, %45 : vector<12x128xf32>
    %cst_26 = arith.constant 0.000000e+00 : f32
    %47 = vector.broadcast %cst_26 : f32 to vector<12x128xf32>
    %48 = arith.maximumf %46, %47 : vector<12x128xf32>
    %cst_27 = arith.constant 9.99999974E-6 : f32
    %49 = vector.broadcast %cst_27 : f32 to vector<12x128xf32>
    %50 = arith.addf %48, %49 : vector<12x128xf32>
    %51 = math.sqrt %50 : vector<12x128xf32>
    %cst_28 = arith.constant 1.000000e+00 : f32
    %52 = vector.broadcast %cst_28 : f32 to vector<12x32xf32>
    %53 = arith.subf %18, %52 : vector<12x32xf32>
    %cst_29 = arith.constant 1.000000e+30 : f32
    %54 = vector.broadcast %cst_29 : f32 to vector<12x32xf32>
    %55 = arith.mulf %53, %54 : vector<12x32xf32>
    %56 = vector.shape_cast %31 : vector<32x128xf32> to vector<1x32x128xf32>
    %57 = vector.shape_cast %55 : vector<12x32xf32> to vector<12x32x1xf32>
    %58 = vector.broadcast %56 : vector<1x32x128xf32> to vector<12x32x128xf32>
    %59 = vector.broadcast %57 : vector<12x32x1xf32> to vector<12x32x128xf32>
    %60 = arith.addf %58, %59 : vector<12x32x128xf32>
    %cst_30 = arith.constant dense<0xFF800000> : vector<12x128xf32>
    %61 = vector.multi_reduction <maximumf>, %60, %cst_30 [1] : vector<12x32x128xf32> to vector<12x128xf32>
    %62 = vector.shape_cast %55 : vector<12x32xf32> to vector<12x32x1xf32>
    %63 = vector.shape_cast %31 : vector<32x128xf32> to vector<1x32x128xf32>
    %64 = vector.broadcast %62 : vector<12x32x1xf32> to vector<12x32x128xf32>
    %65 = vector.broadcast %63 : vector<1x32x128xf32> to vector<12x32x128xf32>
    %66 = arith.subf %64, %65 : vector<12x32x128xf32>
    %cst_31 = arith.constant dense<0xFF800000> : vector<12x128xf32>
    %67 = vector.multi_reduction <maximumf>, %66, %cst_31 [1] : vector<12x32x128xf32> to vector<12x128xf32>
    %cst_32 = arith.constant 0.000000e+00 : f32
    %68 = vector.broadcast %cst_32 : f32 to vector<12x128xf32>
    %69 = arith.subf %68, %67 : vector<12x128xf32>
    %cst_33 = arith.constant 0.000000e+00 : f32
    %70 = vector.broadcast %cst_33 : f32 to vector<12x1xf32>
    %71 = arith.cmpf ogt, %33, %70 : vector<12x1xf32>
    %cst_34 = arith.constant 0.000000e+00 : f32
    %72 = vector.shape_cast %71 : vector<12x1xi1> to vector<12x1xi1>
    %73 = vector.broadcast %72 : vector<12x1xi1> to vector<12x128xi1>
    %74 = vector.broadcast %cst_34 : f32 to vector<12x128xf32>
    %75 = arith.select %73, %61, %74 : vector<12x128xi1>, vector<12x128xf32>
    %cst_35 = arith.constant 0.000000e+00 : f32
    %76 = vector.shape_cast %71 : vector<12x1xi1> to vector<12x1xi1>
    %77 = vector.broadcast %76 : vector<12x1xi1> to vector<12x128xi1>
    %78 = vector.broadcast %cst_35 : f32 to vector<12x128xf32>
    %79 = arith.select %77, %69, %78 : vector<12x128xi1>, vector<12x128xf32>
    %cst_36 = arith.constant 1.000000e+00 : f32
    %80 = vector.broadcast %cst_36 : f32 to vector<12x1xf32>
    %81 = arith.addf %35, %80 : vector<12x1xf32>
    %82 = math.log %81 : vector<12x1xf32>
    %cst_37 = arith.constant 0.80332905 : f32
    %83 = vector.broadcast %cst_37 : f32 to vector<12x1xf32>
    %84 = arith.mulf %82, %83 : vector<12x1xf32>
    %cst_38 = arith.constant 1.244820e+00 : f32
    %85 = vector.broadcast %cst_38 : f32 to vector<12x1xf32>
    %86 = arith.divf %85, %82 : vector<12x1xf32>
    %87 = tpu.concatenate %42, %79, %75, %51 in 1 : vector<12x128xf32>, vector<12x128xf32>, vector<12x128xf32>, vector<12x128xf32> -> vector<12x512xf32>
    %88 = vector.broadcast %84 : vector<12x1xf32> to vector<12x512xf32>
    %89 = arith.mulf %87, %88 : vector<12x512xf32>
    %90 = vector.broadcast %86 : vector<12x1xf32> to vector<12x512xf32>
    %91 = arith.mulf %87, %90 : vector<12x512xf32>
    %92 = tpu.concatenate %87, %89, %91 in 1 : vector<12x512xf32>, vector<12x512xf32>, vector<12x512xf32> -> vector<12x1536xf32>
    %c0_39 = arith.constant 0 : index
    %c0_40 = arith.constant 0 : index
    %93 = vector.load %arg9[%c0_39, %c0_40] : memref<128x128xf32, #tpu.memory_space<vmem>>, vector<128x128xf32>
    %cst_41 = arith.constant dense<0.000000e+00> : vector<12x128xf32>
    %94 = tpu.matmul %0, %93, %cst_41 {dimension_numbers = #tpu.dot_dimension_numbers<[1], [0], [0], [1], [0, 0, 1, 1], [], []>} : vector<12x128xf32>, vector<128x128xf32>, vector<12x128xf32> -> vector<12x128xf32>
    %c0_42 = arith.constant 0 : index
    %c0_43 = arith.constant 0 : index
    %95 = vector.load %arg10[%c0_42, %c0_43] : memref<1536x128xf32, #tpu.memory_space<vmem>>, vector<1536x128xf32>
    %cst_44 = arith.constant dense<0.000000e+00> : vector<12x128xf32>
    %96 = tpu.matmul %92, %95, %cst_44 {dimension_numbers = #tpu.dot_dimension_numbers<[1], [0], [0], [1], [0, 0, 1, 1], [], []>} : vector<12x1536xf32>, vector<1536x128xf32>, vector<12x128xf32> -> vector<12x128xf32>
    %97 = arith.addf %94, %96 : vector<12x128xf32>
    %c0_45 = arith.constant 0 : index
    %c0_46 = arith.constant 0 : index
    %98 = vector.load %arg11[%c0_45, %c0_46] : memref<1x128xf32, #tpu.memory_space<vmem>>, vector<1x128xf32>
    %99 = vector.broadcast %98 : vector<1x128xf32> to vector<12x128xf32>
    %100 = arith.addf %97, %99 : vector<12x128xf32>
    %c0_47 = arith.constant 0 : index
    %c0_48 = arith.constant 0 : index
    %101 = vector.load %arg12[%c0_47, %c0_48] : memref<128x128xf32, #tpu.memory_space<vmem>>, vector<128x128xf32>
    %cst_49 = arith.constant dense<0.000000e+00> : vector<12x128xf32>
    %102 = tpu.matmul %100, %101, %cst_49 {dimension_numbers = #tpu.dot_dimension_numbers<[1], [0], [0], [1], [0, 0, 1, 1], [], []>} : vector<12x128xf32>, vector<128x128xf32>, vector<12x128xf32> -> vector<12x128xf32>
    %c0_50 = arith.constant 0 : index
    %c0_51 = arith.constant 0 : index
    %103 = vector.load %arg13[%c0_50, %c0_51] : memref<1x128xf32, #tpu.memory_space<vmem>>, vector<1x128xf32>
    %104 = vector.broadcast %103 : vector<1x128xf32> to vector<12x128xf32>
    %105 = arith.addf %102, %104 : vector<12x128xf32>
    %cst_52 = arith.constant dense<0.000000e+00> : vector<128xf32>
    %106 = vector.multi_reduction <add>, %105, %cst_52 [0] : vector<12x128xf32> to vector<128xf32>
    %107 = vector.shape_cast %106 : vector<128xf32> to vector<1x128xf32>
    %cst_53 = arith.constant 0.0833333358 : f32
    %108 = vector.broadcast %cst_53 : f32 to vector<1x128xf32>
    %109 = arith.mulf %107, %108 : vector<1x128xf32>
    %110 = vector.broadcast %109 : vector<1x128xf32> to vector<12x128xf32>
    %111 = arith.subf %105, %110 : vector<12x128xf32>
    %112 = arith.mulf %111, %111 : vector<12x128xf32>
    %cst_54 = arith.constant dense<0.000000e+00> : vector<128xf32>
    %113 = vector.multi_reduction <add>, %112, %cst_54 [0] : vector<12x128xf32> to vector<128xf32>
    %114 = vector.shape_cast %113 : vector<128xf32> to vector<1x128xf32>
    %cst_55 = arith.constant 0.0833333358 : f32
    %115 = vector.broadcast %cst_55 : f32 to vector<1x128xf32>
    %116 = arith.mulf %114, %115 : vector<1x128xf32>
    %cst_56 = arith.constant 9.99999974E-6 : f32
    %117 = vector.broadcast %cst_56 : f32 to vector<1x128xf32>
    %118 = arith.addf %116, %117 : vector<1x128xf32>
    %119 = math.rsqrt %118 : vector<1x128xf32>
    %120 = vector.broadcast %119 : vector<1x128xf32> to vector<12x128xf32>
    %121 = arith.mulf %111, %120 : vector<12x128xf32>
    %c0_57 = arith.constant 0 : index
    %c0_58 = arith.constant 0 : index
    %122 = vector.load %arg14[%c0_57, %c0_58] : memref<1x128xf32, #tpu.memory_space<vmem>>, vector<1x128xf32>
    %123 = vector.broadcast %122 : vector<1x128xf32> to vector<12x128xf32>
    %124 = arith.mulf %121, %123 : vector<12x128xf32>
    %c0_59 = arith.constant 0 : index
    %c0_60 = arith.constant 0 : index
    %125 = vector.load %arg15[%c0_59, %c0_60] : memref<1x128xf32, #tpu.memory_space<vmem>>, vector<1x128xf32>
    %126 = vector.broadcast %125 : vector<1x128xf32> to vector<12x128xf32>
    %127 = arith.addf %124, %126 : vector<12x128xf32>
    %cst_61 = arith.constant 0.000000e+00 : f32
    %128 = vector.broadcast %cst_61 : f32 to vector<12x128xf32>
    %129 = arith.maximumf %127, %128 : vector<12x128xf32>
    %c0_62 = arith.constant 0 : index
    %c0_63 = arith.constant 0 : index
    %130 = vector.load %arg16[%c0_62, %c0_63] : memref<12x128xf32, #tpu.memory_space<vmem>>, vector<12x128xf32>
    tpu.vector_store %arg16[%c0_62, %c0_63], %129 {strides = array<i32>} : memref<12x128xf32, #tpu.memory_space<vmem>>, vector<12x128xf32>,
    return
  }
}

module attributes {stable_mosaic.version = 11 : i64} {
  func.func @_pool_head_kernel(%arg0: memref<12x128xf32, #tpu.memory_space<vmem>>, %arg1: memref<1x12xi32, #tpu.memory_space<vmem>>, %arg2: memref<128x128xf32, #tpu.memory_space<vmem>>, %arg3: memref<128x128xf32, #tpu.memory_space<vmem>>, %arg4: memref<1x128xf32, #tpu.memory_space<vmem>>, %arg5: memref<128x64xf32, #tpu.memory_space<vmem>>, %arg6: memref<1x64xf32, #tpu.memory_space<vmem>>, %arg7: memref<64x2xf32, #tpu.memory_space<vmem>>, %arg8: memref<1x2xf32, #tpu.memory_space<vmem>>, %arg9: memref<2x2xf32, #tpu.memory_space<vmem>>) attributes {dimension_semantics = [], scalar_prefetch = 0 : i64, scratch_operands = 0 : i64, tpu.core_type = #tpu.core_type<tc>} {
    %c0 = arith.constant 0 : index
    %c0_0 = arith.constant 0 : index
    %0 = vector.load %arg0[%c0, %c0_0] : memref<12x128xf32, #tpu.memory_space<vmem>>, vector<12x128xf32>
    %1 = tpu.iota {dimensions = array<i32: 0>} : vector<2x12xi32>
    %c0_1 = arith.constant 0 : index
    %c0_2 = arith.constant 0 : index
    %2 = vector.load %arg1[%c0_1, %c0_2] : memref<1x12xi32, #tpu.memory_space<vmem>>, vector<1x12xi32>
    %3 = vector.broadcast %2 : vector<1x12xi32> to vector<2x12xi32>
    %4 = arith.cmpi eq, %1, %3 : vector<2x12xi32>
    %5 = arith.extui %4 : vector<2x12xi1> to vector<2x12xi32>
    %6 = arith.sitofp %5 : vector<2x12xi32> to vector<2x12xf32>
    %cst = arith.constant dense<0.000000e+00> : vector<2xf32>
    %7 = vector.multi_reduction <add>, %6, %cst [1] : vector<2x12xf32> to vector<2xf32>
    %8 = vector.shape_cast %7 : vector<2xf32> to vector<2x1xf32>
    %cst_3 = arith.constant dense<0.000000e+00> : vector<2x128xf32>
    %9 = tpu.matmul %6, %0, %cst_3 {dimension_numbers = #tpu.dot_dimension_numbers<[1], [0], [0], [1], [0, 0, 1, 1], [], []>} : vector<2x12xf32>, vector<12x128xf32>, vector<2x128xf32> -> vector<2x128xf32>
    %cst_4 = arith.constant 1.000000e+00 : f32
    %10 = vector.broadcast %cst_4 : f32 to vector<2x1xf32>
    %11 = arith.maximumf %8, %10 : vector<2x1xf32>
    %12 = vector.broadcast %11 : vector<2x1xf32> to vector<2x128xf32>
    %13 = arith.divf %9, %12 : vector<2x128xf32>
    %cst_5 = arith.constant 1.000000e+00 : f32
    %14 = vector.broadcast %cst_5 : f32 to vector<2x12xf32>
    %15 = arith.subf %6, %14 : vector<2x12xf32>
    %cst_6 = arith.constant 1.000000e+30 : f32
    %16 = vector.broadcast %cst_6 : f32 to vector<2x12xf32>
    %17 = arith.mulf %15, %16 : vector<2x12xf32>
    %18 = vector.shape_cast %0 : vector<12x128xf32> to vector<1x12x128xf32>
    %19 = vector.shape_cast %17 : vector<2x12xf32> to vector<2x12x1xf32>
    %20 = vector.broadcast %18 : vector<1x12x128xf32> to vector<2x12x128xf32>
    %21 = vector.broadcast %19 : vector<2x12x1xf32> to vector<2x12x128xf32>
    %22 = arith.addf %20, %21 : vector<2x12x128xf32>
    %cst_7 = arith.constant dense<0xFF800000> : vector<2x128xf32>
    %23 = vector.multi_reduction <maximumf>, %22, %cst_7 [1] : vector<2x12x128xf32> to vector<2x128xf32>
    %cst_8 = arith.constant 0.000000e+00 : f32
    %24 = vector.broadcast %cst_8 : f32 to vector<2x1xf32>
    %25 = arith.cmpf ogt, %8, %24 : vector<2x1xf32>
    %cst_9 = arith.constant 0.000000e+00 : f32
    %26 = vector.shape_cast %25 : vector<2x1xi1> to vector<2x1xi1>
    %27 = vector.broadcast %26 : vector<2x1xi1> to vector<2x128xi1>
    %28 = vector.broadcast %cst_9 : f32 to vector<2x128xf32>
    %29 = arith.select %27, %23, %28 : vector<2x128xi1>, vector<2x128xf32>
    %c0_10 = arith.constant 0 : index
    %c0_11 = arith.constant 0 : index
    %30 = vector.load %arg2[%c0_10, %c0_11] : memref<128x128xf32, #tpu.memory_space<vmem>>, vector<128x128xf32>
    %cst_12 = arith.constant dense<0.000000e+00> : vector<2x128xf32>
    %31 = tpu.matmul %29, %30, %cst_12 {dimension_numbers = #tpu.dot_dimension_numbers<[1], [0], [0], [1], [0, 0, 1, 1], [], []>} : vector<2x128xf32>, vector<128x128xf32>, vector<2x128xf32> -> vector<2x128xf32>
    %c0_13 = arith.constant 0 : index
    %c0_14 = arith.constant 0 : index
    %32 = vector.load %arg3[%c0_13, %c0_14] : memref<128x128xf32, #tpu.memory_space<vmem>>, vector<128x128xf32>
    %cst_15 = arith.constant dense<0.000000e+00> : vector<2x128xf32>
    %33 = tpu.matmul %13, %32, %cst_15 {dimension_numbers = #tpu.dot_dimension_numbers<[1], [0], [0], [1], [0, 0, 1, 1], [], []>} : vector<2x128xf32>, vector<128x128xf32>, vector<2x128xf32> -> vector<2x128xf32>
    %34 = arith.addf %31, %33 : vector<2x128xf32>
    %c0_16 = arith.constant 0 : index
    %c0_17 = arith.constant 0 : index
    %35 = vector.load %arg4[%c0_16, %c0_17] : memref<1x128xf32, #tpu.memory_space<vmem>>, vector<1x128xf32>
    %36 = vector.broadcast %35 : vector<1x128xf32> to vector<2x128xf32>
    %37 = arith.addf %34, %36 : vector<2x128xf32>
    %cst_18 = arith.constant 0.000000e+00 : f32
    %38 = vector.broadcast %cst_18 : f32 to vector<2x128xf32>
    %39 = arith.maximumf %37, %38 : vector<2x128xf32>
    %c0_19 = arith.constant 0 : index
    %c0_20 = arith.constant 0 : index
    %40 = vector.load %arg5[%c0_19, %c0_20] : memref<128x64xf32, #tpu.memory_space<vmem>>, vector<128x64xf32>
    %cst_21 = arith.constant dense<0.000000e+00> : vector<2x64xf32>
    %41 = tpu.matmul %39, %40, %cst_21 {dimension_numbers = #tpu.dot_dimension_numbers<[1], [0], [0], [1], [0, 0, 1, 1], [], []>} : vector<2x128xf32>, vector<128x64xf32>, vector<2x64xf32> -> vector<2x64xf32>
    %c0_22 = arith.constant 0 : index
    %c0_23 = arith.constant 0 : index
    %42 = vector.load %arg6[%c0_22, %c0_23] : memref<1x64xf32, #tpu.memory_space<vmem>>, vector<1x64xf32>
    %43 = vector.broadcast %42 : vector<1x64xf32> to vector<2x64xf32>
    %44 = arith.addf %41, %43 : vector<2x64xf32>
    %cst_24 = arith.constant 0.000000e+00 : f32
    %45 = vector.broadcast %cst_24 : f32 to vector<2x64xf32>
    %46 = arith.maximumf %44, %45 : vector<2x64xf32>
    %c0_25 = arith.constant 0 : index
    %c0_26 = arith.constant 0 : index
    %47 = vector.load %arg7[%c0_25, %c0_26] : memref<64x2xf32, #tpu.memory_space<vmem>>, vector<64x2xf32>
    %cst_27 = arith.constant dense<0.000000e+00> : vector<2x2xf32>
    %48 = tpu.matmul %46, %47, %cst_27 {dimension_numbers = #tpu.dot_dimension_numbers<[1], [0], [0], [1], [0, 0, 1, 1], [], []>} : vector<2x64xf32>, vector<64x2xf32>, vector<2x2xf32> -> vector<2x2xf32>
    %c0_28 = arith.constant 0 : index
    %c0_29 = arith.constant 0 : index
    %49 = vector.load %arg8[%c0_28, %c0_29] : memref<1x2xf32, #tpu.memory_space<vmem>>, vector<1x2xf32>
    %50 = vector.broadcast %49 : vector<1x2xf32> to vector<2x2xf32>
    %51 = arith.addf %48, %50 : vector<2x2xf32>
    %c0_30 = arith.constant 0 : index
    %c0_31 = arith.constant 0 : index
    %52 = vector.load %arg9[%c0_30, %c0_31] : memref<2x2xf32, #tpu.memory_space<vmem>>, vector<2x2xf32>
    tpu.vector_store %arg9[%c0_30, %c0_31], %51 {strides = array<i32>} : memref<2x2xf32, #tpu.memory_space<vmem>>, vector<2x2xf32>,
    return
  }
}

</mosaic_0001>

<bundles_post_ra>
// kernel: simp_forward.9
= control target key start
LH: loop header
LB: loop body
LE: loop exit
PB: predicated region body
PF: predicated region fallthrough
CT: control target
= control target key end

     0   :  { %v35_v0 = vlaneseq  ;;  %vm50_vm0 = vcmask 1043456   ;;  %vm42_vm1 = vcmask 91136   ;;  %vm46_vm2 = vcmask 97280   ;;  %s617_s0 = inlined_call_operand.vmem [shape: f32[12,128], index: 0, kind: input, shape index: {}]   ;;  %s618_s1 = inlined_call_operand.vmem [shape: s32[1,12], index: 1, kind: input, shape index: {}]   ;;  %s619_s2 = inlined_call_operand.vmem [shape: f32[128,128], index: 2, kind: input, shape index: {}]   ;;  %s620_s3 = inlined_call_operand.vmem [shape: f32[128,128], index: 3, kind: input, shape index: {}]   ;;  %s621_s4 = inlined_call_operand.vmem [shape: f32[1,128], index: 4, kind: input, shape index: {}]   ;;  %s622_s5 = inlined_call_operand.vmem [shape: f32[128,64], index: 5, kind: input, shape index: {}]   ;;  %s623_s6 = inlined_call_operand.vmem [shape: f32[1,64], index: 6, kind: input, shape index: {}]   ;;  %s624_s7 = inlined_call_operand.vmem [shape: f32[64,2], index: 7, kind: input, shape index: {}]   ;;  %s625_s8 = inlined_call_operand.vmem [shape: f32[1,2], index: 8, kind: input, shape index: {}]   ;;  %s626_s9 = inlined_call_operand.hbm [shape: f32[2,2], index: 9, kind: output, shape index: {}]  }
   0x1   :  { %v330_v1 = vld [vmem:[%s618_s1] ss:$0 sm:$0xff]  ;;  %v420_v2 = vld [vmem:[%s617_s0 + $0x8] sm:$0xf]  ;;  %v178_v4 = vld [vmem:[%s620_s3 + $0x78] sm:$0xff]  ;;  %v362_v10 = vmov 0.0  }
   0x2   :  { %v425_v3 = vld [vmem:[%s617_s0] sm:$0xff]  ;;  %v36_v5 = vshrl.u32 %v35_v0, 7  ;;  %321 = vmatpush.msk.msra.mxu0 %vm50_vm0, %v420_v2  ;;  %179 = vmatpush.msra.mxu1 %v178_v4  ;;  %v177_v6 = vld [vmem:[%s620_s3 + $0x70] sm:$0xff]  ;;  %v162_v7 = vld [vmem:[%s619_s2 + $0x78] sm:$0xff] }
   0x3   :  { %v176_v9 = vld [vmem:[%s620_s3 + $0x68] sm:$0xff]  ;;  %199 = vmatpush.msra.mxu2 %v162_v7  ;;  %v161_v12 = vld [vmem:[%s619_s2 + $0x70] sm:$0xff] }
   0x4   :  { %329 = vset.pattern.permute.xlu1 %v36_v5  ;;  %v101_v8 = vadd.s32 8, %v36_v5  ;;  %vm39_vm3 = vcmp.eq.s32.totalorder %v36_v5, %v330_v1  ;;  %69 = vmatpush.msra.mxu0 %v425_v3 }
   0x5   :  { %v320_v11 = vsel %vm39_vm3, 1.0, %v362_v10  ;;  %180 = vmatpush.msra.mxu1 %v177_v6 }
   0x6   :  { %14 = vsyncpa [#allocation3], 0  ;;  %328 = vset.pattern.permute.xlu0 %v101_v8  ;;  %v43_v13 = vsel %vm42_vm1, %v320_v11, 0.0  ;;  %v323_v14 = vadd.f32 -1.0, %v320_v11  ;;  %322 = vmatmul.msk.f32.vlgmr.msra.gmra.mxu0 %vm46_vm2, %v320_v11  ;;  %v175_v15 = vld [vmem:[%s620_s3 + $0x60] sm:$0xff]  ;;  %v174_v17 = vld [vmem:[%s620_s3 + $0x58] sm:$0xff] }
   0x7   :  { %44 = vadd.xlane.f32.xlu2 %v43_v13  ;;  %181 = vmatpush.msra.mxu1 %v176_v9  ;;  %v173_v20 = vld [vmem:[%s620_s3 + $0x50] sm:$0xff]  ;;  %v160_v21 = vld [vmem:[%s619_s2 + $0x68] sm:$0xff]  ;;  %v159_v23 = vld [vmem:[%s619_s2 + $0x60] sm:$0xff]  ;;  %vm143_vm8 = vcmask 1041409   ;;  %vm278_vm10 = vcmask 523264   ;;  %s363_s11 = smov [#allocation2]  }
   0x8   :  { %v91_v16 = vmul.f32 1e+30, %v323_v14  ;;  %200 = vmatpush.msra.mxu2 %v161_v12  ;;  %v172_v22 = vld [vmem:[%s620_s3 + $0x48] sm:$0xff]  ;;  %v171_v24 = vld [vmem:[%s620_s3 + $0x40] sm:$0xff]  ;;  %v158_v25 = vld [vmem:[%s619_s2 + $0x58] sm:$0xff]  ;;  %s309_s12 = sshll.u32 %s363_s11, 4  ;;  %s310_s12 = int_to_ptr.vmem [resolvable:$true] %s309_s12 }
   0x9   :  { %182 = vmatpush.msra.mxu1 %v175_v15  ;;  %v170_v26 = vld [vmem:[%s620_s3 + $0x38] sm:$0xff]  ;;  %v157_v27 = vld [vmem:[%s619_s2 + $0x50] sm:$0xff]  ;;  %v156_v29 = vld [vmem:[%s619_s2 + $0x48] sm:$0xff]  ;;  %vm302_vm11 = vcmask 9216  }
   0xa   :  { %v92_v18 = vperm.slane %v91_v16, 0  ;;  %v105_v19 = vperm.slane %v91_v16, 1  ;;  %201 = vmatpush.msra.mxu2 %v160_v21  ;;  %v169_v28 = vld [vmem:[%s620_s3 + $0x30] sm:$0xff]  ;;  %v168_v30 = vld [vmem:[%s620_s3 + $0x28] sm:$0xff]  ;;  %v155_v31 = vld [vmem:[%s619_s2 + $0x40] sm:$0xff] }
   0xb   :  { %183 = vmatpush.msra.mxu1 %v174_v17  ;;  %v167_v32 = vld [vmem:[%s620_s3 + $0x20] sm:$0xff]  ;;  %v154_v33 = vld [vmem:[%s619_s2 + $0x38] sm:$0xff]  ;;  %v153_v35 = vld [vmem:[%s619_s2 + $0x30] sm:$0xff] }
   0xc   :  { %97 = vperm.xlu1 %329, %v92_v18   ;;  %202 = vmatpush.msra.mxu2 %v159_v23  ;;  %v166_v34 = vld [vmem:[%s620_s3 + $0x18] sm:$0xff]  ;;  %v165_v36 = vld [vmem:[%s620_s3 + $0x10] sm:$0xff]  ;;  %v152_v37 = vld [vmem:[%s619_s2 + $0x28] sm:$0xff] }
   0xd   :  { %184 = vmatpush.msra.mxu1 %v173_v20  ;;  %v164_v38 = vld [vmem:[%s620_s3 + $0x8] sm:$0xff]  ;;  %v151_v39 = vld [vmem:[%s619_s2 + $0x20] sm:$0xff]  ;;  %v150_v41 = vld [vmem:[%s619_s2 + $0x18] sm:$0xff] }
   0xe   :  { %103 = vperm.xlu0 %328, %v92_v18   ;;  %203 = vmatpush.msra.mxu2 %v158_v25  ;;  %v163_v40 = vld [vmem:[%s620_s3] sm:$0xff]  ;;  %v149_v42 = vld [vmem:[%s619_s2 + $0x10] sm:$0xff]  ;;  %v148_v43 = vld [vmem:[%s619_s2 + $0x8] sm:$0xff] }
   0xf   :  { %185 = vmatpush.msra.mxu1 %v172_v22  ;;  %v147_v44 = vld [vmem:[%s619_s2] sm:$0xff]  ;;  %v240_v47 = vld [vmem:[%s622_s5 + $0x78] sm:$0xff]  ;;  %v239_v48 = vld [vmem:[%s622_s5 + $0x70] sm:$0xff] }
  0x10   :  { %204 = vmatpush.msra.mxu2 %v157_v27  ;;  %245 = vmatpush.msra.mxu3 %v240_v47  ;;  %v238_v49 = vld [vmem:[%s622_s5 + $0x68] sm:$0xff]  ;;  %v237_v51 = vld [vmem:[%s622_s5 + $0x60] sm:$0xff]  ;;  %v236_v55 = vld [vmem:[%s622_s5 + $0x58] sm:$0xff] }
  0x11   :  { %186 = vmatpush.msra.mxu1 %v171_v24  ;;  %v235_v58 = vld [vmem:[%s622_s5 + $0x50] sm:$0xff]  ;;  %v233_v27 = vld [vmem:[%s622_s5 + $0x40] sm:$0xff] }
  0x12   :  { %205 = vmatpush.msra.mxu2 %v156_v29  ;;  %246 = vmatpush.msra.mxu3 %v239_v48  ;;  %v231_v29 = vld [vmem:[%s622_s5 + $0x30] sm:$0xff]  ;;  %v267_v48 = vld [vmem:[%s624_s7 + $0x8] sm:$0xff] }
  0x13   :  { %187 = vmatpush.msra.mxu1 %v170_v26  ;;  %v234_v26 = vld [vmem:[%s622_s5 + $0x48] sm:$0xff]  ;;  %v268_v47 = vld [vmem:[%s624_s7 + $0x10] sm:$0xff] }
  0x14   :  { %110 = vperm.xlu1 %329, %v105_v19   ;;  %206 = vmatpush.msra.mxu2 %v155_v31  ;;  %v229_v31 = vld [vmem:[%s622_s5 + $0x20] sm:$0xff] }
  0x15   :  { %188 = vmatpush.msra.mxu1 %v169_v28  ;;  %247 = vmatpush.msra.mxu3 %v238_v49  ;;  %v232_v28 = vld [vmem:[%s622_s5 + $0x38] sm:$0xff]  ;;  %v266_v49 = vld [vmem:[%s624_s7] sm:$0xff] }
  0x16   :  { %116 = vperm.xlu0 %328, %v105_v19   ;;  %207 = vmatpush.msra.mxu2 %v154_v33  ;;  %v227_v33 = vld [vmem:[%s622_s5 + $0x10] sm:$0xff] }
  0x17   :  { %189 = vmatpush.msra.mxu1 %v168_v30  ;;  %248 = vmatpush.msra.mxu3 %v237_v51  ;;  %v230_v30 = vld [vmem:[%s622_s5 + $0x28] sm:$0xff] }
  0x18   :  { %208 = vmatpush.msra.mxu2 %v153_v35  ;;  %v225_v35 = vld [vmem:[%s622_s5] sm:$0xff] }
  0x19   :  { %190 = vmatpush.msra.mxu1 %v167_v32  ;;  %249 = vmatpush.msra.mxu3 %v236_v55  ;;  %v228_v32 = vld [vmem:[%s622_s5 + $0x18] sm:$0xff] }
  0x1a   :  { %209 = vmatpush.msra.mxu2 %v152_v37  ;;  %v272_v37 = vld [vmem:[%s624_s7 + $0x30] sm:$0xff] }
  0x1b   :  { %191 = vmatpush.msra.mxu1 %v166_v34  ;;  %250 = vmatpush.msra.mxu3 %v235_v58  ;;  %v226_v34 = vld [vmem:[%s622_s5 + $0x8] sm:$0xff] }
  0x1c   :  { %210 = vmatpush.msra.mxu2 %v151_v39  ;;  %v270_v39 = vld [vmem:[%s624_s7 + $0x20] sm:$0xff] }
  0x1d   :  { %192 = vmatpush.msra.mxu1 %v165_v36  ;;  %251 = vmatpush.msra.mxu3 %v234_v26  ;;  %v273_v36 = vld [vmem:[%s624_s7 + $0x38] sm:$0xff] }
  0x1e   :  { %211 = vmatpush.msra.mxu2 %v150_v41  ;;  %290 = vmatpush.msrb.mxu0 %v273_v36  ;;  %v331_v41 = vld [vmem:[%s621_s4] ss:$0 sm:$0xff] }
  0x1f   :  { %193 = vmatpush.msra.mxu1 %v164_v38  ;;  %252 = vmatpush.msra.mxu3 %v233_v27  ;;  %v271_v38 = vld [vmem:[%s624_s7 + $0x28] sm:$0xff] }
  0x20   :  { %212 = vmatpush.msra.mxu2 %v149_v42  ;;  %291 = vmatpush.msrb.mxu0 %v272_v37 }
  0x21   :  { %194 = vmatpush.msra.mxu1 %v163_v40  ;;  %253 = vmatpush.msra.mxu3 %v232_v28  ;;  %v269_v40 = vld [vmem:[%s624_s7 + $0x18] sm:$0xff]  ;;  %s311_s7 = sshll.u32 %s626_s9, 4  ;;  %s312_s7 = int_to_ptr.hbm [resolvable:$true] %s311_s7 }
  0x22   :  { %213 = vmatpush.msra.mxu2 %v148_v43  ;;  %292 = vmatpush.msrb.mxu0 %v271_v38 }
  0x23   :  { %254 = vmatpush.msra.mxu3 %v231_v29 }
  0x24   :  { %214 = vmatpush.msra.mxu2 %v147_v44  ;;  %293 = vmatpush.msrb.mxu0 %v270_v39 }
  0x25   :  { %255 = vmatpush.msra.mxu3 %v230_v30 }
  0x26   :  { %294 = vmatpush.msrb.mxu0 %v269_v40 }
  0x27   :  { %256 = vmatpush.msra.mxu3 %v229_v31 }
  0x28   :  { %295 = vmatpush.msrb.mxu0 %v268_v47 }
  0x29   :  { %257 = vmatpush.msra.mxu3 %v228_v32 }
  0x2a   :  { %296 = vmatpush.msrb.mxu0 %v267_v48 }
  0x2b   :  { %258 = vmatpush.msra.mxu3 %v227_v33 }
  0x2c   :  { %297 = vmatpush.msrb.mxu0 %v266_v49 }
  0x2d   :  { %259 = vmatpush.msra.mxu3 %v226_v34 }
  0x2f   :  { %260 = vmatpush.msra.mxu3 %v225_v35 }
  0x7a   :  { %v45_v45 = vpop.xlane.xlu2 %44 }
  0x7b   :  { %v74_v46 = vmax.f32 %v45_v45, 1.0  ;;  %vm138_vm9 = vcmp.gt.f32.partialorder %v45_v45, 0.0 }
  0x7d   :  { %334 = vrcp.f32 %v74_v46  ;;  %vm80_vm4 = vweird.f32 %v74_v46  ;;  %v86_v61 = vand.u32 2147483648, %v74_v46  ;;  %v84_v0 = vand.u32 2147483647, %v74_v46 }
  0x7e   :  { %v98_v50 = vpop.permute.xlu1 %97 }
  0x7f   :  { %v118_v52 = vadd.f32 %v98_v50, %v425_v3  ;;  %v87_v8 = vor.u32 1.1754944e-38, %v86_v61  ;;  %vm85_vm7 = vcmp.eq.f32.partialorder %v84_v0, 8.507059e+37  ;;  %v332_v50 = vld [vmem:[%s623_s6] ss:$0 sm:$0xff] }
  0x80   :  { %v104_v53 = vpop.permute.xlu0 %103 }
  0x81   :  { %v119_v54 = vadd.f32 %v104_v53, %v420_v2 }
  0x83   :  { %v335_v56 = vpop.eup %334  ;;  %v122_v57 = vsel %vm50_vm0, %v119_v54, -inf  ;;  %v71_v12 = vpop.f32.mrf.mxu0  ;;  %v333_v54 = vld [vmem:[%s625_s8] ss:$0 sm:$0xff] }
  0x84   :  { %v123_v59 = vmax.f32 %v118_v52, %v122_v57  ;;  %v76_v60 = vmul.f32 %v335_v56, %v74_v46  ;;  %vm81_vm5 = vweird.f32 %v335_v56 }
  0x85   :  { %vm82_vm6 = vmor %vm80_vm4, %vm81_vm5 }
  0x86   :  { %v124_v62 = vrot.slane %v123_v59, 4  ;;  %v77_v63 = vsub.f32 1.0, %v76_v60  ;;  %v111_v1 = vpop.permute.xlu1 %110 }
  0x87   :  { %v120_v9 = vadd.f32 %v111_v1, %v425_v3 }
  0x88   :  { %v125_v4 = vmax.f32 %v123_v59, %v124_v62  ;;  %v117_v5 = vpop.permute.xlu0 %116  ;;  %v78_v6 = vmul.f32 %v335_v56, %v77_v63 }
  0x89   :  { %v121_v7 = vadd.f32 %v117_v5, %v420_v2 }
  0x8a   :  { %v79_v10 = vadd.f32 %v335_v56, %v78_v6  ;;  %v126_v13 = vrot.slane %v125_v4, 2 }
  0x8b   :  { %v130_v11 = vsel %vm50_vm0, %v121_v7, -inf }
  0x8c   :  { %v131_v14 = vmax.f32 %v120_v9, %v130_v11  ;;  %v83_v15 = vsel %vm82_vm6, %v335_v56, %v79_v10  ;;  %v127_v19 = vmax.f32 %v125_v4, %v126_v13 }
  0x8d   :  { %v88_v16 = vsel %vm85_vm7, %v87_v8, %v83_v15 }
  0x8e   :  { %v132_v17 = vrot.slane %v131_v14, 4  ;;  %v89_v18 = vmul.f32 %v88_v16, %v71_v12  ;;  %v128_v22 = vrot.slane %v127_v19, 1 }
  0x90   :  { %v133_v20 = vmax.f32 %v131_v14, %v132_v17  ;;  %195 = vmatmul.f32.vlgmr.msra.gmra.mxu1 %v89_v18  ;;  %v129_v3 = vmax.f32 %v127_v19, %v128_v22 }
  0x92   :  { %v134_v21 = vrot.slane %v133_v20, 2 }
  0x94   :  { %v135_v2 = vmax.f32 %v133_v20, %v134_v21 }
  0x96   :  { %v136_v23 = vrot.slane %v135_v2, 1 }
  0x98   :  { %v137_v24 = vmax.f32 %v135_v2, %v136_v23 }
  0x9a   :  { %v144_v25 = vsel %vm143_vm8, %v137_v24, %v129_v3 }
  0x9b   :  { %324 = vmatmul.msk.f32.vlgmr.msra.gmra.mxu2 %vm138_vm9, %v144_v25 }
 0x10d   :  { %v196_v42 = vpop.f32.mrf.mxu1 }
 0x11e   :  { %v216_v43 = vpop.f32.mrf.mxu2 }
 0x11f   :  { %v217_v44 = vadd.f32 %v216_v43, %v196_v42 }
 0x121   :  { %v223_v45 = vadd.f32 %v331_v41, %v217_v44 }
 0x123   :  { %v224_v46 = vmax.f32 %v223_v45, 0.0 }
 0x125   :  { %261 = vmatmul.f32.vlgmr.msra.gmra.mxu3 %v224_v46 }
 0x1a8   :  { %v262_v51 = vpop.f32.mrf.mxu3 }
 0x1a9   :  { %v263_v52 = vadd.f32 %v332_v50, %v262_v51 }
 0x1ab   :  { %v265_v53 = vmax.f32 %v263_v52, 0.0 }
 0x1ad   :  { %325 = vmatmul.msk.f32.vlgmr.msrb.gmra.mxu0 %vm278_vm10, %v265_v53 }
 0x22a   :  { %v299_v55 = vpop.f32.mrf.mxu0 }
 0x22b   :  { %v300_v56 = vadd.f32 %v333_v54, %v299_v55 }
 0x22d   :  { %303 = vst.msk [vmem:[#allocation2] sm:$0x3] %vm302_vm11, %v300_v56 }
 0x22e   :  { %314 = dma.vmem_to_hbm [thread:$0]  %s310_s12, 32, %s312_s7, [#allocation3]  }
 0x22f   :  { %360 = dma.done.wait [#allocation3], 32  }
 0x230   :  { %361 = vsyncadd [#allocation3], 4294967264 }
 0x231   :  { %319 = vsyncpa [#allocation3], 1 }

// kernel: simp_forward.5
= control target key start
LH: loop header
LB: loop body
LE: loop exit
PB: predicated region body
PF: predicated region fallthrough
CT: control target
= control target key end

     0   :  { %s2981_s0 = inlined_call_operand.vmem [shape: f32[12,16], index: 0, kind: input, shape index: {}]   ;;  %s2982_s1 = inlined_call_operand.vmem [shape: f32[32,4], index: 1, kind: input, shape index: {}]   ;;  %s2983_s2 = inlined_call_operand.vmem [shape: s32[32,1], index: 2, kind: input, shape index: {}]   ;;  %s2984_s3 = inlined_call_operand.vmem [shape: s32[32,1], index: 3, kind: input, shape index: {}]   ;;  %s2985_s4 = inlined_call_operand.vmem [shape: s32[1,32], index: 4, kind: input, shape index: {}]   ;;  %s2986_s5 = inlined_call_operand.vmem [shape: f32[16,16], index: 5, kind: input, shape index: {}]   ;;  %s2987_s6 = inlined_call_operand.hbm [shape: f32[16,16], index: 6, kind: input, shape index: {}]   ;;  %s2988_s7 = inlined_call_operand.vmem [shape: f32[4,16], index: 7, kind: input, shape index: {}]   ;;  %s2989_s8 = inlined_call_operand.vmem [shape: f32[1,16], index: 8, kind: input, shape index: {}]   ;;  %s2990_s9 = inlined_call_operand.hbm [shape: f32[16,128], index: 9, kind: input, shape index: {}]   ;;  %s2991_s10 = inlined_call_operand.hbm [shape: f32[192,128], index: 10, kind: input, shape index: {}]   ;;  %s2992_s11 = inlined_call_operand.vmem [shape: f32[1,128], index: 11, kind: input, shape index: {}]   ;;  %s2993_s12 = inlined_call_operand.hbm [shape: f32[128,128], index: 12, kind: input, shape index: {}]   ;;  %s2994_s13 = inlined_call_operand.hbm [shape: f32[1,128], index: 13, kind: input, shape index: {}]   ;;  %s2995_s14 = inlined_call_operand.hbm [shape: f32[1,128], index: 14, kind: input, shape index: {}]   ;;  %s2996_s15 = inlined_call_operand.hbm [shape: f32[1,128], index: 15, kind: input, shape index: {}]   ;;  %s2997_s16 = inlined_call_operand.vmem [shape: f32[12,128], index: 16, kind: output, shape index: {}]  }
   0x1   :  { %3029 = sst [smem:[#allocation44_spill]] %s2981_s0 }
   0x2   :  { %21 = vsyncpa [#allocation3], 0 }
   0x3   :  { %22 = vsyncpa [#allocation5], 0 }
   0x4   :  { %23 = vsyncpa [#allocation8], 0 }
   0x5   :  { %24 = vsyncpa [#allocation11], 0  ;;  %s58_s23 = sshll.u32 %s2990_s9, 4  ;;  %s1988_s24 = smov [#allocation4]   ;;  %s59_s23 = int_to_ptr.hbm [resolvable:$true] %s58_s23 }
   0x6   :  { %s60_s25 = sshll.u32 %s1988_s24, 4  ;;  %s86_s28 = sshll.u32 %s2993_s12, 4  ;;  %s61_s25 = int_to_ptr.vmem [resolvable:$true] %s60_s25  ;;  %s87_s28 = int_to_ptr.hbm [resolvable:$true] %s86_s28 }
   0x7   :  { %s1989_s29 = smov 128   ;;  %s1990_s30 = smov 8  }
   0x8   :  { %66 = dma.hbm_to_vmem [thread:$0]  %s59_s23, 256, %s61_s25, [#allocation5], %s1989_s29, %s1989_s29, %s1990_s30  }
   0x9   :  { %s1991_s0 = smov [#allocation7]   ;;  %s111_s9 = sshll.u32 %s2995_s14, 4  ;;  %s112_s9 = int_to_ptr.hbm [resolvable:$true] %s111_s9 }
   0xa   :  { %s88_s17 = sshll.u32 %s1991_s0, 4  ;;  %s41_s21 = sshll.u32 %s2987_s6, 4  ;;  %s89_s17 = int_to_ptr.vmem [resolvable:$true] %s88_s17  ;;  %s42_s21 = int_to_ptr.hbm [resolvable:$true] %s41_s21 }
   0xb   :  { %94 = dma.hbm_to_vmem [thread:$0]  %s87_s28, 2048, %s89_s17, [#allocation8], %s1989_s29, %s1989_s29, %s1990_s30  }
   0xc   :  { %s1992_s22 = smov [#allocation10]   ;;  %s1993_s23 = smov [#allocation2]  }
   0xd   :  { %s113_s24 = sshll.u32 %s1992_s22, 4  ;;  %s43_s25 = sshll.u32 %s1993_s23, 4  ;;  %s114_s24 = int_to_ptr.vmem [resolvable:$true] %s113_s24  ;;  %s44_s25 = int_to_ptr.vmem [resolvable:$true] %s43_s25 }
   0xe   :  { %116 = dma.hbm_to_vmem [thread:$0]  %s112_s9, 16, %s114_s24, [#allocation11]  }
   0xf   :  { %s71_s14 = sshll.u32 %s2991_s10, 4  ;;  %s100_s6 = sshll.u32 %s2994_s13, 4  ;;  %s72_s14 = int_to_ptr.hbm [resolvable:$true] %s71_s14  ;;  %s101_s6 = int_to_ptr.hbm [resolvable:$true] %s100_s6 }
  0x10   :  { %49 = dma.hbm_to_vmem [thread:$0]  %s42_s21, 256, %s44_s25, [#allocation3], %s1989_s29, %s1989_s29, %s1990_s30  }
  0x11   :  { %s1994_s17 = smov [#allocation6]   ;;  %s1995_s19 = smov [#allocation9]  }
  0x12   :  { %s73_s18 = sshll.u32 %s1994_s17, 4  ;;  %s102_s10 = sshll.u32 %s1995_s19, 4  ;;  %s74_s18 = int_to_ptr.vmem [resolvable:$true] %s73_s18  ;;  %s103_s10 = int_to_ptr.vmem [resolvable:$true] %s102_s10 }
  0x13   :  { %79 = dma.hbm_to_vmem [thread:$0]  %s72_s14, 3072, %s74_s18, [#allocation5], %s1989_s29, %s1989_s29, %s1990_s30  }
  0x14   :  { %s122_s20 = sshll.u32 %s2996_s15, 4  ;;  %s1996_s21 = smov [#allocation12]   ;;  %s123_s20 = int_to_ptr.hbm [resolvable:$true] %s122_s20 }
  0x15   :  { %105 = dma.hbm_to_vmem [thread:$0]  %s101_s6, 16, %s103_s10, [#allocation8]  }
  0x16   :  { %s124_s22 = sshll.u32 %s1996_s21, 4  ;;  %s125_s22 = int_to_ptr.vmem [resolvable:$true] %s124_s22 }
  0x17   :  { %127 = dma.hbm_to_vmem [thread:$0]  %s123_s20, 16, %s125_s22, [#allocation11]  }
  0x18   :  { %1980 = dma.done.wait [#allocation3], 256  }
  0x19   :  { %1981 = vsyncadd [#allocation3], 4294967040 }
  0x1a   :  { %1982 = dma.done.wait [#allocation5], 3328  }
  0x1b   :  { %1983 = vsyncadd [#allocation5], 4294963968 }
  0x1c   :  { %1984 = dma.done.wait [#allocation8], 2064  }
  0x1d   :  { %1985 = vsyncadd [#allocation8], 4294965232 }
  0x1e   :  { %1986 = dma.done.wait [#allocation11], 32  }
  0x1f   :  { %1987 = vsyncadd [#allocation11], 4294967264  ;;  %v1997_v0 = vmov 0   ;;  %v165_v1 = vld [vmem:[%s2984_s3 + $0x8] sm:$0xff]  ;;  %v164_v2 = vld [vmem:[%s2984_s3] sm:$0xff]  ;;  %v162_v7 = vlaneseq  ;;  %v1998_v13 = vmov 0.0  }
  0x20   :  { %1743 = vset.pattern.permute.xlu1 %v1997_v0  ;;  %1742 = vset.pattern.permute.xlu0 %v1997_v0  ;;  %v166_v3 = vld [vmem:[%s2984_s3 + $0x10] sm:$0xff]  ;;  %v193_v4 = vld [vmem:[%s2983_s2 + $0x8] sm:$0xff]  ;;  %v192_v5 = vld [vmem:[%s2983_s2] sm:$0xff]  ;;  %vm463_vm1 = vcmask 261120   ;;  %vm244_vm2 = vcmask 1043456   ;;  %vm231_vm4 = vcmask 97280  }
  0x21   :  { %1744 = vset.pattern.permute.xlu2 %v1997_v0  ;;  %172 = vperm.xlu1 %1743, %v165_v1   ;;  %v194_v6 = vld [vmem:[%s2983_s2 + $0x10] sm:$0xff]  ;;  %v2139_v8 = vshrl.u32 %v162_v7, 7  ;;  %v2144_v9 = vld [vmem:[%s2985_s4] ss:$0 sm:$0xff]  ;;  %v195_v10 = vld [vmem:[%s2983_s2 + $0x18] sm:$0xff]  ;;  %s3030_s4 = sld [smem:[#allocation44_spill]] }
  0x22   :  { %169 = vperm.xlu0 %1742, %v164_v2   ;;  %175 = vperm.xlu2 %1744, %v166_v3   ;;  %v167_v11 = vld [vmem:[%s2984_s3 + $0x18] sm:$0xff]  ;;  %v163_v25 = vand.u32 127, %v162_v7  ;;  %vm467_vm13 = vcmask 257024   ;;  %v319_v52 = vld [vmem:[%s2986_s5 + $0x8] sm:$0xff]  ;;  %v318_v53 = vld [vmem:[%s2986_s5] sm:$0xff]  ;;  %vm406_vm14 = vcmask 31744  }
  0x23   :  { %vm225_vm0 = vcmp.eq.s32.totalorder %v2139_v8, %v2144_v9  ;;  %v2155_v12 = vadd.s32 8, %v2139_v8  ;;  %v2184_v21 = vadd.s32 16, %v2139_v8  ;;  %v2199_v24 = vadd.s32 24, %v2139_v8  ;;  %v321_v54 = vld [vmem:[#allocation2 + $0x8] sm:$0xff]  ;;  %v320_v55 = vld [vmem:[#allocation2] sm:$0xff]  ;;  %v160_v61 = vld [vmem:[%s2982_s1 + $0x10] sm:$0xff] }
  0x24   :  { %v2158_v14 = vsel %vm225_vm0, 1.0, %v1998_v13  ;;  %349 = vmatpush.msra.mxu2 %v321_v54  ;;  %v405_v57 = vld [vmem:[%s2988_s7] sm:$0xf]  ;;  %v159_v59 = vld [vmem:[%s2982_s1 + $0x8] sm:$0xff]  ;;  %vm322_vm15 = vcmask 130048   ;;  %v161_v0 = vld [vmem:[%s2982_s1 + $0x18] sm:$0xff] }
  0x25   :  { %v1719_v15 = vadd.f32 -1.0, %v2158_v14  ;;  %v464_v18 = vsel %vm463_vm1, %v2158_v14, 0.0  ;;  %vm226_vm12 = vcmp.eq.s32.totalorder %v2155_v12, %v2144_v9  ;;  %v158_v58 = vld [vmem:[%s2982_s1] sm:$0xff]  ;;  %vm1337_vm0 = vcmask 1041409   ;;  %s2000_s0 = smov 16   ;;  %s2001_s6 = smov 48  }
  0x26   :  { %v2242_v45 = vsel %vm226_vm12, 1.0, %v1998_v13  ;;  %350 = vmatpush.msra.mxu2 %v320_v55  ;;  %s2002_s17 = smov 64  }
  0x27   :  { %v2163_v16 = vmul.f32 1e+30, %v1719_v15  ;;  %v157_v22 = vld [vmem:[%s3030_s4 + $0x8] sm:$0xf]  ;;  %v156_v23 = vld [vmem:[%s3030_s4] sm:$0xff]  ;;  %v468_v46 = vsel %vm467_vm13, %v2242_v45, 0.0 }
  0x28   :  { %1692 = vmatpush.msk.msra.mxu0 %vm244_vm2, %v157_v22  ;;  %1725 = vmatpush.msk.msra.mxu3 %vm244_vm2, %v157_v22  ;;  %v1720_v49 = vadd.f32 -1.0, %v2242_v45 }
  0x29   :  { %200 = vperm.xlu1 %1743, %v193_v4   ;;  %v2166_v17 = vperm.slane %v2163_v16, 0  ;;  %v2175_v19 = vperm.slane %v2163_v16, 1  ;;  %v2179_v20 = vperm.slane %v2163_v16, 2  ;;  %1697 = vmatpush.msk.msra.mxu1 %vm244_vm2, %v157_v22  ;;  %v2208_v28 = vperm.slane %v2163_v16, 4 }
  0x2a   :  { %197 = vperm.xlu0 %1742, %v192_v5   ;;  %203 = vperm.xlu2 %1744, %v194_v6   ;;  %v674_v35 = vperm.slane %v2163_v16, 3  ;;  %v2229_v41 = vperm.slane %v2163_v16, 5  ;;  %v2249_v47 = vperm.slane %v2163_v16, 6  ;;  %v774_v48 = vperm.slane %v2163_v16, 7 }
  0x2b   :  { %263 = vmatpush.msra.mxu0 %v156_v23  ;;  %1726 = vmatpush.msra.mxu3 %v156_v23  ;;  %v2259_v50 = vmul.f32 1e+30, %v1720_v49 }
  0x2c   :  { %304 = vmatpush.msra.mxu1 %v156_v23 }
  0x2d   :  { %v2262_v51 = vperm.slane %v2259_v50, 0  ;;  %390 = vmatpush.msrb.mxu3 %v319_v52  ;;  %v2280_v56 = vperm.slane %v2259_v50, 2  ;;  %1710 = vmatpush.msk.msrb.mxu0 %vm244_vm2, %v405_v57  ;;  %v824_v63 = vperm.slane %v2259_v50, 1 }
  0x2f   :  { %391 = vmatpush.msrb.mxu3 %v318_v53 }
  0x31   :  { %206 = vperm.xlu1 %1743, %v195_v10   ;;  %v874_v10 = vperm.slane %v2259_v50, 3  ;;  %v2409_v50 = vld [vmem:[%s2989_s8] ss:$0 sm:$0xff]  ;;  %s1999_s8 = smov 32  }
  0x32   :  { %178 = vperm.xlu0 %1742, %v167_v11   ;;  %1750 = vset.pattern.permute.xlu2 %v2155_v12 }
  0x39   :  { %1745 = vset.pattern.permute.xlu1 %v2139_v8 }
  0x3a   :  { %1765 = vset.pattern.permute.xlu0 %v2199_v24 }
  0x41   :  { %604 = vperm.xlu1 %1745, %v2166_v17  }
  0x49   :  { %1746 = vset.pattern.permute.xlu1 %v2155_v12 }
  0x51   :  { %610 = vperm.xlu1 %1746, %v2166_v17  }
  0x53   :  { %465 = vadd.xlane.f32.xlu2 %v464_v18 }
  0x59   :  { %1747 = vset.pattern.permute.xlu1 %v2139_v8 }
  0x5c   :  { %469 = vadd.xlane.f32.xlu0 %v468_v46 }
  0x61   :  { %629 = vperm.xlu1 %1747, %v2175_v19  }
  0x69   :  { %1748 = vset.pattern.permute.xlu1 %v2155_v12 }
  0x6b   :  { %660 = vperm.xlu2 %1750, %v2179_v20  }
  0x70   :  { %697 = vperm.xlu0 %1765, %v674_v35  }
  0x71   :  { %635 = vperm.xlu1 %1748, %v2175_v19  }
  0x73   :  { %1754 = vset.pattern.permute.xlu2 %v2184_v21 }
  0x78   :  { %1773 = vset.pattern.permute.xlu0 %v2139_v8 }
  0x79   :  { %1749 = vset.pattern.permute.xlu1 %v2139_v8 }
  0x7b   :  { %666 = vperm.xlu2 %1754, %v2179_v20  }
  0x7c   :  { %v176_v26 = vpop.permute.xlu2 %175 }
  0x7d   :  { %vm182_vm3 = vcmp.eq.s32.totalorder %v163_v25, %v176_v26 }
  0x7e   :  { %v1684_v27 = vsel %vm182_vm3, 1.0, %v1998_v13  ;;  %vm1339_vm3 = vcmask 1042434  }
  0x7f   :  { %1695 = vmatmul.msk.f32.vlgmr.msra.gmra.mxu3 %vm231_vm4, %v1684_v27 }
  0x80   :  { %804 = vperm.xlu0 %1773, %v2262_v51  }
  0x81   :  { %654 = vperm.xlu1 %1749, %v2179_v20  }
  0x83   :  { %1756 = vset.pattern.permute.xlu2 %v2155_v12 }
  0x84   :  { %v204_v40 = vpop.permute.xlu2 %203 }
  0x85   :  { %vm210_vm10 = vcmp.eq.s32.totalorder %v163_v25, %v204_v40 }
  0x86   :  { %v1688_v42 = vsel %vm210_vm10, 1.0, %v1998_v13 }
  0x88   :  { %1774 = vset.pattern.permute.xlu0 %v2155_v12 }
  0x89   :  { %1751 = vset.pattern.permute.xlu1 %v2184_v21 }
  0x8b   :  { %710 = vperm.xlu2 %1756, %v2208_v28  }
  0x90   :  { %735 = vperm.xlu0 %1774, %v2229_v41  }
  0x91   :  { %616 = vperm.xlu1 %1751, %v2166_v17  }
  0x93   :  { %1758 = vset.pattern.permute.xlu2 %v2199_v24  ;;  %v173_v30 = vpop.permute.xlu1 %172 }
  0x94   :  { %v170_v29 = vpop.permute.xlu0 %169  ;;  %vm181_vm6 = vcmp.eq.s32.totalorder %v163_v25, %v173_v30 }
  0x95   :  { %vm180_vm5 = vcmp.eq.s32.totalorder %v163_v25, %v170_v29  ;;  %v1683_v32 = vsel %vm181_vm6, 1.0, %v1998_v13  ;;  %vm1345_vm6 = vcmask 1045509  }
  0x96   :  { %v1682_v31 = vsel %vm180_vm5, 1.0, %v1998_v13  ;;  %vm1343_vm5 = vcmask 1044484  }
  0x97   :  { %1693 = vmatmul.msk.f32.vlgmr.msra.gmra.mxu0 %vm231_vm4, %v1682_v31 }
  0x98   :  { %860 = vperm.xlu0 %1774, %v2280_v56  }
  0x99   :  { %1752 = vset.pattern.permute.xlu1 %v2139_v8 }
  0x9b   :  { %647 = vperm.xlu2 %1758, %v2175_v19   ;;  %v201_v36 = vpop.permute.xlu1 %200 }
  0x9c   :  { %v198_v33 = vpop.permute.xlu0 %197  ;;  %vm209_vm8 = vcmp.eq.s32.totalorder %v163_v25, %v201_v36 }
  0x9d   :  { %vm208_vm7 = vcmp.eq.s32.totalorder %v163_v25, %v198_v33  ;;  %v1687_v38 = vsel %vm209_vm8, 1.0, %v1998_v13  ;;  %vm1349_vm8 = vcmask 1047559  }
  0x9e   :  { %v1686_v34 = vsel %vm208_vm7, 1.0, %v1998_v13  ;;  %vm1347_vm7 = vcmask 1046534  }
  0x9f   :  { %1694 = vmatmul.msk.f32.gmra.mxu0 %vm231_vm4, %v1683_v32  ;;  %1698 = vmatmul.msk.f32.vlgmr.msra.gmra.mxu1 %vm231_vm4, %v1686_v34 }
  0xa0   :  { %1777 = vset.pattern.permute.xlu0 %v2184_v21 }
  0xa1   :  { %679 = vperm.xlu1 %1752, %v674_v35  }
  0xa3   :  { %1760 = vset.pattern.permute.xlu2 %v2139_v8  ;;  %v207_v43 = vpop.permute.xlu1 %206 }
  0xa4   :  { %v179_v37 = vpop.permute.xlu0 %178  ;;  %vm211_vm11 = vcmp.eq.s32.totalorder %v163_v25, %v207_v43 }
  0xa5   :  { %vm183_vm9 = vcmp.eq.s32.totalorder %v163_v25, %v179_v37  ;;  %v1689_v44 = vsel %vm211_vm11, 1.0, %v1998_v13 }
  0xa6   :  { %v1685_v39 = vsel %vm183_vm9, 1.0, %v1998_v13 }
  0xa7   :  { %1696 = vmatmul.msk.f32.gmra.mxu3 %vm231_vm4, %v1685_v39  ;;  %1699 = vmatmul.msk.f32.gmra.mxu1 %vm231_vm4, %v1687_v38 }
  0xa8   :  { %1711 = vmatmul.msk.f32.vlgmr.msrb.gmra.mxu0 %vm406_vm14, %v158_v58  ;;  %641 = vperm.xlu0 %1777, %v2175_v19  }
  0xa9   :  { %1753 = vset.pattern.permute.xlu1 %v2155_v12 }
  0xab   :  { %729 = vperm.xlu2 %1760, %v2229_v41  }
  0xaf   :  { %1700 = vmatmul.msk.f32.gmra.mxu1 %vm231_vm4, %v1688_v42 }
  0xb0   :  { %1712 = vmatmul.msk.f32.gmra.mxu0 %vm406_vm14, %v159_v59  ;;  %766 = vperm.xlu0 %1777, %v2249_v47  }
  0xb1   :  { %685 = vperm.xlu1 %1753, %v674_v35  }
  0xb3   :  { %1762 = vset.pattern.permute.xlu2 %v2184_v21  ;;  %v2320_v4 = vpop.permute.xlu1 %604 }
  0xb7   :  { %1701 = vmatmul.msk.f32.gmra.mxu1 %vm231_vm4, %v1689_v44  ;;  %vm1341_vm4 = vcmask 1043459  }
  0xb8   :  { %1713 = vmatmul.msk.f32.gmra.mxu0 %vm406_vm14, %v160_v61  ;;  %866 = vperm.xlu0 %1777, %v2280_v56  }
  0xb9   :  { %1755 = vset.pattern.permute.xlu1 %v2139_v8 }
  0xbb   :  { %716 = vperm.xlu2 %1762, %v2208_v28  }
  0xc0   :  { %1714 = vmatmul.msk.f32.gmra.mxu0 %vm406_vm14, %v161_v0  ;;  %1785 = vset.pattern.permute.xlu0 %v2199_v24 }
  0xc1   :  { %704 = vperm.xlu1 %1755, %v2208_v28  }
  0xc3   :  { %1764 = vset.pattern.permute.xlu2 %v2155_v12  ;;  %v2329_v9 = vpop.permute.xlu1 %610 }
  0xc6   :  { %v2307_v62 = vpop.xlane.xlu2 %465 }
  0xc7   :  { %3031 = vst [vmem:[#allocation17_spill] sm:$0xff] %v2307_v62 }
  0xc8   :  { %897 = vperm.xlu0 %1785, %v874_v10  }
  0xc9   :  { %1757 = vset.pattern.permute.xlu1 %v2199_v24 }
  0xcb   :  { %760 = vperm.xlu2 %1764, %v2249_v47  }
  0xce   :  { %v2318_v3 = vpop.permute.xlu2 %660 }
  0xcf   :  { %3032 = vst [vmem:[#allocation18_spill] sm:$0xff] %v2318_v3  ;;  %v2377_v32 = vpop.xlane.xlu0 %469 }
  0xd0   :  { %3045 = vst [vmem:[#allocation31_spill] sm:$0xff] %v2377_v32 }
  0xd1   :  { %622 = vperm.xlu1 %1757, %v2166_v17  }
  0xd3   :  { %1767 = vset.pattern.permute.xlu2 %v2139_v8  ;;  %v2336_v15 = vpop.permute.xlu1 %629 }
  0xd4   :  { %3034 = vst [vmem:[#allocation20_spill] sm:$0xff] %v2336_v15 }
  0xd6   :  { %v2327_v7 = vpop.permute.xlu2 %666 }
  0xd7   :  { %3033 = vst [vmem:[#allocation19_spill] sm:$0xff] %v2327_v7 }
  0xd9   :  { %1759 = vset.pattern.permute.xlu1 %v2184_v21 }
  0xdb   :  { %779 = vperm.xlu2 %1767, %v774_v48  }
  0xe1   :  { %691 = vperm.xlu1 %1759, %v674_v35  }
  0xe2   :  { %v2383_v35 = vpop.permute.xlu0 %697 }
  0xe3   :  { %1769 = vset.pattern.permute.xlu2 %v2199_v24  ;;  %v2342_v18 = vpop.permute.xlu1 %635 }
  0xe4   :  { %3036 = vst [vmem:[#allocation22_spill] sm:$0xff] %v2342_v18 }
  0xe5   :  { %v2338_v16 = vpop.permute.xlu2 %710 }
  0xe6   :  { %3035 = vst [vmem:[#allocation21_spill] sm:$0xff] %v2338_v16 }
  0xe9   :  { %1761 = vset.pattern.permute.xlu1 %v2199_v24 }
  0xeb   :  { %722 = vperm.xlu2 %1769, %v2208_v28  }
  0xf1   :  { %672 = vperm.xlu1 %1761, %v2179_v20  }
  0xf3   :  { %1771 = vset.pattern.permute.xlu2 %v2184_v21  ;;  %v2348_v20 = vpop.permute.xlu1 %654 }
  0xf4   :  { %3037 = vst [vmem:[#allocation23_spill] sm:$0xff] %v2348_v20 }
  0xf5   :  { %v2344_v19 = vpop.permute.xlu2 %647 }
  0xf9   :  { %1763 = vset.pattern.permute.xlu1 %v2139_v8 }
  0xfb   :  { %791 = vperm.xlu2 %1771, %v774_v48  }
 0x101   :  { %754 = vperm.xlu1 %1763, %v2249_v47  }
 0x102   :  { %v271_v5 = vpop.f32.mrf.mxu3 }
 0x103   :  { %1772 = vset.pattern.permute.xlu2 %v2199_v24  ;;  %v2353_v23 = vpop.permute.xlu1 %616 }
 0x105   :  { %v2351_v22 = vpop.permute.xlu2 %729 }
 0x106   :  { %3038 = vst [vmem:[#allocation24_spill] sm:$0xff] %v2351_v22 }
 0x109   :  { %1766 = vset.pattern.permute.xlu1 %v2184_v21 }
 0x10b   :  { %797 = vperm.xlu2 %1772, %v774_v48  }
 0x111   :  { %741 = vperm.xlu1 %1766, %v2229_v41  }
 0x113   :  { %1776 = vset.pattern.permute.xlu2 %v2139_v8  ;;  %v2359_v26 = vpop.permute.xlu1 %679 }
 0x114   :  { %v265_v60 = vpop.f32.mrf.mxu0  ;;  %3040 = vst [vmem:[#allocation26_spill] sm:$0xff] %v2359_v26 }
 0x115   :  { %1706 = vmatmul.msk.f32.vlgmr.msrb.gmra.mxu3 %vm322_vm15, %v265_v60  ;;  %v2357_v25 = vpop.permute.xlu2 %716 }
 0x116   :  { %3039 = vst [vmem:[#allocation25_spill] sm:$0xff] %v2357_v25 }
 0x119   :  { %1768 = vset.pattern.permute.xlu1 %v2155_v12 }
 0x11b   :  { %829 = vperm.xlu2 %1776, %v824_v63  }
 0x11c   :  { %v268_v1 = vpop.f32.mrf.mxu0  ;;  %v306_v2 = vpop.f32.mrf.mxu1 }
 0x11d   :  { %1702 = vmatmul.msk.f32.vlgmr.msra.gmra.mxu2 %vm322_vm15, %v306_v2  ;;  %1707 = vmatmul.msk.f32.gmra.mxu3 %vm322_vm15, %v268_v1 }
 0x121   :  { %785 = vperm.xlu1 %1768, %v774_v48  }
 0x123   :  { %854 = vperm.xlu2 %1776, %v2280_v56   ;;  %v2363_v28 = vpop.permute.xlu1 %685 }
 0x124   :  { %v309_v6 = vpop.f32.mrf.mxu1  ;;  %3042 = vst [vmem:[#allocation28_spill] sm:$0xff] %v2363_v28 }
 0x125   :  { %1703 = vmatmul.msk.f32.gmra.mxu2 %vm322_vm15, %v309_v6  ;;  %1708 = vmatmul.msk.f32.gmra.mxu3 %vm322_vm15, %v271_v5  ;;  %v2361_v27 = vpop.permute.xlu2 %760 }
 0x126   :  { %3041 = vst [vmem:[#allocation27_spill] sm:$0xff] %v2361_v27 }
 0x129   :  { %1770 = vset.pattern.permute.xlu1 %v2199_v24 }
 0x12a   :  { %v274_v11 = vpop.f32.mrf.mxu3 }
 0x12b   :  { %1779 = vset.pattern.permute.xlu2 %v2184_v21 }
 0x12c   :  { %v312_v13 = vpop.f32.mrf.mxu1 }
 0x12d   :  { %1704 = vmatmul.msk.f32.gmra.mxu2 %vm322_vm15, %v312_v13  ;;  %1709 = vmatmul.msk.f32.gmra.mxu3 %vm322_vm15, %v274_v11 }
 0x131   :  { %747 = vperm.xlu1 %1770, %v2229_v41  }
 0x133   :  { %841 = vperm.xlu2 %1779, %v824_v63   ;;  %v2370_v29 = vpop.permute.xlu1 %704 }
 0x134   :  { %v315_v17 = vpop.f32.mrf.mxu1  ;;  %3044 = vst [vmem:[#allocation30_spill] sm:$0xff] %v2370_v29 }
 0x135   :  { %1705 = vmatmul.msk.f32.gmra.mxu2 %vm322_vm15, %v315_v17 }
 0x139   :  { %772 = vperm.xlu1 %1770, %v2249_v47  }
 0x13b   :  { %1781 = vset.pattern.permute.xlu2 %v2155_v12 }
 0x141   :  { %1775 = vset.pattern.permute.xlu1 %v2155_v12  ;;  %v2367_v12 = vpop.permute.xlu2 %779 }
 0x142   :  { %3043 = vst [vmem:[#allocation29_spill] sm:$0xff] %v2367_v12 }
 0x143   :  { %885 = vperm.xlu2 %1781, %v874_v10   ;;  %v2375_v31 = vpop.permute.xlu1 %622 }
 0x149   :  { %810 = vperm.xlu1 %1775, %v2262_v51   ;;  %v2373_v30 = vpop.permute.xlu2 %722 }
 0x14b   :  { %1783 = vset.pattern.permute.xlu2 %v2199_v24 }
 0x151   :  { %835 = vperm.xlu1 %1775, %v824_v63  }
 0x153   :  { %847 = vperm.xlu2 %1783, %v824_v63   ;;  %v2381_v34 = vpop.permute.xlu1 %691 }
 0x154   :  { %3046 = vst [vmem:[#allocation32_spill] sm:$0xff] %v2381_v34 }
 0x155   :  { %v2379_v33 = vpop.permute.xlu2 %791 }
 0x159   :  { %1778 = vset.pattern.permute.xlu1 %v2184_v21 }
 0x15b   :  { %872 = vperm.xlu2 %1783, %v2280_v56  }
 0x161   :  { %816 = vperm.xlu1 %1778, %v2262_v51  }
 0x163   :  { %v2388_v37 = vpop.permute.xlu1 %672 }
 0x165   :  { %v2386_v36 = vpop.permute.xlu2 %797 }
 0x169   :  { %1780 = vset.pattern.permute.xlu1 %v2139_v8  ;;  %v805_v8 = vpop.permute.xlu0 %804 }
 0x171   :  { %879 = vperm.xlu1 %1780, %v874_v10   ;;  %v2394_v40 = vpop.permute.xlu0 %735 }
 0x172   :  { %3048 = vst [vmem:[#allocation34_spill] sm:$0xff] %v2394_v40 }
 0x173   :  { %v2392_v39 = vpop.permute.xlu1 %754 }
 0x174   :  { %3047 = vst [vmem:[#allocation33_spill] sm:$0xff] %v2392_v39 }
 0x175   :  { %v830_v38 = vpop.permute.xlu2 %829 }
 0x179   :  { %1782 = vset.pattern.permute.xlu1 %v2199_v24  ;;  %v2398_v43 = vpop.permute.xlu0 %860  ;;  %v439_v24 = vpop.f32.mrf.mxu0 }
 0x17d   :  { %v855_v41 = vpop.permute.xlu2 %854 }
 0x181   :  { %822 = vperm.xlu1 %1782, %v2262_v51   ;;  %v2404_v49 = vpop.permute.xlu0 %641  ;;  %v442_v52 = vpop.f32.mrf.mxu0 }
 0x183   :  { %v2396_v42 = vpop.permute.xlu1 %741 }
 0x184   :  { %3049 = vst [vmem:[#allocation35_spill] sm:$0xff] %v2396_v42 }
 0x189   :  { %1784 = vset.pattern.permute.xlu1 %v2184_v21  ;;  %v2421_v1 = vpop.permute.xlu0 %766 }
 0x18a   :  { %3051 = vst [vmem:[#allocation37_spill] sm:$0xff] %v2421_v1 }
 0x18d   :  { %v2400_v46 = vpop.permute.xlu2 %841 }
 0x191   :  { %891 = vperm.xlu1 %1784, %v874_v10  }
 0x193   :  { %v2402_v47 = vpop.permute.xlu1 %785 }
 0x194   :  { %3050 = vst [vmem:[#allocation36_spill] sm:$0xff] %v2402_v47 }
 0x198   :  { %v393_v44 = vpop.f32.mrf.mxu3 }
 0x19d   :  { %v886_v55 = vpop.permute.xlu2 %885 }
 0x1a0   :  { %v352_v48 = vpop.f32.mrf.mxu2  ;;  %v396_v53 = vpop.f32.mrf.mxu3 }
 0x1a1   :  { %v394_v21 = vadd.f32 %v393_v44, %v352_v48 }
 0x1a3   :  { %v451_v51 = vadd.f32 %v439_v24, %v394_v21  ;;  %v2414_v57 = vpop.permute.xlu1 %747 }
 0x1a5   :  { %v2412_v54 = vadd.f32 %v2409_v50, %v451_v51 }
 0x1a7   :  { %v939_v58 = vadd.f32 %v855_v41, %v2412_v54  ;;  %v1143_v59 = vsub.f32 %v855_v41, %v2412_v54  ;;  %v931_v61 = vadd.f32 %v805_v8, %v2412_v54  ;;  %v1135_v63 = vsub.f32 %v805_v8, %v2412_v54  ;;  %v445_v41 = vpop.f32.mrf.mxu0 }
 0x1a8   :  { %v355_v56 = vpop.f32.mrf.mxu2  ;;  %v935_v0 = vadd.f32 %v830_v38, %v2412_v54  ;;  %v1139_v2 = vsub.f32 %v830_v38, %v2412_v54  ;;  %v2426_v6 = vmul.f32 %v2412_v54, %v2412_v54  ;;  %v899_v10 = vadd.f32 %v2320_v4, %v2412_v54  ;;  %v399_v21 = vpop.f32.mrf.mxu3 }
 0x1a9   :  { %v397_v60 = vadd.f32 %v396_v53, %v355_v56  ;;  %v2431_v11 = vsel %vm322_vm15, %v939_v58, -inf  ;;  %v2434_v13 = vsel %vm322_vm15, %v1143_v59, -inf  ;;  %v903_v17 = vadd.f32 %v2336_v15, %v2412_v54 }
 0x1aa   :  { %v907_v8 = vadd.f32 %v2348_v20, %v2412_v54  ;;  %v2444_v24 = vsel %vm322_vm15, %v931_v61, -inf  ;;  %v2447_v44 = vsel %vm322_vm15, %v1135_v63, -inf  ;;  %v2450_v48 = vsel %vm322_vm15, %v935_v0, -inf }
 0x1ab   :  { %v452_v5 = vadd.f32 %v442_v52, %v397_v60  ;;  %3052 = vst [vmem:[#allocation38_spill] sm:$0xff] %v2444_v24  ;;  %v2453_v51 = vsel %vm322_vm15, %v1139_v2, -inf  ;;  %v911_v52 = vadd.f32 %v2359_v26, %v2412_v54  ;;  %v915_v53 = vadd.f32 %v2370_v29, %v2412_v54 }
 0x1ac   :  { %3053 = vst [vmem:[#allocation39_spill] sm:$0xff] %v2447_v44  ;;  %v919_v56 = vadd.f32 %v2351_v22, %v2412_v54  ;;  %v923_v60 = vadd.f32 %v2392_v39, %v2412_v54  ;;  %v2469_v61 = vadd.f32 %v2367_v12, %v2412_v54  ;;  %v2473_v2 = vsel %vm322_vm15, %v899_v10, -inf  ;;  %v2488_v10 = vpop.permute.xlu1 %772 }
 0x1ad   :  { %v2441_v38 = vadd.f32 %v2409_v50, %v452_v5  ;;  %v2476_v5 = vsel %vm322_vm15, %v903_v17, -inf  ;;  %v2479_v32 = vsel %vm322_vm15, %v907_v8, -inf  ;;  %v2490_v26 = vpop.permute.xlu2 %847  ;;  %v2493_v17 = vsel %vm322_vm15, %v911_v52, -inf  ;;  %v867_v52 = vpop.permute.xlu0 %866 }
 0x1ae   :  { %v2496_v8 = vsel %vm322_vm15, %v915_v53, -inf }
 0x1af   :  { %v940_v58 = vadd.f32 %v2398_v43, %v2441_v38  ;;  %v1144_v59 = vsub.f32 %v2398_v43, %v2441_v38  ;;  %v944_v63 = vadd.f32 %v886_v55, %v2441_v38  ;;  %v900_v39 = vadd.f32 %v2329_v9, %v2441_v38 }
 0x1b0   :  { %v358_v0 = vpop.f32.mrf.mxu2  ;;  %v904_v12 = vadd.f32 %v2342_v18, %v2441_v38  ;;  %v908_v22 = vadd.f32 %v2318_v3, %v2441_v38  ;;  %v1148_v29 = vsub.f32 %v886_v55, %v2441_v38  ;;  %v2504_v3 = vmul.f32 %v2441_v38, %v2441_v38 }
 0x1b1   :  { %v400_v43 = vadd.f32 %v399_v21, %v358_v0  ;;  %v2499_v21 = vsel %vm322_vm15, %v919_v56, -inf  ;;  %v1078_v62 = vsel %vm322_vm15, %v940_v58, -inf  ;;  %v2507_v55 = vsel %vm322_vm15, %v923_v60, -inf }
 0x1b2   :  { %v2510_v20 = vsel %vm322_vm15, %v944_v63, -inf  ;;  %v1282_v53 = vsel %vm322_vm15, %v1144_v59, -inf  ;;  %v912_v56 = vadd.f32 %v2363_v28, %v2441_v38  ;;  %v961_v60 = vsel %vm322_vm15, %v904_v12, -inf  ;;  %v448_v28 = vpop.f32.mrf.mxu0 }
 0x1b3   :  { %v453_v0 = vadd.f32 %v445_v41, %v400_v43  ;;  %3054 = vst [vmem:[#allocation40_spill] sm:$0xff] %v2510_v20  ;;  %v916_v41 = vadd.f32 %v2338_v16, %v2441_v38  ;;  %v948_v43 = vsel %vm322_vm15, %v900_v39, -inf  ;;  %v2523_v18 = vsel %vm322_vm15, %v908_v22, -inf }
 0x1b4   :  { %v2526_v63 = vsel %vm322_vm15, %v1148_v29, -inf  ;;  %v1079_v59 = vmax.f32 %v2431_v11, %v1078_v62  ;;  %v920_v20 = vadd.f32 %v2394_v40, %v2441_v38  ;;  %v924_v16 = vadd.f32 %v2361_v27, %v2441_v38  ;;  %v402_v29 = vpop.f32.mrf.mxu3 }
 0x1b5   :  { %v2518_v58 = vadd.f32 %v2409_v50, %v453_v0  ;;  %3055 = vst [vmem:[#allocation41_spill] sm:$0xff] %v2526_v63  ;;  %v1283_v12 = vmax.f32 %v2434_v13, %v1282_v53  ;;  %v2538_v22 = vadd.f32 %v2402_v47, %v2441_v38  ;;  %v949_v62 = vmax.f32 %v2473_v2, %v948_v43 }
 0x1b6   :  { %v962_v11 = vmax.f32 %v2476_v5, %v961_v60  ;;  %v975_v27 = vmax.f32 %v2479_v32, %v2523_v18  ;;  %v2545_v40 = vsel %vm322_vm15, %v912_v56, -inf  ;;  %v2550_v47 = vsel %vm322_vm15, %v916_v41, -inf }
 0x1b7   :  { %v941_v0 = vadd.f32 %v867_v52, %v2518_v58  ;;  %v1145_v39 = vsub.f32 %v867_v52, %v2518_v58  ;;  %v901_v15 = vadd.f32 %v2353_v23, %v2518_v58  ;;  %v905_v2 = vadd.f32 %v2404_v49, %v2518_v58 }
 0x1b8   :  { %v361_v63 = vpop.f32.mrf.mxu2  ;;  %v2557_v5 = vsel %vm322_vm15, %v920_v20, -inf  ;;  %v2560_v18 = vsel %vm322_vm15, %v924_v16, -inf  ;;  %v534_v56 = vmul.f32 %v2518_v58, %v2518_v58  ;;  %v937_v41 = vadd.f32 %v2400_v46, %v2518_v58 }
 0x1b9   :  { %v1080_v52 = vsel %vm322_vm15, %v941_v0, -inf  ;;  %v1284_v13 = vsel %vm322_vm15, %v1145_v39, -inf  ;;  %v403_v53 = vadd.f32 %v402_v29, %v361_v63  ;;  %v1141_v43 = vsub.f32 %v2400_v46, %v2518_v58  ;;  %v873_v39 = vpop.permute.xlu2 %872 }
 0x1ba   :  { %v1081_v60 = vmax.f32 %v1079_v59, %v1080_v52  ;;  %v1285_v63 = vmax.f32 %v1283_v12, %v1284_v13  ;;  %v909_v20 = vadd.f32 %v2327_v7, %v2518_v58  ;;  %v913_v16 = vadd.f32 %v2381_v34, %v2518_v58 }
 0x1bb   :  { %v454_v32 = vadd.f32 %v448_v28, %v403_v53  ;;  %v811_v0 = vpop.permute.xlu1 %810  ;;  %v2579_v46 = vadd.f32 %v2357_v25, %v2518_v58  ;;  %v2583_v59 = vadd.f32 %v2396_v42, %v2518_v58  ;;  %v2587_v12 = vadd.f32 %v2421_v1, %v2518_v58  ;;  %v898_v42 = vpop.permute.xlu0 %897 }
 0x1bc   :  { %v932_v29 = vadd.f32 %v811_v0, %v2441_v38  ;;  %v1136_v53 = vsub.f32 %v811_v0, %v2441_v38  ;;  %v950_v52 = vsel %vm322_vm15, %v901_v15, -inf }
 0x1bd   :  { %v2573_v28 = vadd.f32 %v2409_v50, %v454_v32  ;;  %v963_v50 = vsel %vm322_vm15, %v905_v2, -inf  ;;  %v2606_v2 = vadd.f32 %v2379_v33, %v2518_v58  ;;  %v951_v7 = vmax.f32 %v949_v62, %v950_v52 }
 0x1be   :  { %v2592_v13 = vsel %vm322_vm15, %v932_v29, -inf  ;;  %v2595_v32 = vsel %vm322_vm15, %v1136_v53, -inf  ;;  %v976_v29 = vsel %vm322_vm15, %v909_v20, -inf  ;;  %v964_v44 = vmax.f32 %v962_v11, %v963_v50 }
 0x1bf   :  { %3056 = vst [vmem:[#allocation42_spill] sm:$0xff] %v2592_v13  ;;  %v942_v0 = vadd.f32 %v873_v39, %v2573_v28  ;;  %v1146_v25 = vsub.f32 %v873_v39, %v2573_v28  ;;  %521 = vmatpush.msrb.mxu1 %v2573_v28  ;;  %v535_v39 = vmul.f32 %v2573_v28, %v2573_v28  ;;  %v1067_v20 = vsel %vm322_vm15, %v937_v41, -inf }
 0x1c0   :  { %3057 = vst [vmem:[#allocation43_spill] sm:$0xff] %v2595_v32  ;;  %v946_v1 = vadd.f32 %v898_v42, %v2573_v28  ;;  %v1150_v15 = vsub.f32 %v898_v42, %v2573_v28  ;;  %v938_v32 = vadd.f32 %v2490_v26, %v2573_v28  ;;  %v988_v62 = vmax.f32 %v2493_v17, %v2545_v40 }
 0x1c1   :  { %v1082_v53 = vsel %vm322_vm15, %v942_v0, -inf  ;;  %v1286_v34 = vsel %vm322_vm15, %v1146_v25, -inf  ;;  %522 = vmatpush.msrb.mxu1 %v2518_v58  ;;  %548 = vmatpush.msrb.mxu2 %v535_v39  ;;  %v902_v25 = vadd.f32 %v2375_v31, %v2573_v28  ;;  %v977_v0 = vmax.f32 %v975_v27, %v976_v29 }
 0x1c2   :  { %v1083_v52 = vmax.f32 %v1081_v60, %v1082_v53  ;;  %v1287_v13 = vmax.f32 %v1285_v63, %v1286_v34  ;;  %v1142_v42 = vsub.f32 %v2490_v26, %v2573_v28  ;;  %v906_v11 = vadd.f32 %v2344_v19, %v2573_v28 }
 0x1c3   :  { %523 = vmatpush.msrb.mxu1 %v2441_v38  ;;  %v836_v24 = vpop.permute.xlu1 %835  ;;  %549 = vmatpush.msrb.mxu2 %v534_v56  ;;  %v1271_v39 = vsel %vm322_vm15, %v1141_v43, -inf  ;;  %v910_v27 = vadd.f32 %v2388_v37, %v2573_v28  ;;  %v2635_v34 = vsel %vm322_vm15, %v946_v1, -inf  ;;  %v2638_v26 = vsel %vm322_vm15, %v1150_v15, -inf }
 0x1c4   :  { %v936_v50 = vadd.f32 %v836_v24, %v2441_v38  ;;  %v1140_v41 = vsub.f32 %v836_v24, %v2441_v38  ;;  %v1069_v40 = vsel %vm322_vm15, %v938_v32, -inf  ;;  %v989_v24 = vsel %vm322_vm15, %v913_v16, -inf }
 0x1c5   :  { %524 = vmatpush.msrb.mxu1 %v2412_v54  ;;  %550 = vmatpush.msrb.mxu2 %v2504_v3  ;;  %v914_v1 = vadd.f32 %v2383_v35, %v2573_v28  ;;  %v952_v43 = vsel %vm322_vm15, %v902_v25, -inf  ;;  %v1084_v60 = vrot.slane %v1083_v52, 4  ;;  %v1288_v63 = vrot.slane %v1287_v13, 4 }
 0x1c6   :  { %1715 = vmatmul.msk.f32.vlgmr.msrb.gmra.mxu1 %vm463_vm1, %v2158_v14  ;;  %v1065_v17 = vsel %vm322_vm15, %v936_v50, -inf  ;;  %v1269_v56 = vsel %vm322_vm15, %v1140_v41, -inf  ;;  %v1273_v29 = vsel %vm322_vm15, %v1142_v42, -inf  ;;  %v953_v16 = vmax.f32 %v951_v7, %v952_v43 }
 0x1c7   :  { %v1066_v32 = vmax.f32 %v2450_v48, %v1065_v17  ;;  %v1270_v15 = vmax.f32 %v2453_v51, %v1269_v56  ;;  %551 = vmatpush.msrb.mxu2 %v2426_v6  ;;  %v965_v53 = vsel %vm322_vm15, %v906_v11, -inf  ;;  %v978_v3 = vsel %vm322_vm15, %v910_v27, -inf }
 0x1c8   :  { %1717 = vmatmul.msk.f32.vlgmr.msrb.gmra.mxu2 %vm463_vm1, %v2158_v14  ;;  %v918_v25 = vadd.f32 %v2373_v30, %v2573_v28  ;;  %v990_v48 = vmax.f32 %v988_v62, %v989_v24  ;;  %v954_v17 = vrot.slane %v953_v16, 4  ;;  %v966_v51 = vmax.f32 %v964_v44, %v965_v53 }
 0x1c9   :  { %v1068_v50 = vmax.f32 %v1066_v32, %v1067_v20  ;;  %v1272_v41 = vmax.f32 %v1270_v15, %v1271_v39  ;;  %v979_v56 = vmax.f32 %v977_v0, %v978_v3  ;;  %v991_v42 = vsel %vm322_vm15, %v914_v1, -inf }
 0x1ca   :  { %v2661_v6 = vmax.f32 %v1083_v52, %v1084_v60  ;;  %v1289_v7 = vmax.f32 %v1287_v13, %v1288_v63  ;;  %v922_v20 = vadd.f32 %v2414_v57, %v2573_v28  ;;  %v955_v39 = vmax.f32 %v953_v16, %v954_v17 }
 0x1cb   :  { %v1070_v11 = vmax.f32 %v1068_v50, %v1069_v40  ;;  %v967_v27 = vrot.slane %v966_v51, 4  ;;  %v980_v43 = vrot.slane %v979_v56, 4  ;;  %v992_v14 = vmax.f32 %v990_v48, %v991_v42 }
 0x1cc   :  { %v1274_v15 = vmax.f32 %v1272_v41, %v1273_v29  ;;  %v1001_v44 = vmax.f32 %v2496_v8, %v2550_v47  ;;  %v1002_v0 = vsel %vm322_vm15, %v2579_v46, -inf  ;;  %v956_v13 = vrot.slane %v955_v39, 2 }
 0x1cd   :  { %v1071_v32 = vrot.slane %v1070_v11, 4  ;;  %v968_v62 = vmax.f32 %v966_v51, %v967_v27  ;;  %v981_v52 = vmax.f32 %v979_v56, %v980_v43  ;;  %v993_v40 = vrot.slane %v992_v14, 4 }
 0x1ce   :  { %1716 = vmatmul.msk.f32.gmra.mxu1 %vm463_vm1, %v2242_v45  ;;  %v1290_v24 = vrot.slane %v1289_v7, 2  ;;  %v926_v1 = vadd.f32 %v2488_v10, %v2573_v28  ;;  %v1003_v60 = vmax.f32 %v1001_v44, %v1002_v0  ;;  %v1004_v63 = vsel %vm322_vm15, %v918_v25, -inf }
 0x1cf   :  { %v957_v29 = vmax.f32 %v955_v39, %v956_v13  ;;  %v969_v16 = vrot.slane %v968_v62, 2  ;;  %v982_v53 = vrot.slane %v981_v52, 2  ;;  %v994_v3 = vmax.f32 %v992_v14, %v993_v40 }
 0x1d0   :  { %v2674_v50 = vmax.f32 %v1070_v11, %v1071_v32  ;;  %v1275_v47 = vrot.slane %v1274_v15, 4  ;;  %1718 = vmatmul.msk.f32.gmra.mxu2 %vm463_vm1, %v2242_v45  ;;  %v930_v8 = vadd.f32 %v2386_v36, %v2573_v28  ;;  %v1005_v46 = vmax.f32 %v1003_v60, %v1004_v63 }
 0x1d1   :  { %v958_v41 = vrot.slane %v957_v29, 1  ;;  %v970_v48 = vmax.f32 %v968_v62, %v969_v16  ;;  %v983_v17 = vmax.f32 %v981_v52, %v982_v53  ;;  %v995_v51 = vrot.slane %v994_v3, 2 }
 0x1d2   :  { %v2681_v56 = vmax.f32 %v1289_v7, %v1290_v24  ;;  %v1006_v39 = vrot.slane %v1005_v46, 4  ;;  %v1015_v11 = vsel %vm322_vm15, %v2583_v59, -inf  ;;  %v1014_v14 = vmax.f32 %v2499_v21, %v2557_v5 }
 0x1d3   :  { %v817_v42 = vpop.permute.xlu1 %816  ;;  %v971_v43 = vrot.slane %v970_v48, 1  ;;  %v2689_v32 = vmax.f32 %v1274_v15, %v1275_v47  ;;  %v984_v44 = vrot.slane %v983_v17, 1  ;;  %v996_v0 = vmax.f32 %v994_v3, %v995_v51 }
 0x1d4   :  { %v933_v27 = vadd.f32 %v817_v42, %v2518_v58  ;;  %v1137_v45 = vsub.f32 %v817_v42, %v2518_v58  ;;  %v1007_v13 = vmax.f32 %v1005_v46, %v1006_v39  ;;  %v959_v62 = vmax.f32 %v957_v29, %v958_v41 }
 0x1d5   :  { %v1016_v52 = vmax.f32 %v1014_v14, %v1015_v11  ;;  %v1017_v40 = vsel %vm322_vm15, %v922_v20, -inf  ;;  %v972_v60 = vmax.f32 %v970_v48, %v971_v43  ;;  %v985_v63 = vmax.f32 %v983_v17, %v984_v44 }
 0x1d6   :  { %v2694_v59 = vsel %vm322_vm15, %v933_v27, -inf  ;;  %v2697_v24 = vsel %vm322_vm15, %v1137_v45, -inf  ;;  %v1008_v21 = vrot.slane %v1007_v13, 2  ;;  %v1027_v15 = vmax.f32 %v2507_v55, %v2560_v18 }
 0x1d7   :  { %v1018_v5 = vmax.f32 %v1016_v52, %v1017_v40  ;;  %v1028_v16 = vsel %vm322_vm15, %v2587_v12, -inf  ;;  %v997_v29 = vrot.slane %v996_v0, 1  ;;  %v1030_v53 = vsel %vm322_vm15, %v926_v1, -inf }
 0x1d8   :  { %v1038_v20 = vsel %vm322_vm15, %v2469_v61, -inf  ;;  %v1039_v3 = vsel %vm322_vm15, %v2538_v22, -inf  ;;  %v1009_v47 = vmax.f32 %v1007_v13, %v1008_v21  ;;  %v1029_v41 = vmax.f32 %v1027_v15, %v1028_v16 }
 0x1d9   :  { %v1019_v46 = vrot.slane %v1018_v5, 4  ;;  %v1040_v48 = vmax.f32 %v1038_v20, %v1039_v3  ;;  %v1041_v17 = vsel %vm322_vm15, %v2606_v2, -inf  ;;  %v1043_v55 = vsel %vm322_vm15, %v930_v8, -inf }
 0x1da   :  { %v1010_v18 = vrot.slane %v1009_v47, 1  ;;  %v1031_v1 = vmax.f32 %v1029_v41, %v1030_v53  ;;  %v998_v42 = vmax.f32 %v996_v0, %v997_v29  ;;  %v1338_v61 = vsel %vm1337_vm0, %v972_v60, %v959_v62  ;;  %v3061_v53 = vld [vmem:[#allocation17_spill] sm:$0xff]  ;;  %v3063_v41 = vld [vmem:[#allocation19_spill] sm:$0xff] }
 0x1db   :  { %v1020_v12 = vmax.f32 %v1018_v5, %v1019_v46  ;;  %v1042_v51 = vmax.f32 %v1040_v48, %v1041_v17  ;;  %v1340_v2 = vsel %vm1339_vm3, %v985_v63, %v1338_v61  ;;  %v1103_v8 = vsub.f32 %v2320_v4, %v2412_v54  ;;  %v3058_v63 = vld [vmem:[#allocation20_spill] sm:$0xff]  ;;  %v3059_v5 = vld [vmem:[#allocation22_spill] sm:$0xff] }
 0x1dc   :  { %v1032_v39 = vrot.slane %v1031_v1, 4  ;;  %v1011_v27 = vmax.f32 %v1009_v47, %v1010_v18  ;;  %v1342_v44 = vsel %vm1341_vm4, %v998_v42, %v1340_v2  ;;  %v1104_v13 = vsub.f32 %v2329_v9, %v2441_v38  ;;  %v3062_v47 = vld [vmem:[#allocation18_spill] sm:$0xff]  ;;  %v3066_v42 = vld [vmem:[#allocation32_spill] sm:$0xff]  ;;  %v3069_v2 = vld [vmem:[#allocation25_spill] sm:$0xff] }
 0x1dd   :  { %v1021_v22 = vrot.slane %v1020_v12, 2  ;;  %v1044_v11 = vmax.f32 %v1042_v51, %v1043_v55  ;;  %v1105_v62 = vsub.f32 %v2353_v23, %v2518_v58  ;;  %v1106_v52 = vsub.f32 %v2375_v31, %v2573_v28  ;;  %v3060_v23 = vld [vmem:[#allocation23_spill] sm:$0xff]  ;;  %v3064_v17 = vld [vmem:[#allocation26_spill] sm:$0xff]  ;;  %v3065_v55 = vld [vmem:[#allocation28_spill] sm:$0xff] }
 0x1de   :  { %v1033_v43 = vmax.f32 %v1031_v1, %v1032_v39  ;;  %v1344_v0 = vsel %vm1343_vm5, %v1011_v27, %v1342_v44  ;;  %v1107_v21 = vsub.f32 %v3058_v63, %v2412_v54  ;;  %v1108_v15 = vsub.f32 %v3059_v5, %v2441_v38  ;;  %v3067_v39 = vld [vmem:[#allocation30_spill] sm:$0xff] }
 0x1df   :  { %v1022_v45 = vmax.f32 %v1020_v12, %v1021_v22  ;;  %v1045_v14 = vrot.slane %v1044_v11, 4  ;;  %v1109_v16 = vsub.f32 %v2404_v49, %v2518_v58  ;;  %v1110_v9 = vsub.f32 %v2344_v19, %v2573_v28 }
 0x1e0   :  { %v1034_v60 = vrot.slane %v1033_v43, 2  ;;  %v1111_v29 = vsub.f32 %v3060_v23, %v2412_v54  ;;  %vm1319_vm9 = vcmp.gt.f32.partialorder %v3061_v53, 0.0  ;;  %v1112_v46 = vsub.f32 %v3062_v47, %v2441_v38  ;;  %v3073_v23 = vld [vmem:[#allocation33_spill] sm:$0xff] }
 0x1e1   :  { %v1023_v40 = vrot.slane %v1022_v45, 1  ;;  %v1046_v4 = vmax.f32 %v1044_v11, %v1045_v14  ;;  %v1113_v48 = vsub.f32 %v3063_v41, %v2518_v58  ;;  %v1114_v49 = vsub.f32 %v2388_v37, %v2573_v28  ;;  %v3068_v37 = vld [vmem:[#allocation21_spill] sm:$0xff] }
 0x1e2   :  { %v1035_v20 = vmax.f32 %v1033_v43, %v1034_v60  ;;  %v1115_v19 = vsub.f32 %v3064_v17, %v2412_v54  ;;  %v1116_v18 = vsub.f32 %v3065_v55, %v2441_v38  ;;  %v1117_v61 = vsub.f32 %v3066_v42, %v2518_v58  ;;  %v3071_v60 = vld [vmem:[#allocation34_spill] sm:$0xff]  ;;  %v3075_v41 = vld [vmem:[#allocation37_spill] sm:$0xff] }
 0x1e3   :  { %v1024_v31 = vmax.f32 %v1022_v45, %v1023_v40  ;;  %v1047_v3 = vrot.slane %v1046_v4, 2  ;;  %v1118_v22 = vsub.f32 %v2383_v35, %v2573_v28  ;;  %v1119_v11 = vsub.f32 %v3067_v39, %v2412_v54 }
 0x1e4   :  { %v1036_v12 = vrot.slane %v1035_v20, 1  ;;  %v1120_v27 = vsub.f32 %v3068_v37, %v2441_v38  ;;  %v1121_v45 = vsub.f32 %v3069_v2, %v2518_v58  ;;  %v1122_v44 = vsub.f32 %v2373_v30, %v2573_v28  ;;  %v3074_v30 = vld [vmem:[#allocation27_spill] sm:$0xff] }
 0x1e5   :  { %v1048_v1 = vmax.f32 %v1046_v4, %v1047_v3  ;;  %v1346_v51 = vsel %vm1345_vm6, %v1024_v31, %v1344_v0  ;;  %v3070_v0 = vld [vmem:[#allocation24_spill] sm:$0xff]  ;;  %v1124_v35 = vsub.f32 %v3071_v60, %v2441_v38  ;;  %v3072_v4 = vld [vmem:[#allocation35_spill] sm:$0xff]  ;;  %v1126_v5 = vsub.f32 %v2414_v57, %v2573_v28 }
 0x1e6   :  { %v1037_v43 = vmax.f32 %v1035_v20, %v1036_v12  ;;  %v1123_v40 = vsub.f32 %v3070_v0, %v2412_v54  ;;  %v1125_v63 = vsub.f32 %v3072_v4, %v2518_v58  ;;  %v1127_v31 = vsub.f32 %v3073_v23, %v2412_v54  ;;  %v3076_v12 = vld [vmem:[#allocation29_spill] sm:$0xff]  ;;  %v3077_v57 = vld [vmem:[#allocation36_spill] sm:$0xff] }
 0x1e7   :  { %v1049_v14 = vrot.slane %v1048_v1, 1  ;;  %v1128_v47 = vsub.f32 %v3074_v30, %v2441_v38  ;;  %v1129_v17 = vsub.f32 %v3075_v41, %v2518_v58  ;;  %v1130_v55 = vsub.f32 %v2488_v10, %v2573_v28 }
 0x1e8   :  { %v1348_v3 = vsel %vm1347_vm7, %v1037_v43, %v1346_v51  ;;  %v1131_v42 = vsub.f32 %v3076_v12, %v2412_v54  ;;  %v1132_v39 = vsub.f32 %v3077_v57, %v2441_v38  ;;  %v1151_v2 = vsel %vm322_vm15, %v1103_v8, -inf }
 0x1e9   :  { %v1050_v20 = vmax.f32 %v1048_v1, %v1049_v14  ;;  %v1133_v1 = vsub.f32 %v2379_v33, %v2518_v58  ;;  %v1152_v43 = vsel %vm322_vm15, %v1104_v13, -inf  ;;  %v1154_v60 = vsel %vm322_vm15, %v1105_v62, -inf }
 0x1ea   :  { %v1153_v0 = vmax.f32 %v1151_v2, %v1152_v43  ;;  %v1156_v4 = vsel %vm322_vm15, %v1106_v52, -inf  ;;  %v1167_v25 = vsel %vm322_vm15, %v1109_v16, -inf  ;;  %v1169_v8 = vsel %vm322_vm15, %v1110_v9, -inf }
 0x1eb   :  { %v1350_v51 = vsel %vm1349_vm8, %v1050_v20, %v1348_v3  ;;  %v1164_v20 = vsel %vm322_vm15, %v1107_v21, -inf  ;;  %v1165_v3 = vsel %vm322_vm15, %v1108_v15, -inf  ;;  %v1178_v2 = vsel %vm322_vm15, %v1112_v46, -inf }
 0x1ec   :  { %v1356_v14 = vsel %vm1319_vm9, %v1350_v51, 0.0  ;;  %v1155_v13 = vmax.f32 %v1153_v0, %v1154_v60  ;;  %v1166_v7 = vmax.f32 %v1164_v20, %v1165_v3  ;;  %v1177_v51 = vsel %vm322_vm15, %v1111_v29, -inf }
 0x1ed   :  { %1432 = vrot.lane.b32.xlu2 %v1356_v14, %s1999_s8  ;;  %v1179_v62 = vmax.f32 %v1177_v51, %v1178_v2  ;;  %v1180_v52 = vsel %vm322_vm15, %v1113_v48, -inf  ;;  %v1182_v43 = vsel %vm322_vm15, %v1114_v49, -inf  ;;  %v1190_v14 = vsel %vm322_vm15, %v1115_v19, -inf }
 0x1ee   :  { %v1157_v21 = vmax.f32 %v1155_v13, %v1156_v4  ;;  %v1168_v37 = vmax.f32 %v1166_v7, %v1167_v25  ;;  %v1191_v15 = vsel %vm322_vm15, %v1116_v18, -inf  ;;  %v1193_v16 = vsel %vm322_vm15, %v1117_v61, -inf }
 0x1ef   :  { %v1181_v9 = vmax.f32 %v1179_v62, %v1180_v52  ;;  %v1192_v0 = vmax.f32 %v1190_v14, %v1191_v15  ;;  %v1195_v60 = vsel %vm322_vm15, %v1118_v22, -inf  ;;  %v1203_v29 = vsel %vm322_vm15, %v1119_v11, -inf  ;;  %v2810_v62 = vpop.permute.xlu1 %879 }
 0x1f0   :  { %v1158_v46 = vrot.slane %v1157_v21, 4  ;;  %v1170_v20 = vmax.f32 %v1168_v37, %v1169_v8  ;;  %v1204_v48 = vsel %vm322_vm15, %v1120_v27, -inf  ;;  %v1206_v49 = vsel %vm322_vm15, %v1121_v45, -inf }
 0x1f1   :  { %v1183_v3 = vmax.f32 %v1181_v9, %v1182_v43  ;;  %v1194_v19 = vmax.f32 %v1192_v0, %v1193_v16  ;;  %v1205_v4 = vmax.f32 %v1203_v29, %v1204_v48  ;;  %v1208_v25 = vsel %vm322_vm15, %v1122_v44, -inf }
 0x1f2   :  { %v1159_v7 = vmax.f32 %v1157_v21, %v1158_v46  ;;  %v1171_v18 = vrot.slane %v1170_v20, 4  ;;  %v1216_v61 = vsel %vm322_vm15, %v1123_v40, -inf  ;;  %v1217_v13 = vsel %vm322_vm15, %v1124_v35, -inf }
 0x1f3   :  { %v1184_v22 = vrot.slane %v1183_v3, 4  ;;  %v1196_v51 = vmax.f32 %v1194_v19, %v1195_v60  ;;  %v1207_v11 = vmax.f32 %v1205_v4, %v1206_v49  ;;  %v1218_v2 = vmax.f32 %v1216_v61, %v1217_v13 }
 0x1f4   :  { %v1160_v37 = vrot.slane %v1159_v7, 2  ;;  %v1172_v8 = vmax.f32 %v1170_v20, %v1171_v18  ;;  %v1219_v27 = vsel %vm322_vm15, %v1125_v63, -inf  ;;  %v1221_v45 = vsel %vm322_vm15, %v1126_v5, -inf }
 0x1f5   :  { %v1185_v52 = vmax.f32 %v1183_v3, %v1184_v22  ;;  %v1197_v44 = vrot.slane %v1196_v51, 4  ;;  %v1209_v43 = vmax.f32 %v1207_v11, %v1208_v25  ;;  %v1220_v14 = vmax.f32 %v1218_v2, %v1219_v27 }
 0x1f6   :  { %v1161_v21 = vmax.f32 %v1159_v7, %v1160_v37  ;;  %v1173_v40 = vrot.slane %v1172_v8, 2  ;;  %v1229_v35 = vsel %vm322_vm15, %v1127_v31, -inf  ;;  %v1230_v63 = vsel %vm322_vm15, %v1128_v47, -inf }
 0x1f7   :  { %v1186_v15 = vrot.slane %v1185_v52, 2  ;;  %v1198_v5 = vmax.f32 %v1196_v51, %v1197_v44  ;;  %v1210_v16 = vrot.slane %v1209_v43, 4  ;;  %v1222_v9 = vmax.f32 %v1220_v14, %v1221_v45  ;;  %v823_v13 = vpop.permute.xlu1 %822 }
 0x1f8   :  { %v1162_v0 = vrot.slane %v1161_v21, 1  ;;  %v1174_v60 = vmax.f32 %v1172_v8, %v1173_v40  ;;  %v1231_v29 = vmax.f32 %v1229_v35, %v1230_v63  ;;  %v1232_v46 = vsel %vm322_vm15, %v1129_v17, -inf }
 0x1f9   :  { %v1187_v23 = vmax.f32 %v1185_v52, %v1186_v15  ;;  %v1199_v20 = vrot.slane %v1198_v5, 2  ;;  %v1211_v31 = vmax.f32 %v1209_v43, %v1210_v16  ;;  %v1223_v48 = vrot.slane %v1222_v9, 4  ;;  %v3079_v15 = vld [vmem:[#allocation38_spill] sm:$0xff] }
 0x1fa   :  { %v1163_v49 = vmax.f32 %v1161_v21, %v1162_v0  ;;  %v1175_v30 = vrot.slane %v1174_v60, 1  ;;  %v1233_v3 = vmax.f32 %v1231_v29, %v1232_v46  ;;  %v1234_v47 = vsel %vm322_vm15, %v1130_v55, -inf  ;;  %v3082_v29 = vld [vmem:[#allocation39_spill] sm:$0xff] }
 0x1fb   :  { %v1188_v19 = vrot.slane %v1187_v23, 1  ;;  %v1200_v4 = vmax.f32 %v1198_v5, %v1199_v20  ;;  %v1212_v25 = vrot.slane %v1211_v31, 2  ;;  %v1224_v7 = vmax.f32 %v1222_v9, %v1223_v48  ;;  %v3080_v5 = vld [vmem:[#allocation42_spill] sm:$0xff]  ;;  %v3083_v46 = vld [vmem:[#allocation43_spill] sm:$0xff] }
 0x1fc   :  { %v1176_v18 = vmax.f32 %v1174_v60, %v1175_v30  ;;  %v1235_v41 = vmax.f32 %v1233_v3, %v1234_v47  ;;  %v1242_v17 = vsel %vm322_vm15, %v1131_v42, -inf  ;;  %v1243_v61 = vsel %vm322_vm15, %v1132_v39, -inf }
 0x1fd   :  { %v1189_v10 = vmax.f32 %v1187_v23, %v1188_v19  ;;  %v1201_v22 = vrot.slane %v1200_v4, 1  ;;  %v1213_v55 = vmax.f32 %v1211_v31, %v1212_v25  ;;  %v1225_v51 = vrot.slane %v1224_v7, 2 }
 0x1fe   :  { %v1236_v11 = vrot.slane %v1235_v41, 4  ;;  %v1244_v2 = vmax.f32 %v1242_v17, %v1243_v61  ;;  %v1245_v37 = vsel %vm322_vm15, %v1133_v1, -inf  ;;  %v3078_v12 = vsub.f32 %v2386_v36, %v2573_v28 }
 0x1ff   :  { %v1202_v38 = vmax.f32 %v1200_v4, %v1201_v22  ;;  %v1214_v57 = vrot.slane %v1213_v55, 1  ;;  %v1226_v39 = vmax.f32 %v1224_v7, %v1225_v51  ;;  %v1307_v8 = vsub.f32 0.0, %v1163_v49  ;;  %v3085_v4 = vld [vmem:[#allocation40_spill] sm:$0xff] }
 0x200   :  { %v1247_v42 = vsel %vm322_vm15, %v3078_v12, -inf  ;;  %v1237_v27 = vmax.f32 %v1235_v41, %v1236_v11  ;;  %v1246_v45 = vmax.f32 %v1244_v2, %v1245_v37  ;;  %v1308_v52 = vsub.f32 0.0, %v1176_v18 }
 0x201   :  { %v1309_v44 = vsub.f32 0.0, %v1189_v10  ;;  %v1215_v43 = vmax.f32 %v1213_v55, %v1214_v57  ;;  %v1227_v14 = vrot.slane %v1226_v39, 1  ;;  %v1310_v21 = vsub.f32 0.0, %v1202_v38  ;;  %v3086_v10 = vld [vmem:[#allocation41_spill] sm:$0xff] }
 0x202   :  { %v943_v33 = vadd.f32 %v2810_v62, %v2412_v54  ;;  %v1238_v1 = vrot.slane %v1237_v27, 2  ;;  %v1248_v40 = vmax.f32 %v1246_v45, %v1247_v42  ;;  %v1370_v36 = vsel %vm1337_vm0, %v1308_v52, %v1307_v8 }
 0x203   :  { %v1147_v35 = vsub.f32 %v2810_v62, %v2412_v54  ;;  %v1277_v63 = vrot.slane %v2689_v32, 2  ;;  %v3081_v16 = vmax.f32 %v3079_v15, %v3080_v5  ;;  %v1371_v0 = vsel %vm1339_vm3, %v1309_v44, %v1370_v36  ;;  %v892_v62 = vpop.permute.xlu1 %891 }
 0x204   :  { %v1090_v60 = vsel %vm322_vm15, %v943_v33, -inf  ;;  %v3084_v23 = vmax.f32 %v3082_v29, %v3083_v46  ;;  %v1239_v31 = vmax.f32 %v1237_v27, %v1238_v1  ;;  %v1249_v48 = vrot.slane %v1248_v40, 4 }
 0x205   :  { %v1055_v9 = vmax.f32 %v3081_v16, %v2694_v59  ;;  %v1372_v54 = vsel %vm1341_vm4, %v1310_v21, %v1371_v0  ;;  %v1228_v49 = vmax.f32 %v1226_v39, %v1227_v14  ;;  %v1311_v30 = vsub.f32 0.0, %v1215_v43 }
 0x206   :  { %v1259_v20 = vmax.f32 %v3084_v23, %v2697_v24  ;;  %v1294_v3 = vsel %vm322_vm15, %v1147_v35, -inf  ;;  %v934_v59 = vadd.f32 %v823_v13, %v2573_v28  ;;  %v1240_v47 = vrot.slane %v1239_v31, 1 }
 0x207   :  { %v1250_v19 = vmax.f32 %v1248_v40, %v1249_v48  ;;  %v1092_v25 = vmax.f32 %v1090_v60, %v3085_v4  ;;  %v1138_v7 = vsub.f32 %v823_v13, %v2573_v28  ;;  %v1373_v18 = vsel %vm1343_vm5, %v1311_v30, %v1372_v54 }
 0x208   :  { %v1056_v24 = vsel %vm322_vm15, %v934_v59, -inf  ;;  %v945_v41 = vadd.f32 %v892_v62, %v2518_v58  ;;  %v1149_v17 = vsub.f32 %v892_v62, %v2518_v58  ;;  %v1296_v22 = vmax.f32 %v1294_v3, %v3086_v10 }
 0x209   :  { %v1251_v61 = vrot.slane %v1250_v19, 2  ;;  %v1057_v55 = vmax.f32 %v1055_v9, %v1056_v24  ;;  %v1260_v51 = vsel %vm322_vm15, %v1138_v7, -inf  ;;  %v1241_v11 = vmax.f32 %v1239_v31, %v1240_v47 }
 0x20a   :  { %v1261_v2 = vmax.f32 %v1259_v20, %v1260_v51  ;;  %v1093_v37 = vsel %vm322_vm15, %v945_v41, -inf  ;;  %v1297_v28 = vsel %vm322_vm15, %v1149_v17, -inf  ;;  %v1312_v12 = vsub.f32 0.0, %v1228_v49  ;;  %v3089_v51 = vld [vmem:[#allocation31_spill] sm:$0xff] }
 0x20b   :  { %v1252_v13 = vmax.f32 %v1250_v19, %v1251_v61  ;;  %v1058_v42 = vrot.slane %v1057_v55, 4  ;;  %v1094_v38 = vmax.f32 %v1092_v25, %v1093_v37  ;;  %v3087_v57 = vrot.slane %v2674_v50, 2 }
 0x20c   :  { %v1278_v39 = vmax.f32 %v2689_v32, %v1277_v63  ;;  %v1262_v8 = vrot.slane %v1261_v2, 4  ;;  %v1298_v27 = vmax.f32 %v1296_v22, %v1297_v28  ;;  %v1374_v52 = vsel %vm1345_vm6, %v1312_v12, %v1373_v18 }
 0x20d   :  { %v1074_v58 = vmax.f32 %v2674_v50, %v3087_v57  ;;  %v1253_v45 = vrot.slane %v1252_v13, 1  ;;  %v1059_v44 = vmax.f32 %v1057_v55, %v1058_v42  ;;  %v1096_v43 = vmax.f32 %v1094_v38, %v2635_v34 }
 0x20e   :  { %v3088_v14 = vrot.slane %v2661_v6, 2  ;;  %v1313_v33 = vsub.f32 0.0, %v1241_v11  ;;  %v1263_v1 = vmax.f32 %v1261_v2, %v1262_v8  ;;  %v1300_v40 = vmax.f32 %v1298_v27, %v2638_v26 }
 0x20f   :  { %v1292_v50 = vrot.slane %v2681_v56, 1  ;;  %v1254_v36 = vmax.f32 %v1252_v13, %v1253_v45  ;;  %v1060_v32 = vrot.slane %v1059_v44, 2  ;;  %v1097_v35 = vrot.slane %v1096_v43, 4 }
 0x210   :  { %v1087_v21 = vmax.f32 %v2661_v6, %v3088_v14  ;;  %v1375_v63 = vsel %vm1347_vm7, %v1313_v33, %v1374_v52  ;;  %v1264_v15 = vrot.slane %v1263_v1, 2  ;;  %v1301_v5 = vrot.slane %v1300_v40, 4 }
 0x211   :  { %v1279_v16 = vrot.slane %v1278_v39, 1  ;;  %v1314_v9 = vsub.f32 0.0, %v1254_v36  ;;  %v1061_v34 = vmax.f32 %v1059_v44, %v1060_v32  ;;  %v1098_v0 = vmax.f32 %v1096_v43, %v1097_v35 }
 0x212   :  { %v1075_v60 = vrot.slane %v1074_v58, 1  ;;  %v1088_v29 = vrot.slane %v1087_v21, 1  ;;  %v1265_v6 = vmax.f32 %v1263_v1, %v1264_v15  ;;  %v1302_v46 = vmax.f32 %v1300_v40, %v1301_v5 }
 0x213   :  { %v1376_v23 = vsel %vm1349_vm8, %v1314_v9, %v1375_v63  ;;  %v1062_v26 = vrot.slane %v1061_v34, 1  ;;  %v1099_v20 = vrot.slane %v1098_v0, 2  ;;  %v1280_v62 = vmax.f32 %v1278_v39, %v1279_v16 }
 0x214   :  { %v1382_v31 = vsel %vm1319_vm9, %v1376_v23, 0.0  ;;  %v1266_v48 = vrot.slane %v1265_v6, 1  ;;  %v1303_v54 = vrot.slane %v1302_v46, 2  ;;  %v1076_v30 = vmax.f32 %v1074_v58, %v1075_v60 }
 0x215   :  { %1424 = vrot.lane.b32.xlu1 %v1382_v31, %s2000_s0  ;;  %v1063_v49 = vmax.f32 %v1061_v34, %v1062_v26  ;;  %v1100_v3 = vmax.f32 %v1098_v0, %v1099_v20  ;;  %v1293_v59 = vmax.f32 %v2681_v56, %v1292_v50  ;;  %v1089_v19 = vmax.f32 %v1087_v21, %v1088_v29 }
 0x216   :  { %v1267_v47 = vmax.f32 %v1265_v6, %v1266_v48  ;;  %v1304_v4 = vmax.f32 %v1302_v46, %v1303_v54  ;;  %v1316_v17 = vsub.f32 0.0, %v1280_v62  ;;  %vm1320_vm10 = vcmp.gt.f32.partialorder %v3089_v51, 0.0 }
 0x217   :  { %v1101_v25 = vrot.slane %v1100_v3, 1  ;;  %v1351_v7 = vsel %vm1337_vm0, %v1076_v30, %v1063_v49  ;;  %v1317_v10 = vsub.f32 0.0, %v1293_v59  ;;  %v2898_v12 = vmax.f32 %v3061_v53, 1.0  ;;  %v1493_v49 = vld [vmem:[#allocation6 + $0xb8] sm:$0xff]  ;;  %v1492_v30 = vld [vmem:[#allocation6 + $0xb0] sm:$0xff]  ;;  %v1491_v59 = vld [vmem:[#allocation6 + $0xa8] sm:$0xff] }
 0x218   :  { %v1315_v18 = vsub.f32 0.0, %v1267_v47  ;;  %v1352_v24 = vsel %vm1339_vm3, %v1089_v19, %v1351_v7  ;;  %v1305_v41 = vrot.slane %v1304_v4, 1  ;;  %v2903_v57 = vmax.f32 %v3089_v51, 1.0  ;;  %1531 = vmatpush.msra.mxu1 %v1493_v49  ;;  %v1490_v19 = vld [vmem:[#allocation6 + $0xa0] sm:$0xff] }
 0x219   :  { %v1102_v61 = vmax.f32 %v1100_v3, %v1101_v25  ;;  %1792 = vrcp.f32 %v2898_v12  ;;  %vm478_vm11 = vweird.f32 %v2898_v12  ;;  %v484_v8 = vand.u32 2147483648, %v2898_v12  ;;  %v1489_v25 = vld [vmem:[#allocation6 + $0x98] sm:$0xff] }
 0x21a   :  { %v1306_v22 = vmax.f32 %v1304_v4, %v1305_v41  ;;  %v1377_v55 = vsel %vm1337_vm0, %v1316_v17, %v1315_v18  ;;  %1794 = vrcp.f32 %v2903_v57  ;;  %v482_v45 = vand.u32 2147483647, %v2898_v12  ;;  %1532 = vmatpush.msra.mxu1 %v1492_v30  ;;  %v1488_v41 = vld [vmem:[#allocation6 + $0x90] sm:$0xff]  ;;  %v1475_v30 = vld [vmem:[#allocation6 + $0x28] sm:$0xff] }
 0x21b   :  { %v1353_v56 = vsel %vm1341_vm4, %v1102_v61, %v1352_v24  ;;  %v1378_v11 = vsel %vm1339_vm3, %v1317_v10, %v1377_v55  ;;  %v485_v52 = vor.u32 1.1754944e-38, %v484_v8  ;;  %vm493_vm0 = vweird.f32 %v2903_v57  ;;  %v1487_v8 = vld [vmem:[#allocation6 + $0x88] sm:$0xff] }
 0x21c   :  { %v1357_v2 = vsel %vm1320_vm10, %v1353_v56, 0.0  ;;  %v1318_v37 = vsub.f32 0.0, %v1306_v22  ;;  %vm483_vm14 = vcmp.eq.f32.partialorder %v482_v45, 8.507059e+37  ;;  %v499_v35 = vand.u32 2147483648, %v2903_v57  ;;  %1533 = vmatpush.msra.mxu1 %v1491_v59 }
 0x21d   :  { %1434 = vrot.lane.b32.xlu0 %v1357_v2, %s1999_s8  ;;  %v497_v5 = vand.u32 2147483647, %v2903_v57 }
 0x21e   :  { %v1379_v28 = vsel %vm1341_vm4, %v1318_v37, %v1378_v11  ;;  %v500_v16 = vor.u32 1.1754944e-38, %v499_v35  ;;  %1534 = vmatpush.msra.mxu1 %v1490_v19  ;;  %v1480_v35 = vld [vmem:[#allocation6 + $0x50] sm:$0xff] }
 0x21f   :  { %v1383_v13 = vsel %vm1320_vm10, %v1379_v28, 0.0  ;;  %v1793_v42 = vpop.eup %1792  ;;  %vm498_vm5 = vcmp.eq.f32.partialorder %v497_v5, 8.507059e+37  ;;  %v1582_v5 = vld [vmem:[#allocation7 + $0x10] sm:$0xff] }
 0x220   :  { %1426 = vrot.lane.b32.xlu2 %v1383_v13, %s2000_s0  ;;  %v474_v38 = vmul.f32 %v1793_v42, %v2898_v12  ;;  %vm479_vm12 = vweird.f32 %v1793_v42  ;;  %v1795_v27 = vpop.eup %1794  ;;  %1535 = vmatpush.msra.mxu1 %v1489_v25 }
 0x221   :  { %vm480_vm13 = vmor %vm478_vm11, %vm479_vm12  ;;  %v489_v44 = vmul.f32 %v1795_v27, %v2903_v57  ;;  %vm494_vm3 = vweird.f32 %v1795_v27 }
 0x222   :  { %v475_v58 = vsub.f32 1.0, %v474_v38  ;;  %vm495_vm4 = vmor %vm493_vm0, %vm494_vm3  ;;  %1536 = vmatpush.msra.mxu1 %v1488_v41  ;;  %v1385_v38 = vadd.f32 1.0, %v2903_v57  ;;  %v1483_v57 = vld [vmem:[#allocation6 + $0x68] sm:$0xff]  ;;  %vm1450_vm3 = vcmask 392192  }
 0x223   :  { %v490_v33 = vsub.f32 1.0, %v489_v44 }
 0x224   :  { %v476_v39 = vmul.f32 %v1793_v42, %v475_v58  ;;  %1537 = vmatpush.msra.mxu1 %v1487_v8  ;;  %v1810_v8 = vld [vmem:[%s3030_s4] sm:$0xff] }
 0x225   :  { %v491_v36 = vmul.f32 %v1795_v27, %v490_v33  ;;  %v1482_v33 = vld [vmem:[#allocation6 + $0x60] sm:$0xff] }
 0x226   :  { %v477_v53 = vadd.f32 %v1793_v42, %v476_v39 }
 0x227   :  { %v492_v15 = vadd.f32 %v1795_v27, %v491_v36  ;;  %v1481_v36 = vld [vmem:[#allocation6 + $0x58] sm:$0xff] }
 0x228   :  { %v481_v43 = vsel %vm480_vm13, %v1793_v42, %v477_v53  ;;  %v1384_v42 = vadd.f32 1.0, %v2898_v12  ;;  %v1484_v12 = vld [vmem:[#allocation6 + $0x70] sm:$0xff] }
 0x229   :  { %v486_v21 = vsel %vm483_vm14, %v485_v52, %v481_v43  ;;  %v496_v34 = vsel %vm495_vm4, %v1795_v27, %v492_v15  ;;  %v1486_v27 = vld [vmem:[#allocation6 + $0x80] sm:$0xff]  ;;  %v1485_v43 = vld [vmem:[#allocation6 + $0x78] sm:$0xff] }
 0x22a   :  { %v501_v60 = vsel %vm498_vm5, %v500_v16, %v496_v34  ;;  %1538 = vmatpush.msra.mxu1 %v1486_v27  ;;  %1500 = vmatpush.msra.mxu3 %v1485_v43  ;;  %vm1465_vm5 = vcmask 523264   ;;  %v1811_v27 = vld [vmem:[%s3030_s4 + $0x8] sm:$0xf] }
 0x22b   :  { %v1593_v43 = vld [vmem:[#allocation7 + $0x68] sm:$0xff] }
 0x22c   :  { %1501 = vmatpush.msra.mxu3 %v1484_v12  ;;  %v1592_v12 = vld [vmem:[#allocation7 + $0x60] sm:$0xff] }
 0x22e   :  { %1502 = vmatpush.msra.mxu3 %v1483_v57  ;;  %v1590_v57 = vld [vmem:[#allocation7 + $0x50] sm:$0xff] }
 0x230   :  { %1503 = vmatpush.msra.mxu3 %v1482_v33  ;;  %v1588_v33 = vld [vmem:[#allocation7 + $0x40] sm:$0xff] }
 0x232   :  { %1504 = vmatpush.msra.mxu3 %v1481_v36  ;;  %v1585_v36 = vld [vmem:[#allocation7 + $0x28] sm:$0xff] }
 0x234   :  { %1505 = vmatpush.msra.mxu3 %v1480_v35 }
 0x243   :  { %v526_v14 = vpop.f32.mrf.mxu1 }
 0x244   :  { %v2910_v40 = vmul.f32 %v526_v14, %v486_v21 }
 0x246   :  { %v563_v32 = vmul.f32 %v2910_v40, %v2910_v40 }
 0x24b   :  { %v553_v1 = vpop.f32.mrf.mxu2  ;;  %v529_v0 = vpop.f32.mrf.mxu1 }
 0x24c   :  { %v561_v50 = vmul.f32 %v553_v1, %v486_v21  ;;  %v2917_v6 = vmul.f32 %v529_v0, %v501_v60 }
 0x24e   :  { %v565_v63 = vsub.f32 %v561_v50, %v563_v32  ;;  %v564_v23 = vmul.f32 %v2917_v6, %v2917_v6 }
 0x250   :  { %v567_v9 = vmax.f32 %v565_v63, 0.0 }
 0x252   :  { %v569_v29 = vadd.f32 1e-05, %v567_v9  ;;  %v1479_v9 = vld [vmem:[#allocation6 + $0x48] sm:$0xff] }
 0x253   :  { %v556_v46 = vpop.f32.mrf.mxu2  ;;  %1506 = vmatpush.msra.mxu3 %v1479_v9  ;;  %v1580_v9 = vld [vmem:[#allocation7] sm:$0xff] }
 0x254   :  { %1796 = vrsqrt.f32 %v569_v29  ;;  %v562_v26 = vmul.f32 %v556_v46, %v501_v60  ;;  %vm578_vm6 = vcmp.eq.f32.partialorder %v569_v29, inf  ;;  %v581_v61 = vand.u32 2147483648, %v569_v29  ;;  %v1478_v60 = vld [vmem:[#allocation6 + $0x40] sm:$0xff] }
 0x255   :  { %vm580_vm7 = vcmp.eq.f32.partialorder %v569_v29, 0.0  ;;  %1507 = vmatpush.msra.mxu3 %v1478_v60 }
 0x256   :  { %v566_v20 = vsub.f32 %v562_v26, %v564_v23  ;;  %v1477_v23 = vld [vmem:[#allocation6 + $0x38] sm:$0xff]  ;;  %v1433_v26 = vpop.permute.xlu2 %1432 }
 0x257   :  { %1508 = vmatpush.msra.mxu3 %v1477_v23 }
 0x258   :  { %v568_v31 = vmax.f32 %v566_v20, 0.0 }
 0x25a   :  { %v1797_v48 = vpop.eup %1796  ;;  %v570_v54 = vadd.f32 1e-05, %v568_v31 }
 0x25b   :  { %v572_v62 = vmul.f32 %v1797_v48, %v569_v29 }
 0x25c   :  { %1798 = vrsqrt.f32 %v570_v54  ;;  %vm590_vm8 = vcmp.eq.f32.partialorder %v570_v54, inf  ;;  %v593_v37 = vand.u32 2147483648, %v570_v54  ;;  %vm592_vm9 = vcmp.eq.f32.partialorder %v570_v54, 0.0 }
 0x25d   :  { %v573_v3 = vmul.f32 %v1797_v48, %v572_v62  ;;  %1800 = vlog2.f32 %v1384_v42 }
 0x25e   :  { %1802 = vlog2.f32 %v1385_v38 }
 0x25f   :  { %v574_v47 = vmul.f32 0.5, %v573_v3 }
 0x261   :  { %v575_v4 = vsub.f32 1.5, %v574_v47 }
 0x262   :  { %v1799_v7 = vpop.eup %1798 }
 0x263   :  { %v576_v18 = vmul.f32 %v1797_v48, %v575_v4  ;;  %v584_v24 = vmul.f32 %v1799_v7, %v570_v54  ;;  %v1801_v58 = vpop.eup %1800  ;;  %v1476_v48 = vld [vmem:[#allocation6 + $0x30] sm:$0xff] }
 0x264   :  { %v1387_v39 = vmul.f32 0.6931472, %v1801_v58  ;;  %v1803_v53 = vpop.eup %1802  ;;  %1509 = vmatpush.msra.mxu3 %v1476_v48  ;;  %v1470_v58 = vld [vmem:[#allocation6] sm:$0xff] }
 0x265   :  { %v577_v17 = vmul.f32 %v576_v18, %v569_v29  ;;  %v585_v10 = vmul.f32 %v1799_v7, %v584_v24  ;;  %v2923_v45 = vmul.f32 0.6931472, %v1803_v53  ;;  %v1474_v24 = vld [vmem:[#allocation6 + $0x20] sm:$0xff] }
 0x266   :  { %1804 = vrcp.f32 %v1387_v39  ;;  %vm1397_vm10 = vweird.f32 %v1387_v39  ;;  %v1403_v32 = vand.u32 2147483648, %v1387_v39  ;;  %v1401_v15 = vand.u32 2147483647, %v1387_v39  ;;  %1510 = vmatpush.msra.mxu3 %v1475_v30 }
 0x267   :  { %v579_v22 = vsel %vm578_vm6, %v569_v29, %v577_v17  ;;  %v586_v51 = vmul.f32 0.5, %v585_v10  ;;  %1806 = vrcp.f32 %v2923_v45  ;;  %vm1412_vm14 = vweird.f32 %v2923_v45  ;;  %v1473_v17 = vld [vmem:[#allocation6 + $0x18] sm:$0xff] }
 0x268   :  { %v582_v55 = vsel %vm580_vm7, %v581_v61, %v579_v22  ;;  %v1404_v0 = vor.u32 1.1754944e-38, %v1403_v32  ;;  %vm1402_vm13 = vcmp.eq.f32.partialorder %v1401_v15, 8.507059e+37  ;;  %v1416_v49 = vand.u32 2147483647, %v2923_v45  ;;  %1511 = vmatpush.msra.mxu3 %v1474_v24  ;;  %v1584_v32 = vld [vmem:[#allocation7 + $0x20] sm:$0xff]  ;;  %v1583_v15 = vld [vmem:[#allocation7 + $0x18] sm:$0xff] }
 0x269   :  { %1440 = vrot.lane.b32.xlu1 %v582_v55, %s2001_s6  ;;  %v587_v56 = vsub.f32 1.5, %v586_v51  ;;  %v1472_v55 = vld [vmem:[#allocation6 + $0x10] sm:$0xff] }
 0x26a   :  { %vm1417_vm6 = vcmp.eq.f32.partialorder %v1416_v49, 8.507059e+37  ;;  %1512 = vmatpush.msra.mxu3 %v1473_v17 }
 0x26b   :  { %v588_v11 = vmul.f32 %v1799_v7, %v587_v56  ;;  %v1471_v56 = vld [vmem:[#allocation6 + $0x8] sm:$0xff] }
 0x26c   :  { %v1805_v52 = vpop.eup %1804  ;;  %1513 = vmatpush.msra.mxu3 %v1472_v55 }
 0x26d   :  { %v589_v2 = vmul.f32 %v588_v11, %v570_v54  ;;  %v1393_v44 = vmul.f32 %v1805_v52, %v1387_v39  ;;  %v2926_v21 = vpop.eup %1806  ;;  %vm1398_vm11 = vweird.f32 %v1805_v52 }
 0x26e   :  { %v1408_v50 = vmul.f32 %v2926_v21, %v2923_v45  ;;  %vm2930_vm12 = vmor %vm1397_vm10, %vm1398_vm11  ;;  %vm1413_vm0 = vweird.f32 %v2926_v21  ;;  %1514 = vmatpush.msra.mxu3 %v1471_v56 }
 0x26f   :  { %v591_v28 = vsel %vm590_vm8, %v570_v54, %v589_v2  ;;  %v1394_v14 = vsub.f32 1.0, %v1393_v44  ;;  %v1418_v54 = vand.u32 2147483648, %v2923_v45  ;;  %vm2945_vm4 = vmor %vm1412_vm14, %vm1413_vm0  ;;  %v1594_v44 = vld [vmem:[#allocation7 + $0x70] sm:$0xff] }
 0x270   :  { %v594_v13 = vsel %vm592_vm9, %v593_v37, %v591_v28  ;;  %v1409_v16 = vsub.f32 1.0, %v1408_v50  ;;  %v1391_v28 = vmul.f32 0.80332905, %v2923_v45  ;;  %1515 = vmatpush.msra.mxu3 %v1470_v58  ;;  %v1586_v50 = vld [vmem:[#allocation7 + $0x30] sm:$0xff] }
 0x271   :  { %1442 = vrot.lane.b32.xlu1 %v594_v13, %s2001_s6  ;;  %v1395_v1 = vmul.f32 %v1805_v52, %v1394_v14  ;;  %v1419_v18 = vor.u32 1.1754944e-38, %v1418_v54  ;;  %v1591_v14 = vld [vmem:[#allocation7 + $0x58] sm:$0xff] }
 0x272   :  { %v1410_v46 = vmul.f32 %v2926_v21, %v1409_v16  ;;  %v1581_v16 = vld [vmem:[#allocation7 + $0x8] sm:$0xff] }
 0x273   :  { %v1396_v63 = vadd.f32 %v1805_v52, %v1395_v1  ;;  %v1587_v1 = vld [vmem:[#allocation7 + $0x38] sm:$0xff] }
 0x274   :  { %v1411_v62 = vadd.f32 %v2926_v21, %v1410_v46  ;;  %v1788_v46 = vld [vmem:[%s2992_s11] ss:$0 sm:$0xff] }
 0x275   :  { %v1400_v29 = vsel %vm2930_vm12, %v1805_v52, %v1396_v63  ;;  %v1595_v52 = vld [vmem:[#allocation7 + $0x78] sm:$0xff] }
 0x276   :  { %v1405_v31 = vsel %vm1402_vm13, %v1404_v0, %v1400_v29  ;;  %v1415_v41 = vsel %vm2945_vm4, %v2926_v21, %v1411_v62  ;;  %1600 = vmatpush.msra.mxu0 %v1595_v52  ;;  %v1589_v21 = vld [vmem:[#allocation7 + $0x48] sm:$0xff] }
 0x277   :  { %v1406_v3 = vmul.f32 1.24482, %v1405_v31  ;;  %v1420_v22 = vsel %vm1417_vm6, %v1419_v18, %v1415_v41 }
 0x278   :  { %v1421_v37 = vmul.f32 1.24482, %v1420_v22  ;;  %1601 = vmatpush.msra.mxu0 %v1594_v44  ;;  %v1790_v44 = vld [vmem:[#allocation10] ss:$0 sm:$0xff] }
 0x27a   :  { %v1427_v61 = vpop.permute.xlu2 %1426  ;;  %1602 = vmatpush.msra.mxu0 %v1593_v43 }
 0x27b   :  { %v1447_v51 = vsel %vm322_vm15, %v2917_v6, %v1427_v61  ;;  %v1468_v6 = vld [vmem:[#allocation4] sm:$0xff] }
 0x27c   :  { %1603 = vmatpush.msra.mxu0 %v1592_v12 }
 0x27e   :  { %1604 = vmatpush.msra.mxu0 %v1591_v14 }
 0x280   :  { %1605 = vmatpush.msra.mxu0 %v1590_v57  ;;  %v1791_v57 = vld [vmem:[#allocation12] ss:$0 sm:$0xff] }
 0x282   :  { %1606 = vmatpush.msra.mxu0 %v1589_v21 }
 0x284   :  { %1607 = vmatpush.msra.mxu0 %v1588_v33 }
 0x286   :  { %1608 = vmatpush.msra.mxu0 %v1587_v1 }
 0x287   :  { %v1425_v34 = vpop.permute.xlu1 %1424 }
 0x288   :  { %v1446_v20 = vsel %vm322_vm15, %v2910_v40, %v1425_v34  ;;  %v1390_v40 = vmul.f32 0.80332905, %v1387_v39  ;;  %v1469_v39 = vld [vmem:[#allocation4 + $0x8] sm:$0xff]  ;;  %1609 = vmatpush.msra.mxu0 %v1586_v50 }
 0x289   :  { %v1448_v59 = vsel %vm463_vm1, %v1446_v20, %v1433_v26  ;;  %1565 = vmatpush.msra.mxu2 %v1469_v39 }
 0x28a   :  { %1610 = vmatpush.msra.mxu0 %v1585_v36 }
 0x28b   :  { %1566 = vmatpush.msra.mxu2 %v1468_v6 }
 0x28c   :  { %1723 = vmatmul.msk.f32.vlgmr.msra.gmra.mxu2 %vm322_vm15, %v1810_v8  ;;  %1611 = vmatpush.msra.mxu0 %v1584_v32 }
 0x28e   :  { %1612 = vmatpush.msra.mxu0 %v1583_v15 }
 0x28f   :  { %v1435_v10 = vpop.permute.xlu0 %1434 }
 0x290   :  { %v1449_v11 = vsel %vm463_vm1, %v1447_v51, %v1435_v10  ;;  %1613 = vmatpush.msra.mxu0 %v1582_v5 }
 0x292   :  { %1614 = vmatpush.msra.mxu0 %v1581_v16 }
 0x294   :  { %1724 = vmatmul.msk.f32.gmra.mxu2 %vm322_vm15, %v1811_v27  ;;  %1615 = vmatpush.msra.mxu0 %v1580_v9 }
 0x2db   :  { %v1441_v47 = vpop.permute.xlu1 %1440 }
 0x2dc   :  { %v1451_v4 = vsel %vm1450_vm3, %v1448_v59, %v1441_v47 }
 0x2dd   :  { %v1455_v25 = vmul.f32 %v1451_v4, %v1406_v3  ;;  %v1453_v7 = vmul.f32 %v1451_v4, %v1390_v40  ;;  %v1789_v3 = vld [vmem:[#allocation9] ss:$0 sm:$0xff] }
 0x2df   :  { %1721 = vmatmul.msk.f32.vlgmr.msra.gmra.mxu1 %vm1465_vm5, %v1455_v25  ;;  %1459 = vrot.lane.b32.xlu2 %v1453_v7, %s2002_s17 }
 0x2e3   :  { %v1443_v2 = vpop.permute.xlu1 %1442 }
 0x2e4   :  { %v1452_v13 = vsel %vm1450_vm3, %v1449_v11, %v1443_v2 }
 0x2e5   :  { %v1456_v42 = vmul.f32 %v1452_v13, %v1421_v37  ;;  %v1454_v38 = vmul.f32 %v1452_v13, %v1391_v28 }
 0x2e7   :  { %1722 = vmatmul.msk.f32.gmra.mxu1 %vm1465_vm5, %v1456_v42  ;;  %1461 = vrot.lane.b32.xlu0 %v1454_v38, %s2002_s17 }
 0x30f   :  { %v1568_v60 = vpop.f32.mrf.mxu2 }
 0x317   :  { %v1571_v48 = vpop.f32.mrf.mxu2 }
 0x339   :  { %v1460_v53 = vpop.permute.xlu2 %1459 }
 0x33a   :  { %v1466_v45 = vsel %vm1465_vm5, %v1451_v4, %v1460_v53 }
 0x33b   :  { %1516 = vmatmul.f32.vlgmr.msra.gmra.mxu3 %v1466_v45 }
 0x359   :  { %v1462_v35 = vpop.permute.xlu0 %1461 }
 0x35a   :  { %v1467_v63 = vsel %vm1465_vm5, %v1452_v13, %v1462_v35 }
 0x35b   :  { %1519 = vmatmul.f32.gmra.mxu3 %v1467_v63 }
 0x35c   :  { %v1540_v34 = vpop.f32.mrf.mxu1 }
 0x364   :  { %v1543_v20 = vpop.f32.mrf.mxu1 }
 0x3be   :  { %v1517_v0 = vpop.f32.mrf.mxu3 }
 0x3bf   :  { %v1541_v29 = vadd.f32 %v1540_v34, %v1517_v0 }
 0x3c1   :  { %v1569_v23 = vadd.f32 %v1568_v60, %v1541_v29 }
 0x3c3   :  { %v1578_v26 = vadd.f32 %v1788_v46, %v1569_v23 }
 0x3c5   :  { %1616 = vmatmul.f32.vlgmr.msra.gmra.mxu0 %v1578_v26 }
 0x3de   :  { %v1520_v31 = vpop.f32.mrf.mxu3 }
 0x3df   :  { %v1544_v54 = vadd.f32 %v1543_v20, %v1520_v31 }
 0x3e1   :  { %v1572_v62 = vadd.f32 %v1571_v48, %v1544_v54 }
 0x3e3   :  { %v1579_v49 = vadd.f32 %v1788_v46, %v1572_v62 }
 0x3e5   :  { %1619 = vmatmul.f32.gmra.mxu0 %v1579_v49 }
 0x442   :  { %v1617_v30 = vpop.f32.mrf.mxu0 }
 0x443   :  { %v1618_v40 = vadd.f32 %v1789_v3, %v1617_v30 }
 0x462   :  { %v1620_v59 = vpop.f32.mrf.mxu0 }
 0x463   :  { %v1621_v47 = vadd.f32 %v1789_v3, %v1620_v59 }
 0x465   :  { %v1623_v19 = vsel %vm244_vm2, %v1621_v47, 0.0 }
 0x466   :  { %v1624_v4 = vadd.f32 %v1623_v19, %v1618_v40 }
 0x468   :  { %v1625_v25 = vrot.slane %v1624_v4, 4 }
 0x46a   :  { %v1626_v7 = vadd.f32 %v1625_v25, %v1624_v4 }
 0x46c   :  { %v1627_v18 = vrot.slane %v1626_v7, 2 }
 0x46e   :  { %v1628_v24 = vadd.f32 %v1627_v18, %v1626_v7 }
 0x470   :  { %v1629_v41 = vrot.slane %v1628_v24, 1 }
 0x472   :  { %v1630_v17 = vadd.f32 %v1629_v41, %v1628_v24 }
 0x474   :  { %v1631_v61 = vmul.f32 0.083333336, %v1630_v17 }
 0x476   :  { %v1632_v10 = vsub.f32 %v1618_v40, %v1631_v61  ;;  %v1633_v22 = vsub.f32 %v1621_v47, %v1631_v61 }
 0x478   :  { %v1634_v55 = vmul.f32 %v1632_v10, %v1632_v10  ;;  %v1635_v51 = vmul.f32 %v1633_v22, %v1633_v22 }
 0x47a   :  { %v1636_v56 = vsel %vm244_vm2, %v1635_v51, 0.0 }
 0x47b   :  { %v1637_v11 = vadd.f32 %v1636_v56, %v1634_v55 }
 0x47d   :  { %v1638_v2 = vrot.slane %v1637_v11, 4 }
 0x47f   :  { %v1639_v37 = vadd.f32 %v1638_v2, %v1637_v11 }
 0x481   :  { %v1640_v28 = vrot.slane %v1639_v37, 2 }
 0x483   :  { %v1641_v13 = vadd.f32 %v1640_v28, %v1639_v37 }
 0x485   :  { %v1642_v42 = vrot.slane %v1641_v13, 1 }
 0x487   :  { %v1643_v38 = vadd.f32 %v1642_v42, %v1641_v13 }
 0x489   :  { %v1644_v58 = vmul.f32 0.083333336, %v1643_v38 }
 0x48b   :  { %v1645_v39 = vadd.f32 1e-05, %v1644_v58 }
 0x48d   :  { %1808 = vrsqrt.f32 %v1645_v39  ;;  %vm1652_vm15 = vweird.f32 %v1645_v39 }
 0x493   :  { %v1809_v6 = vpop.eup %1808 }
 0x494   :  { %v1647_v8 = vmul.f32 %v1809_v6, %v1645_v39  ;;  %vm1653_vm1 = vweird.f32 %v1809_v6 }
 0x495   :  { %vm1654_vm7 = vmor %vm1652_vm15, %vm1653_vm1 }
 0x496   :  { %v1648_v27 = vmul.f32 %v1809_v6, %v1647_v8 }
 0x498   :  { %v1649_v53 = vmul.f32 0.5, %v1648_v27 }
 0x49a   :  { %v1650_v45 = vsub.f32 1.5, %v1649_v53 }
 0x49c   :  { %v1651_v52 = vmul.f32 %v1809_v6, %v1650_v45 }
 0x49e   :  { %v1655_v43 = vsel %vm1654_vm7, %v1809_v6, %v1651_v52 }
 0x49f   :  { %v1656_v12 = vmul.f32 %v1655_v43, %v1632_v10  ;;  %v1657_v14 = vmul.f32 %v1655_v43, %v1633_v22 }
 0x4a1   :  { %v1662_v21 = vmul.f32 %v1790_v44, %v1656_v12  ;;  %v1663_v33 = vmul.f32 %v1790_v44, %v1657_v14 }
 0x4a3   :  { %v1668_v1 = vadd.f32 %v1791_v57, %v1662_v21  ;;  %v1669_v50 = vadd.f32 %v1791_v57, %v1663_v33 }
 0x4a5   :  { %v1670_v36 = vmax.f32 %v1668_v1, 0.0  ;;  %v1671_v32 = vmax.f32 %v1669_v50, 0.0 }
 0x4a7   :  { %1672 = vst [vmem:[%s2997_s16] sm:$0xff] %v1670_v36 }
 0x4a8   :  { %1673 = vst [vmem:[%s2997_s16 + $0x8] sm:$0xf] %v1671_v32 }
 0x4a9   :  { %1678 = vsyncpa [#allocation3], 1 }
 0x4aa   :  { %1679 = vsyncpa [#allocation5], 1 }
 0x4ab   :  { %1680 = vsyncpa [#allocation8], 1 }
 0x4ac   :  { %1681 = vsyncpa [#allocation11], 1 }

// kernel: simp_forward.6
= control target key start
LH: loop header
LB: loop body
LE: loop exit
PB: predicated region body
PF: predicated region fallthrough
CT: control target
= control target key end

     0   :  { %s3293_s0 = inlined_call_operand.vmem [shape: f32[12,128], index: 0, kind: input, shape index: {}]   ;;  %s3294_s1 = inlined_call_operand.vmem [shape: f32[32,4], index: 1, kind: input, shape index: {}]   ;;  %s3295_s2 = inlined_call_operand.vmem [shape: s32[32,1], index: 2, kind: input, shape index: {}]   ;;  %s3296_s3 = inlined_call_operand.vmem [shape: s32[32,1], index: 3, kind: input, shape index: {}]   ;;  %s3297_s4 = inlined_call_operand.vmem [shape: s32[1,32], index: 4, kind: input, shape index: {}]   ;;  %s3298_s5 = inlined_call_operand.hbm [shape: f32[128,128], index: 5, kind: input, shape index: {}]   ;;  %s3299_s6 = inlined_call_operand.hbm [shape: f32[128,128], index: 6, kind: input, shape index: {}]   ;;  %s3300_s7 = inlined_call_operand.vmem [shape: f32[4,128], index: 7, kind: input, shape index: {}]   ;;  %s3301_s8 = inlined_call_operand.vmem [shape: f32[1,128], index: 8, kind: input, shape index: {}]   ;;  %s3302_s9 = inlined_call_operand.hbm [shape: f32[128,128], index: 9, kind: input, shape index: {}]   ;;  %s3303_s10 = inlined_call_operand.hbm [shape: f32[1536,128], index: 10, kind: input, shape index: {}]   ;;  %s3304_s11 = inlined_call_operand.vmem [shape: f32[1,128], index: 11, kind: input, shape index: {}]   ;;  %s3305_s12 = inlined_call_operand.hbm [shape: f32[128,128], index: 12, kind: input, shape index: {}]   ;;  %s3306_s13 = inlined_call_operand.vmem [shape: f32[1,128], index: 13, kind: input, shape index: {}]   ;;  %s3307_s14 = inlined_call_operand.hbm [shape: f32[1,128], index: 14, kind: input, shape index: {}]   ;;  %s3308_s15 = inlined_call_operand.hbm [shape: f32[1,128], index: 15, kind: input, shape index: {}]   ;;  %s3309_s16 = inlined_call_operand.vmem [shape: f32[12,128], index: 16, kind: output, shape index: {}]  }
   0x1   :  { %3334 = sst [smem:[#allocation40_spill]] %s3293_s0 }
   0x2   :  { %21 = vsyncpa [#allocation3], 0 }
   0x3   :  { %22 = vsyncpa [#allocation5], 0 }
   0x4   :  { %23 = vsyncpa [#allocation8], 0 }
   0x5   :  { %24 = vsyncpa [#allocation11], 0  ;;  %s52_s23 = sshll.u32 %s3299_s6, 4  ;;  %s2270_s24 = smov [#allocation4]   ;;  %s53_s23 = int_to_ptr.hbm [resolvable:$true] %s52_s23 }
   0x6   :  { %s54_s25 = sshll.u32 %s2270_s24, 4  ;;  %s82_s28 = sshll.u32 %s3303_s10, 4  ;;  %s55_s25 = int_to_ptr.vmem [resolvable:$true] %s54_s25  ;;  %s83_s28 = int_to_ptr.hbm [resolvable:$true] %s82_s28 }
   0x7   :  { %s2271_s29 = smov 128   ;;  %s2272_s30 = smov 8  }
   0x8   :  { %60 = dma.hbm_to_vmem [thread:$0]  %s53_s23, 2048, %s55_s25, [#allocation5], %s2271_s29, %s2271_s29, %s2272_s30  }
   0x9   :  { %s2273_s0 = smov [#allocation7]   ;;  %s113_s6 = sshll.u32 %s3307_s14, 4  ;;  %s114_s6 = int_to_ptr.hbm [resolvable:$true] %s113_s6 }
   0xa   :  { %s84_s17 = sshll.u32 %s2273_s0, 4  ;;  %s39_s21 = sshll.u32 %s3298_s5, 4  ;;  %s85_s17 = int_to_ptr.vmem [resolvable:$true] %s84_s17  ;;  %s40_s21 = int_to_ptr.hbm [resolvable:$true] %s39_s21 }
   0xb   :  { %90 = dma.hbm_to_vmem [thread:$0]  %s83_s28, 24576, %s85_s17, [#allocation8], %s2271_s29, %s2271_s29, %s2272_s30  }
   0xc   :  { %s2274_s22 = smov [#allocation10]   ;;  %s2275_s23 = smov [#allocation2]  }
   0xd   :  { %s115_s24 = sshll.u32 %s2274_s22, 4  ;;  %s41_s25 = sshll.u32 %s2275_s23, 4  ;;  %s116_s24 = int_to_ptr.vmem [resolvable:$true] %s115_s24  ;;  %s42_s25 = int_to_ptr.vmem [resolvable:$true] %s41_s25 }
   0xe   :  { %118 = dma.hbm_to_vmem [thread:$0]  %s114_s6, 16, %s116_s24, [#allocation11]  }
   0xf   :  { %s69_s14 = sshll.u32 %s3302_s9, 4  ;;  %s97_s5 = sshll.u32 %s3305_s12, 4  ;;  %s70_s14 = int_to_ptr.hbm [resolvable:$true] %s69_s14  ;;  %s98_s5 = int_to_ptr.hbm [resolvable:$true] %s97_s5 }
  0x10   :  { %47 = dma.hbm_to_vmem [thread:$0]  %s40_s21, 2048, %s42_s25, [#allocation3], %s2271_s29, %s2271_s29, %s2272_s30  }
  0x11   :  { %s2276_s17 = smov [#allocation6]   ;;  %s2277_s19 = smov [#allocation9]  }
  0x12   :  { %s71_s18 = sshll.u32 %s2276_s17, 4  ;;  %s99_s9 = sshll.u32 %s2277_s19, 4  ;;  %s72_s18 = int_to_ptr.vmem [resolvable:$true] %s71_s18  ;;  %s100_s9 = int_to_ptr.vmem [resolvable:$true] %s99_s9 }
  0x13   :  { %77 = dma.hbm_to_vmem [thread:$0]  %s70_s14, 2048, %s72_s18, [#allocation5], %s2271_s29, %s2271_s29, %s2272_s30  }
  0x14   :  { %s124_s20 = sshll.u32 %s3308_s15, 4  ;;  %s2278_s12 = smov [#allocation12]   ;;  %s125_s20 = int_to_ptr.hbm [resolvable:$true] %s124_s20 }
  0x15   :  { %105 = dma.hbm_to_vmem [thread:$0]  %s98_s5, 2048, %s100_s9, [#allocation8], %s2271_s29, %s2271_s29, %s2272_s30  }
  0x16   :  { %s126_s21 = sshll.u32 %s2278_s12, 4  ;;  %s127_s21 = int_to_ptr.vmem [resolvable:$true] %s126_s21 }
  0x17   :  { %129 = dma.hbm_to_vmem [thread:$0]  %s125_s20, 16, %s127_s21, [#allocation11]  }
  0x18   :  { %2262 = dma.done.wait [#allocation3], 2048  }
  0x19   :  { %2263 = vsyncadd [#allocation3], 4294965248 }
  0x1a   :  { %2264 = dma.done.wait [#allocation5], 4096  }
  0x1b   :  { %2265 = vsyncadd [#allocation5], 4294963200 }
  0x1c   :  { %2266 = dma.done.wait [#allocation8], 26624  }
  0x1d   :  { %2267 = vsyncadd [#allocation8], 4294940672 }
  0x1e   :  { %2268 = dma.done.wait [#allocation11], 32  }
  0x1f   :  { %2269 = vsyncadd [#allocation11], 4294967264  ;;  %v2279_v0 = vmov 0   ;;  %v167_v1 = vld [vmem:[%s3296_s3 + $0x8] sm:$0xff]  ;;  %v166_v2 = vld [vmem:[%s3296_s3] sm:$0xff]  ;;  %v164_v7 = vlaneseq  ;;  %v2280_v13 = vmov 0.0  }
  0x20   :  { %2025 = vset.pattern.permute.xlu1 %v2279_v0  ;;  %2024 = vset.pattern.permute.xlu0 %v2279_v0  ;;  %v168_v3 = vld [vmem:[%s3296_s3 + $0x10] sm:$0xff]  ;;  %v195_v4 = vld [vmem:[%s3295_s2 + $0x8] sm:$0xff]  ;;  %v194_v5 = vld [vmem:[%s3295_s2] sm:$0xff]  ;;  %vm468_vm1 = vcmask 261120   ;;  %vm246_vm2 = vcmask 1043456   ;;  %vm233_vm3 = vcmask 97280  }
  0x21   :  { %2026 = vset.pattern.permute.xlu2 %v2279_v0  ;;  %174 = vperm.xlu1 %2025, %v167_v1   ;;  %v196_v6 = vld [vmem:[%s3295_s2 + $0x10] sm:$0xff]  ;;  %v2420_v8 = vshrl.u32 %v164_v7, 7  ;;  %v2425_v9 = vld [vmem:[%s3297_s4] ss:$0 sm:$0xff]  ;;  %v197_v10 = vld [vmem:[%s3295_s2 + $0x18] sm:$0xff]  ;;  %s3335_s4 = sld [smem:[#allocation40_spill]] }
  0x22   :  { %171 = vperm.xlu0 %2024, %v166_v2   ;;  %177 = vperm.xlu2 %2026, %v168_v3   ;;  %v169_v11 = vld [vmem:[%s3296_s3 + $0x18] sm:$0xff]  ;;  %v165_v26 = vand.u32 127, %v164_v7  ;;  %vm472_vm13 = vcmask 257024   ;;  %v334_v49 = vld [vmem:[#allocation2 + $0x70] sm:$0xff]  ;;  %v333_v50 = vld [vmem:[#allocation2 + $0x68] sm:$0xff]  ;;  %vm411_vm14 = vcmask 31744  }
  0x23   :  { %vm227_vm0 = vcmp.eq.s32.totalorder %v2420_v8, %v2425_v9  ;;  %v2436_v12 = vadd.s32 8, %v2420_v8  ;;  %v2465_v21 = vadd.s32 16, %v2420_v8  ;;  %v2479_v24 = vadd.s32 24, %v2420_v8  ;;  %v335_v48 = vld [vmem:[#allocation2 + $0x78] sm:$0xff]  ;;  %v332_v53 = vld [vmem:[#allocation2 + $0x60] sm:$0xff]  ;;  %v350_v56 = vld [vmem:[#allocation4 + $0x70] sm:$0xff] }
  0x24   :  { %v2439_v14 = vsel %vm227_vm0, 1.0, %v2280_v13  ;;  %381 = vmatpush.msra.mxu3 %v335_v48  ;;  %v351_v54 = vld [vmem:[#allocation4 + $0x78] sm:$0xff]  ;;  %v330_v57 = vld [vmem:[#allocation2 + $0x50] sm:$0xff]  ;;  %v349_v58 = vld [vmem:[#allocation4 + $0x68] sm:$0xff]  ;;  %vm1246_vm15 = vcmask 1041409   ;;  %vm1248_vm0 = vcmask 1042434  }
  0x25   :  { %v1991_v15 = vadd.f32 -1.0, %v2439_v14  ;;  %v469_v18 = vsel %vm468_vm1, %v2439_v14, 0.0  ;;  %vm228_vm12 = vcmp.eq.s32.totalorder %v2436_v12, %v2425_v9  ;;  %v331_v55 = vld [vmem:[#allocation2 + $0x58] sm:$0xff]  ;;  %352 = vmatpush.msra.mxu2 %v351_v54  ;;  %v329_v60 = vld [vmem:[#allocation2 + $0x48] sm:$0xff]  ;;  %v348_v61 = vld [vmem:[#allocation4 + $0x60] sm:$0xff] }
  0x26   :  { %v2526_v45 = vsel %vm228_vm12, 1.0, %v2280_v13  ;;  %382 = vmatpush.msra.mxu3 %v334_v49  ;;  %v328_v62 = vld [vmem:[#allocation2 + $0x40] sm:$0xff]  ;;  %v347_v0 = vld [vmem:[#allocation4 + $0x58] sm:$0xff]  ;;  %v346_v2 = vld [vmem:[#allocation4 + $0x50] sm:$0xff] }
  0x27   :  { %v2444_v16 = vmul.f32 1e+30, %v1991_v15  ;;  %v159_v22 = vld [vmem:[%s3335_s4 + $0x8] sm:$0xf]  ;;  %v158_v23 = vld [vmem:[%s3335_s4] sm:$0xff]  ;;  %3336 = vst [vmem:[#allocation17_spill] sm:$0xff] %v2526_v45  ;;  %353 = vmatpush.msra.mxu2 %v350_v56 }
  0x28   :  { %1972 = vmatpush.msk.msra.mxu0 %vm246_vm2, %v159_v22  ;;  %1977 = vmatpush.msk.msra.mxu1 %vm246_vm2, %v159_v22  ;;  %v473_v46 = vsel %vm472_vm13, %v2526_v45, 0.0  ;;  %v1992_v52 = vadd.f32 -1.0, %v2526_v45  ;;  %v327_v1 = vld [vmem:[#allocation2 + $0x38] sm:$0xff]  ;;  %v326_v3 = vld [vmem:[#allocation2 + $0x30] sm:$0xff]  ;;  %v324_v7 = vld [vmem:[#allocation2 + $0x20] sm:$0xff] }
  0x29   :  { %202 = vperm.xlu1 %2025, %v195_v4   ;;  %v2447_v17 = vperm.slane %v2444_v16, 0  ;;  %v2456_v19 = vperm.slane %v2444_v16, 1  ;;  %v2460_v20 = vperm.slane %v2444_v16, 2  ;;  %v2486_v25 = vperm.slane %v2444_v16, 4  ;;  %383 = vmatpush.msra.mxu3 %v333_v50  ;;  %v345_v4 = vld [vmem:[#allocation4 + $0x48] sm:$0xff]  ;;  %v343_v9 = vld [vmem:[#allocation4 + $0x38] sm:$0xff] }
  0x2a   :  { %199 = vperm.xlu0 %2024, %v194_v5   ;;  %205 = vperm.xlu2 %2026, %v196_v6   ;;  %v2499_v34 = vperm.slane %v2444_v16, 3  ;;  %v2510_v40 = vperm.slane %v2444_v16, 5  ;;  %v2533_v47 = vperm.slane %v2444_v16, 6  ;;  %v2541_v51 = vperm.slane %v2444_v16, 7  ;;  %v325_v5 = vld [vmem:[#allocation2 + $0x28] sm:$0xff]  ;;  %v344_v6 = vld [vmem:[#allocation4 + $0x40] sm:$0xff] }
  0x2b   :  { %265 = vmatpush.msra.mxu0 %v158_v23  ;;  %306 = vmatpush.msra.mxu1 %v158_v23  ;;  %v2547_v59 = vmul.f32 1e+30, %v1992_v52  ;;  %v341_v15 = vld [vmem:[#allocation4 + $0x28] sm:$0xff]  ;;  %v339_v22 = vld [vmem:[#allocation4 + $0x18] sm:$0xff]  ;;  %v338_v23 = vld [vmem:[#allocation4 + $0x10] sm:$0xff] }
  0x2c   :  { %384 = vmatpush.msra.mxu3 %v332_v53  ;;  %354 = vmatpush.msra.mxu2 %v349_v58  ;;  %v321_v16 = vld [vmem:[#allocation2 + $0x8] sm:$0xff] }
  0x2d   :  { %v2551_v63 = vperm.slane %v2547_v59, 0 }
  0x2e   :  { %385 = vmatpush.msra.mxu3 %v331_v55  ;;  %355 = vmatpush.msra.mxu2 %v348_v61 }
  0x30   :  { %386 = vmatpush.msra.mxu3 %v330_v57  ;;  %356 = vmatpush.msra.mxu2 %v347_v0 }
  0x31   :  { %208 = vperm.xlu1 %2025, %v197_v10   ;;  %v323_v10 = vld [vmem:[#allocation2 + $0x18] sm:$0xff] }
  0x32   :  { %180 = vperm.xlu0 %2024, %v169_v11   ;;  %2032 = vset.pattern.permute.xlu2 %v2436_v12  ;;  %v342_v11 = vld [vmem:[#allocation4 + $0x30] sm:$0xff] }
  0x33   :  { %387 = vmatpush.msra.mxu3 %v329_v60  ;;  %357 = vmatpush.msra.mxu2 %v346_v2 }
  0x35   :  { %388 = vmatpush.msra.mxu3 %v328_v62  ;;  %358 = vmatpush.msra.mxu2 %v345_v4 }
  0x37   :  { %389 = vmatpush.msra.mxu3 %v327_v1  ;;  %359 = vmatpush.msra.mxu2 %v344_v6 }
  0x39   :  { %2027 = vset.pattern.permute.xlu1 %v2420_v8  ;;  %390 = vmatpush.msra.mxu3 %v326_v3 }
  0x3a   :  { %2047 = vset.pattern.permute.xlu0 %v2479_v24  ;;  %360 = vmatpush.msra.mxu2 %v343_v9  ;;  %v1410_v9 = vld [vmem:[#allocation7 + $0x178] sm:$0xff] }
  0x3b   :  { %391 = vmatpush.msra.mxu3 %v325_v5 }
  0x3c   :  { %361 = vmatpush.msra.mxu2 %v342_v11  ;;  %v1409_v11 = vld [vmem:[#allocation7 + $0x170] sm:$0xff] }
  0x3d   :  { %392 = vmatpush.msra.mxu3 %v324_v7 }
  0x3e   :  { %362 = vmatpush.msra.mxu2 %v341_v15 }
  0x3f   :  { %393 = vmatpush.msra.mxu3 %v323_v10  ;;  %v1394_v10 = vld [vmem:[#allocation7 + $0xf8] sm:$0xff] }
  0x41   :  { %609 = vperm.xlu1 %2027, %v2447_v17  }
  0x49   :  { %2028 = vset.pattern.permute.xlu1 %v2436_v12 }
  0x51   :  { %615 = vperm.xlu1 %2028, %v2447_v17  }
  0x53   :  { %470 = vadd.xlane.f32.xlu2 %v469_v18  ;;  %v320_v18 = vld [vmem:[#allocation2] sm:$0xff] }
  0x59   :  { %2029 = vset.pattern.permute.xlu1 %v2420_v8 }
  0x5c   :  { %474 = vadd.xlane.f32.xlu0 %v473_v46 }
  0x61   :  { %634 = vperm.xlu1 %2029, %v2456_v19  }
  0x69   :  { %2030 = vset.pattern.permute.xlu1 %v2436_v12 }
  0x6b   :  { %665 = vperm.xlu2 %2032, %v2460_v20  }
  0x70   :  { %702 = vperm.xlu0 %2047, %v2499_v34  }
  0x71   :  { %640 = vperm.xlu1 %2030, %v2456_v19  }
  0x73   :  { %2036 = vset.pattern.permute.xlu2 %v2465_v21 }
  0x78   :  { %2055 = vset.pattern.permute.xlu0 %v2420_v8 }
  0x79   :  { %2031 = vset.pattern.permute.xlu1 %v2420_v8 }
  0x7b   :  { %671 = vperm.xlu2 %2036, %v2460_v20  }
  0x7c   :  { %v178_v32 = vpop.permute.xlu2 %177 }
  0x7d   :  { %vm184_vm7 = vcmp.eq.s32.totalorder %v165_v26, %v178_v32 }
  0x7e   :  { %v1964_v36 = vsel %vm184_vm7, 1.0, %v2280_v13  ;;  %vm1258_vm7 = vcmask 1047559  }
  0x80   :  { %809 = vperm.xlu0 %2055, %v2551_v63  }
  0x81   :  { %659 = vperm.xlu1 %2031, %v2460_v20  }
  0x83   :  { %2038 = vset.pattern.permute.xlu2 %v2436_v12 }
  0x84   :  { %v206_v38 = vpop.permute.xlu2 %205 }
  0x85   :  { %vm212_vm9 = vcmp.eq.s32.totalorder %v165_v26, %v206_v38 }
  0x86   :  { %v1968_v41 = vsel %vm212_vm9, 1.0, %v2280_v13 }
  0x88   :  { %2056 = vset.pattern.permute.xlu0 %v2436_v12 }
  0x89   :  { %2033 = vset.pattern.permute.xlu1 %v2465_v21 }
  0x8b   :  { %715 = vperm.xlu2 %2038, %v2486_v25  }
  0x90   :  { %740 = vperm.xlu0 %2056, %v2510_v40  }
  0x91   :  { %621 = vperm.xlu1 %2033, %v2447_v17  }
  0x93   :  { %2040 = vset.pattern.permute.xlu2 %v2479_v24  ;;  %v175_v28 = vpop.permute.xlu1 %174 }
  0x94   :  { %v172_v27 = vpop.permute.xlu0 %171  ;;  %vm183_vm5 = vcmp.eq.s32.totalorder %v165_v26, %v175_v28  ;;  %v160_v28 = vld [vmem:[%s3294_s1] sm:$0xff] }
  0x95   :  { %vm182_vm4 = vcmp.eq.s32.totalorder %v165_v26, %v172_v27  ;;  %v1963_v30 = vsel %vm183_vm5, 1.0, %v2280_v13  ;;  %v2563_v27 = vperm.slane %v2547_v59, 2  ;;  %vm1254_vm5 = vcmask 1045509  }
  0x96   :  { %v1962_v29 = vsel %vm182_vm4, 1.0, %v2280_v13  ;;  %vm1252_vm4 = vcmask 1044484  }
  0x97   :  { %1973 = vmatmul.msk.f32.vlgmr.msra.gmra.mxu0 %vm233_vm3, %v1962_v29  ;;  %v161_v29 = vld [vmem:[%s3294_s1 + $0x8] sm:$0xff] }
  0x98   :  { %865 = vperm.xlu0 %2056, %v2563_v27  }
  0x99   :  { %2034 = vset.pattern.permute.xlu1 %v2420_v8 }
  0x9b   :  { %652 = vperm.xlu2 %2040, %v2456_v19   ;;  %v203_v35 = vpop.permute.xlu1 %202 }
  0x9c   :  { %v200_v31 = vpop.permute.xlu0 %199  ;;  %vm211_vm8 = vcmp.eq.s32.totalorder %v165_v26, %v203_v35 }
  0x9d   :  { %vm210_vm6 = vcmp.eq.s32.totalorder %v165_v26, %v200_v31  ;;  %v1967_v37 = vsel %vm211_vm8, 1.0, %v2280_v13  ;;  %v162_v31 = vld [vmem:[%s3294_s1 + $0x10] sm:$0xff] }
  0x9e   :  { %v1966_v33 = vsel %vm210_vm6, 1.0, %v2280_v13  ;;  %vm1256_vm6 = vcmask 1046534  }
  0x9f   :  { %1974 = vmatmul.msk.f32.gmra.mxu0 %vm233_vm3, %v1963_v30  ;;  %1978 = vmatmul.msk.f32.vlgmr.msra.gmra.mxu1 %vm233_vm3, %v1966_v33  ;;  %v163_v33 = vld [vmem:[%s3294_s1 + $0x18] sm:$0xff] }
  0xa0   :  { %2059 = vset.pattern.permute.xlu0 %v2465_v21 }
  0xa1   :  { %684 = vperm.xlu1 %2034, %v2499_v34  }
  0xa3   :  { %2042 = vset.pattern.permute.xlu2 %v2420_v8  ;;  %v209_v43 = vpop.permute.xlu1 %208 }
  0xa4   :  { %v181_v39 = vpop.permute.xlu0 %180  ;;  %vm213_vm11 = vcmp.eq.s32.totalorder %v165_v26, %v209_v43  ;;  %v879_v43 = vperm.slane %v2547_v59, 3 }
  0xa5   :  { %vm185_vm10 = vcmp.eq.s32.totalorder %v165_v26, %v181_v39  ;;  %v1969_v44 = vsel %vm213_vm11, 1.0, %v2280_v13  ;;  %v336_v26 = vld [vmem:[#allocation4] sm:$0xff] }
  0xa6   :  { %v1965_v42 = vsel %vm185_vm10, 1.0, %v2280_v13  ;;  %v322_v13 = vld [vmem:[#allocation2 + $0x10] sm:$0xff] }
  0xa7   :  { %1975 = vmatmul.msk.f32.gmra.mxu0 %vm233_vm3, %v1964_v36  ;;  %1979 = vmatmul.msk.f32.gmra.mxu1 %vm233_vm3, %v1967_v37 }
  0xa8   :  { %394 = vmatpush.msra.mxu3 %v322_v13  ;;  %646 = vperm.xlu0 %2059, %v2456_v19   ;;  %v829_v19 = vperm.slane %v2547_v59, 1 }
  0xa9   :  { %2035 = vset.pattern.permute.xlu1 %v2436_v12 }
  0xaa   :  { %395 = vmatpush.msra.mxu3 %v321_v16  ;;  %v1408_v16 = vld [vmem:[#allocation7 + $0x168] sm:$0xff] }
  0xab   :  { %734 = vperm.xlu2 %2042, %v2510_v40  }
  0xac   :  { %396 = vmatpush.msra.mxu3 %v320_v18  ;;  %v1407_v18 = vld [vmem:[#allocation7 + $0x160] sm:$0xff] }
  0xae   :  { %1578 = vmatpush.msrb.mxu3 %v1394_v10  ;;  %v1402_v10 = vld [vmem:[#allocation7 + $0x138] sm:$0xff] }
  0xaf   :  { %1976 = vmatmul.msk.f32.gmra.mxu0 %vm233_vm3, %v1965_v42  ;;  %1980 = vmatmul.msk.f32.gmra.mxu1 %vm233_vm3, %v1968_v41 }
  0xb0   :  { %771 = vperm.xlu0 %2059, %v2533_v47  }
  0xb1   :  { %690 = vperm.xlu1 %2035, %v2499_v34  }
  0xb3   :  { %2044 = vset.pattern.permute.xlu2 %v2465_v21  ;;  %v2601_v37 = vpop.permute.xlu1 %609 }
  0xb4   :  { %3337 = vst [vmem:[#allocation18_spill] sm:$0xff] %v2601_v37 }
  0xb7   :  { %1981 = vmatmul.msk.f32.gmra.mxu1 %vm233_vm3, %v1969_v44  ;;  %vm1250_vm3 = vcmask 1043459  }
  0xb8   :  { %871 = vperm.xlu0 %2059, %v2563_v27  }
  0xb9   :  { %2037 = vset.pattern.permute.xlu1 %v2420_v8 }
  0xbb   :  { %721 = vperm.xlu2 %2044, %v2486_v25  }
  0xc0   :  { %2067 = vset.pattern.permute.xlu0 %v2479_v24 }
  0xc1   :  { %709 = vperm.xlu1 %2037, %v2486_v25  }
  0xc3   :  { %2046 = vset.pattern.permute.xlu2 %v2436_v12  ;;  %v2609_v42 = vpop.permute.xlu1 %615 }
  0xc6   :  { %v2591_v32 = vpop.xlane.xlu2 %470 }
  0xc7   :  { %vm1228_vm8 = vcmp.gt.f32.partialorder %v2591_v32, 0.0 }
  0xc8   :  { %902 = vperm.xlu0 %2067, %v879_v43  }
  0xc9   :  { %2039 = vset.pattern.permute.xlu1 %v2479_v24 }
  0xcb   :  { %765 = vperm.xlu2 %2046, %v2533_v47  }
  0xce   :  { %v2599_v36 = vpop.permute.xlu2 %665 }
  0xcf   :  { %v2655_v61 = vpop.xlane.xlu0 %474 }
  0xd0   :  { %3345 = vst [vmem:[#allocation26_spill] sm:$0xff] %v2655_v61  ;;  %v1396_v61 = vld [vmem:[#allocation7 + $0x108] sm:$0xff] }
  0xd1   :  { %627 = vperm.xlu1 %2039, %v2447_v17   ;;  %v340_v17 = vld [vmem:[#allocation4 + $0x20] sm:$0xff] }
  0xd2   :  { %363 = vmatpush.msra.mxu2 %v340_v17  ;;  %v1392_v17 = vld [vmem:[#allocation7 + $0xe8] sm:$0xff] }
  0xd3   :  { %2049 = vset.pattern.permute.xlu2 %v2420_v8  ;;  %v2615_v48 = vpop.permute.xlu1 %634 }
  0xd4   :  { %364 = vmatpush.msra.mxu2 %v339_v22  ;;  %3338 = vst [vmem:[#allocation19_spill] sm:$0xff] %v2615_v48 }
  0xd6   :  { %365 = vmatpush.msra.mxu2 %v338_v23  ;;  %v2607_v41 = vpop.permute.xlu2 %671 }
  0xd9   :  { %2041 = vset.pattern.permute.xlu1 %v2465_v21 }
  0xdb   :  { %784 = vperm.xlu2 %2049, %v2541_v51  }
  0xe1   :  { %696 = vperm.xlu1 %2041, %v2499_v34  }
  0xe2   :  { %v2662_v1 = vpop.permute.xlu0 %702 }
  0xe3   :  { %2051 = vset.pattern.permute.xlu2 %v2479_v24 }
  0xe5   :  { %v2617_v49 = vpop.permute.xlu2 %715 }
  0xe9   :  { %2043 = vset.pattern.permute.xlu1 %v2479_v24 }
  0xeb   :  { %727 = vperm.xlu2 %2051, %v2486_v25   ;;  %v337_v25 = vld [vmem:[#allocation4 + $0x8] sm:$0xff] }
  0xec   :  { %366 = vmatpush.msra.mxu2 %v337_v25  ;;  %v1391_v25 = vld [vmem:[#allocation7 + $0xe0] sm:$0xff] }
  0xee   :  { %367 = vmatpush.msra.mxu2 %v336_v26  ;;  %v1406_v26 = vld [vmem:[#allocation7 + $0x158] sm:$0xff] }
  0xf1   :  { %677 = vperm.xlu1 %2043, %v2460_v20   ;;  %v410_v20 = vld [vmem:[%s3300_s7] sm:$0xf] }
  0xf2   :  { %1982 = vmatpush.msk.msrb.mxu0 %vm246_vm2, %v410_v20  ;;  %v1390_v20 = vld [vmem:[#allocation7 + $0xd8] sm:$0xff] }
  0xf3   :  { %2053 = vset.pattern.permute.xlu2 %v2465_v21  ;;  %1983 = vmatmul.msk.f32.vlgmr.msrb.gmra.mxu0 %vm411_vm14, %v160_v28  ;;  %v1405_v28 = vld [vmem:[#allocation7 + $0x150] sm:$0xff] }
  0xf4   :  { %1601 = vmatpush.msra.mxu0 %v1410_v9  ;;  %v1387_v9 = vld [vmem:[#allocation7 + $0xc0] sm:$0xff] }
  0xf5   :  { %v2622_v52 = vpop.permute.xlu2 %652 }
  0xf6   :  { %1602 = vmatpush.msra.mxu0 %v1409_v11 }
  0xf8   :  { %1603 = vmatpush.msra.mxu0 %v1408_v16 }
  0xf9   :  { %2045 = vset.pattern.permute.xlu1 %v2420_v8 }
  0xfa   :  { %1604 = vmatpush.msra.mxu0 %v1407_v18  ;;  %v1400_v18 = vld [vmem:[#allocation7 + $0x128] sm:$0xff] }
  0xfb   :  { %796 = vperm.xlu2 %2053, %v2541_v51   ;;  %1984 = vmatmul.msk.f32.gmra.mxu0 %vm411_vm14, %v161_v29 }
  0xfc   :  { %1605 = vmatpush.msra.mxu0 %v1406_v26 }
  0xfe   :  { %1606 = vmatpush.msra.mxu0 %v1405_v28 }
 0x101   :  { %759 = vperm.xlu1 %2045, %v2533_v47  }
 0x103   :  { %2054 = vset.pattern.permute.xlu2 %v2479_v24  ;;  %1985 = vmatmul.msk.f32.gmra.mxu0 %vm411_vm14, %v162_v31 }
 0x105   :  { %v2629_v54 = vpop.permute.xlu2 %734 }
 0x106   :  { %3340 = vst [vmem:[#allocation21_spill] sm:$0xff] %v2629_v54 }
 0x109   :  { %2048 = vset.pattern.permute.xlu1 %v2465_v21 }
 0x10b   :  { %802 = vperm.xlu2 %2054, %v2541_v51   ;;  %1986 = vmatmul.msk.f32.gmra.mxu0 %vm411_vm14, %v163_v33  ;;  %v1404_v33 = vld [vmem:[#allocation7 + $0x148] sm:$0xff] }
 0x10c   :  { %1607 = vmatpush.msra.mxu0 %v1404_v33 }
 0x111   :  { %746 = vperm.xlu1 %2048, %v2510_v40  }
 0x113   :  { %2058 = vset.pattern.permute.xlu2 %v2420_v8 }
 0x114   :  { %v267_v30 = vpop.f32.mrf.mxu0 }
 0x115   :  { %397 = vmatmul.f32.vlgmr.msra.gmra.mxu3 %v267_v30 }
 0x119   :  { %2050 = vset.pattern.permute.xlu1 %v2436_v12 }
 0x11b   :  { %834 = vperm.xlu2 %2058, %v829_v19  }
 0x11c   :  { %v270_v34 = vpop.f32.mrf.mxu0  ;;  %v308_v35 = vpop.f32.mrf.mxu1 }
 0x11d   :  { %368 = vmatmul.f32.vlgmr.msra.gmra.mxu2 %v308_v35  ;;  %400 = vmatmul.f32.gmra.mxu3 %v270_v34  ;;  %v1388_v35 = vld [vmem:[#allocation7 + $0xc8] sm:$0xff] }
 0x121   :  { %790 = vperm.xlu1 %2050, %v2541_v51   ;;  %v2620_v51 = vpop.permute.xlu1 %640 }
 0x123   :  { %859 = vperm.xlu2 %2058, %v2563_v27  }
 0x124   :  { %v273_v38 = vpop.f32.mrf.mxu0  ;;  %v311_v39 = vpop.f32.mrf.mxu1 }
 0x125   :  { %371 = vmatmul.f32.gmra.mxu2 %v311_v39  ;;  %403 = vmatmul.f32.gmra.mxu3 %v273_v38  ;;  %v1403_v38 = vld [vmem:[#allocation7 + $0x140] sm:$0xff] }
 0x126   :  { %1608 = vmatpush.msra.mxu0 %v1403_v38 }
 0x128   :  { %1609 = vmatpush.msra.mxu0 %v1402_v10  ;;  %v1398_v10 = vld [vmem:[#allocation7 + $0x118] sm:$0xff] }
 0x129   :  { %2052 = vset.pattern.permute.xlu1 %v2479_v24  ;;  %v2626_v53 = vpop.permute.xlu1 %659 }
 0x12a   :  { %3339 = vst [vmem:[#allocation20_spill] sm:$0xff] %v2626_v53 }
 0x12b   :  { %2061 = vset.pattern.permute.xlu2 %v2465_v21 }
 0x12c   :  { %v276_v44 = vpop.f32.mrf.mxu0  ;;  %v314_v46 = vpop.f32.mrf.mxu1 }
 0x12d   :  { %374 = vmatmul.f32.gmra.mxu2 %v314_v46  ;;  %406 = vmatmul.f32.gmra.mxu3 %v276_v44 }
 0x131   :  { %752 = vperm.xlu1 %2052, %v2510_v40   ;;  %v2631_v55 = vpop.permute.xlu1 %621  ;;  %v2635_v40 = vpop.permute.xlu2 %721 }
 0x133   :  { %846 = vperm.xlu2 %2061, %v829_v19  }
 0x134   :  { %v317_v50 = vpop.f32.mrf.mxu1 }
 0x135   :  { %377 = vmatmul.f32.gmra.mxu2 %v317_v50 }
 0x139   :  { %777 = vperm.xlu1 %2052, %v2533_v47   ;;  %v2637_v56 = vpop.permute.xlu1 %684  ;;  %v2639_v47 = vpop.permute.xlu2 %765 }
 0x13a   :  { %3341 = vst [vmem:[#allocation22_spill] sm:$0xff] %v2637_v56 }
 0x13b   :  { %2063 = vset.pattern.permute.xlu2 %v2436_v12  ;;  %3342 = vst [vmem:[#allocation23_spill] sm:$0xff] %v2639_v47 }
 0x141   :  { %2057 = vset.pattern.permute.xlu1 %v2436_v12  ;;  %v2641_v57 = vpop.permute.xlu1 %690  ;;  %v2645_v12 = vpop.permute.xlu2 %784 }
 0x142   :  { %3343 = vst [vmem:[#allocation24_spill] sm:$0xff] %v2645_v12 }
 0x143   :  { %890 = vperm.xlu2 %2063, %v879_v43  }
 0x149   :  { %815 = vperm.xlu1 %2057, %v2551_v63   ;;  %v2648_v58 = vpop.permute.xlu1 %709  ;;  %v2651_v59 = vpop.permute.xlu2 %727 }
 0x14a   :  { %3344 = vst [vmem:[#allocation25_spill] sm:$0xff] %v2648_v58 }
 0x14b   :  { %2065 = vset.pattern.permute.xlu2 %v2479_v24 }
 0x151   :  { %840 = vperm.xlu1 %2057, %v829_v19   ;;  %v2653_v60 = vpop.permute.xlu1 %627 }
 0x153   :  { %852 = vperm.xlu2 %2065, %v829_v19   ;;  %v1389_v19 = vld [vmem:[#allocation7 + $0xd0] sm:$0xff] }
 0x155   :  { %v2657_v62 = vpop.permute.xlu2 %796 }
 0x159   :  { %2060 = vset.pattern.permute.xlu1 %v2465_v21  ;;  %v2659_v0 = vpop.permute.xlu1 %696 }
 0x15b   :  { %877 = vperm.xlu2 %2065, %v2563_v27  }
 0x161   :  { %821 = vperm.xlu1 %2060, %v2551_v63  }
 0x163   :  { %v2666_v3 = vpop.permute.xlu1 %677 }
 0x165   :  { %v2664_v2 = vpop.permute.xlu2 %802 }
 0x166   :  { %3346 = vst [vmem:[#allocation27_spill] sm:$0xff] %v2664_v2 }
 0x169   :  { %2062 = vset.pattern.permute.xlu1 %v2420_v8  ;;  %v2669_v8 = vpop.permute.xlu0 %809 }
 0x16a   :  { %3347 = vst [vmem:[#allocation28_spill] sm:$0xff] %v2669_v8 }
 0x170   :  { %v444_v13 = vpop.f32.mrf.mxu0 }
 0x171   :  { %884 = vperm.xlu1 %2062, %v879_v43   ;;  %v2676_v6 = vpop.permute.xlu0 %740 }
 0x172   :  { %3349 = vst [vmem:[#allocation30_spill] sm:$0xff] %v2676_v6 }
 0x173   :  { %v2674_v5 = vpop.permute.xlu1 %759 }
 0x174   :  { %3348 = vst [vmem:[#allocation29_spill] sm:$0xff] %v2674_v5 }
 0x175   :  { %v2671_v4 = vpop.permute.xlu2 %834 }
 0x178   :  { %v447_v31 = vpop.f32.mrf.mxu0 }
 0x179   :  { %2064 = vset.pattern.permute.xlu1 %v2479_v24 }
 0x17d   :  { %v2678_v24 = vpop.permute.xlu2 %859 }
 0x181   :  { %827 = vperm.xlu1 %2064, %v2551_v63   ;;  %v2682_v63 = vpop.permute.xlu0 %865 }
 0x183   :  { %v2680_v7 = vpop.permute.xlu1 %746 }
 0x189   :  { %2066 = vset.pattern.permute.xlu1 %v2465_v21  ;;  %v1393_v21 = vld [vmem:[#allocation7 + $0xf0] sm:$0xff]  ;;  %v2688_v30 = vpop.permute.xlu0 %646 }
 0x18a   :  { %1579 = vmatpush.msrb.mxu3 %v1393_v21  ;;  %v1401_v21 = vld [vmem:[#allocation7 + $0x130] sm:$0xff] }
 0x18b   :  { %1610 = vmatpush.msra.mxu0 %v1401_v21 }
 0x18c   :  { %1580 = vmatpush.msrb.mxu3 %v1392_v17  ;;  %v1385_v17 = vld [vmem:[#allocation7 + $0xb0] sm:$0xff] }
 0x18d   :  { %v2684_v22 = vpop.permute.xlu2 %846  ;;  %1611 = vmatpush.msra.mxu0 %v1400_v18 }
 0x18e   :  { %1581 = vmatpush.msrb.mxu3 %v1391_v25 }
 0x190   :  { %1582 = vmatpush.msrb.mxu3 %v1390_v20 }
 0x191   :  { %896 = vperm.xlu1 %2066, %v879_v43   ;;  %v2693_v43 = vld [vmem:[%s3301_s8] ss:$0 sm:$0xff]  ;;  %v2705_v26 = vpop.permute.xlu0 %771 }
 0x192   :  { %1583 = vmatpush.msrb.mxu3 %v1389_v19  ;;  %v1399_v19 = vld [vmem:[#allocation7 + $0x120] sm:$0xff] }
 0x193   :  { %v2686_v23 = vpop.permute.xlu1 %790  ;;  %1612 = vmatpush.msra.mxu0 %v1399_v19  ;;  %v1382_v19 = vld [vmem:[#allocation7 + $0x98] sm:$0xff] }
 0x194   :  { %3350 = vst [vmem:[#allocation31_spill] sm:$0xff] %v2686_v23  ;;  %1584 = vmatpush.msrb.mxu3 %v1388_v35 }
 0x195   :  { %1613 = vmatpush.msra.mxu0 %v1398_v10  ;;  %v1381_v10 = vld [vmem:[#allocation7 + $0x90] sm:$0xff] }
 0x196   :  { %1585 = vmatpush.msrb.mxu3 %v1387_v9 }
 0x198   :  { %v398_v15 = vpop.f32.mrf.mxu3 }
 0x19d   :  { %v2695_v44 = vpop.permute.xlu2 %890 }
 0x19e   :  { %3351 = vst [vmem:[#allocation32_spill] sm:$0xff] %v2695_v44 }
 0x1a0   :  { %v369_v27 = vpop.f32.mrf.mxu2  ;;  %v401_v34 = vpop.f32.mrf.mxu3 }
 0x1a1   :  { %v399_v29 = vadd.f32 %v398_v15, %v369_v27  ;;  %v450_v27 = vpop.f32.mrf.mxu0 }
 0x1a3   :  { %v456_v39 = vadd.f32 %v444_v13, %v399_v29  ;;  %v2697_v50 = vpop.permute.xlu1 %752  ;;  %v1386_v13 = vld [vmem:[#allocation7 + $0xb8] sm:$0xff] }
 0x1a4   :  { %3352 = vst [vmem:[#allocation33_spill] sm:$0xff] %v2697_v50  ;;  %1586 = vmatpush.msrb.mxu3 %v1386_v13 }
 0x1a5   :  { %v2700_v15 = vadd.f32 %v2693_v43, %v456_v39 }
 0x1a6   :  { %1587 = vmatpush.msrb.mxu3 %v1385_v17 }
 0x1a7   :  { %v2709_v28 = vadd.f32 %v2678_v24, %v2700_v15  ;;  %v1100_v29 = vsub.f32 %v2678_v24, %v2700_v15  ;;  %v2721_v35 = vadd.f32 %v2669_v8, %v2700_v15  ;;  %v2727_v24 = vadd.f32 %v2671_v4, %v2700_v15 }
 0x1a8   :  { %v372_v46 = vpop.f32.mrf.mxu2  ;;  %v404_v20 = vpop.f32.mrf.mxu3  ;;  %v2733_v9 = vmul.f32 %v2700_v15, %v2700_v15  ;;  %v2741_v21 = vadd.f32 %v2615_v48, %v2700_v15  ;;  %v2749_v17 = vadd.f32 %v2637_v56, %v2700_v15  ;;  %v2765_v38 = vadd.f32 %v2674_v5, %v2700_v15  ;;  %v1395_v48 = vld [vmem:[#allocation7 + $0x100] sm:$0xff] }
 0x1a9   :  { %v402_v11 = vadd.f32 %v401_v34, %v372_v46  ;;  %3353 = vst [vmem:[#allocation34_spill] sm:$0xff] %v2721_v35  ;;  %v2769_v46 = vadd.f32 %v2645_v12, %v2700_v15  ;;  %v3367_v35 = vld [vmem:[#allocation28_spill] sm:$0xff] }
 0x1aa   :  { %3354 = vst [vmem:[#allocation35_spill] sm:$0xff] %v2733_v9  ;;  %v872_v9 = vpop.permute.xlu0 %871 }
 0x1ab   :  { %v457_v16 = vadd.f32 %v447_v31, %v402_v11  ;;  %v1384_v31 = vld [vmem:[#allocation7 + $0xa8] sm:$0xff]  ;;  %v2737_v11 = vadd.f32 %v2601_v37, %v2700_v15  ;;  %v2751_v18 = vpop.permute.xlu1 %777 }
 0x1ac   :  { %1588 = vmatpush.msrb.mxu3 %v1384_v31  ;;  %3355 = vst [vmem:[#allocation36_spill] sm:$0xff] %v2751_v18 }
 0x1ad   :  { %v2703_v25 = vadd.f32 %v2693_v43, %v457_v16  ;;  %v2745_v16 = vadd.f32 %v2626_v53, %v2700_v15  ;;  %v2753_v31 = vpop.permute.xlu2 %852 }
 0x1ae   :  { %3356 = vst [vmem:[#allocation37_spill] sm:$0xff] %v2753_v31 }
 0x1af   :  { %v2715_v33 = vadd.f32 %v2682_v63, %v2703_v25  ;;  %v1101_v34 = vsub.f32 %v2682_v63, %v2703_v25  ;;  %v1383_v63 = vld [vmem:[#allocation7 + $0xa0] sm:$0xff]  ;;  %v2779_v18 = vadd.f32 %v2609_v42, %v2703_v25  ;;  %v2799_v2 = vadd.f32 %v2676_v6, %v2703_v25 }
 0x1b0   :  { %v375_v39 = vpop.f32.mrf.mxu2  ;;  %1589 = vmatpush.msrb.mxu3 %v1383_v63  ;;  %v2761_v63 = vadd.f32 %v2629_v54, %v2700_v15  ;;  %v2803_v45 = vadd.f32 %v2639_v47, %v2703_v25  ;;  %v2812_v37 = vadd.f32 %v2686_v23, %v2703_v25  ;;  %v407_v50 = vpop.f32.mrf.mxu3 }
 0x1b1   :  { %v405_v13 = vadd.f32 %v404_v20, %v375_v39  ;;  %v1397_v20 = vld [vmem:[#allocation7 + $0x110] sm:$0xff]  ;;  %v2757_v39 = vadd.f32 %v2648_v58, %v2700_v15  ;;  %v1042_v8 = vmax.f32 %v2709_v28, %v2715_v33  ;;  %v1198_v56 = vmax.f32 %v1100_v29, %v1101_v34 }
 0x1b2   :  { %1590 = vmatpush.msrb.mxu3 %v1382_v19  ;;  %1614 = vmatpush.msra.mxu0 %v1397_v20  ;;  %v2791_v19 = vadd.f32 %v2641_v57, %v2703_v25  ;;  %v2795_v20 = vadd.f32 %v2617_v49, %v2703_v25  ;;  %v952_v47 = vmax.f32 %v2737_v11, %v2779_v18 }
 0x1b3   :  { %v458_v44 = vadd.f32 %v450_v27, %v405_v13  ;;  %v2783_v27 = vadd.f32 %v2620_v51, %v2703_v25  ;;  %v2787_v13 = vadd.f32 %v2599_v36, %v2703_v25 }
 0x1b4   :  { %1591 = vmatpush.msrb.mxu3 %v1381_v10  ;;  %1615 = vmatpush.msra.mxu0 %v1396_v61  ;;  %v1380_v10 = vld [vmem:[#allocation7 + $0x88] sm:$0xff]  ;;  %v2822_v61 = vmul.f32 %v2703_v25, %v2703_v25  ;;  %v979_v29 = vmax.f32 %v2749_v17, %v2791_v19  ;;  %v988_v34 = vmax.f32 %v2757_v39, %v2795_v20 }
 0x1b5   :  { %v2808_v53 = vadd.f32 %v2693_v43, %v458_v44  ;;  %v453_v44 = vpop.f32.mrf.mxu0  ;;  %v961_v12 = vmax.f32 %v2741_v21, %v2783_v27  ;;  %v970_v28 = vmax.f32 %v2745_v16, %v2787_v13 }
 0x1b6   :  { %1592 = vmatpush.msrb.mxu3 %v1380_v10  ;;  %1616 = vmatpush.msra.mxu0 %v1395_v48  ;;  %v997_v10 = vmax.f32 %v2761_v63, %v2799_v2  ;;  %v1006_v48 = vmax.f32 %v2765_v38, %v2803_v45 }
 0x1b7   :  { %v946_v11 = vadd.f32 %v872_v9, %v2808_v53  ;;  %v1102_v21 = vsub.f32 %v872_v9, %v2808_v53  ;;  %v906_v9 = vadd.f32 %v2631_v55, %v2808_v53  ;;  %v910_v39 = vadd.f32 %v2688_v30, %v2808_v53 }
 0x1b8   :  { %v378_v31 = vpop.f32.mrf.mxu2  ;;  %v2867_v19 = vadd.f32 %v2684_v22, %v2808_v53  ;;  %v1098_v20 = vsub.f32 %v2684_v22, %v2808_v53  ;;  %v918_v63 = vadd.f32 %v2659_v0, %v2808_v53  ;;  %v922_v27 = vadd.f32 %v2635_v40, %v2808_v53 }
 0x1b9   :  { %v408_v33 = vadd.f32 %v407_v50, %v378_v31  ;;  %v878_v31 = vpop.permute.xlu2 %877  ;;  %v1199_v23 = vmax.f32 %v1198_v56, %v1102_v21  ;;  %v926_v22 = vadd.f32 %v2680_v7, %v2808_v53  ;;  %v930_v45 = vadd.f32 %v2705_v26, %v2808_v53 }
 0x1ba   :  { %v539_v56 = vmul.f32 %v2808_v53, %v2808_v53  ;;  %v962_v21 = vmax.f32 %v961_v12, %v910_v39  ;;  %v980_v12 = vmax.f32 %v979_v29, %v918_v63  ;;  %v989_v39 = vmax.f32 %v988_v34, %v922_v27 }
 0x1bb   :  { %v459_v50 = vadd.f32 %v453_v44, %v408_v33  ;;  %v2852_v38 = vpop.permute.xlu1 %815  ;;  %v914_v44 = vadd.f32 %v2607_v41, %v2808_v53  ;;  %v1043_v33 = vmax.f32 %v1042_v8, %v946_v11  ;;  %v934_v8 = vadd.f32 %v2657_v62, %v2808_v53 }
 0x1bc   :  { %v953_v11 = vmax.f32 %v952_v47, %v906_v9  ;;  %v1379_v9 = vld [vmem:[#allocation7 + $0x80] sm:$0xff]  ;;  %v1093_v29 = vsub.f32 %v2852_v38, %v2703_v25  ;;  %v3360_v27 = vmax.f32 %v2769_v46, %v2812_v37 }
 0x1bd   :  { %v2863_v13 = vadd.f32 %v2693_v43, %v459_v50  ;;  %v971_v17 = vmax.f32 %v970_v28, %v914_v44  ;;  %1593 = vmatpush.msrb.mxu3 %v1379_v9  ;;  %v2909_v28 = vadd.f32 %v2852_v38, %v2703_v25  ;;  %v3361_v37 = vld [vmem:[#allocation37_spill] sm:$0xff] }
 0x1bf   :  { %v947_v43 = vadd.f32 %v878_v31, %v2863_v13  ;;  %v1103_v50 = vsub.f32 %v878_v31, %v2863_v13  ;;  %526 = vmatpush.msrb.mxu1 %v2863_v13  ;;  %v907_v31 = vadd.f32 %v2653_v60, %v2863_v13  ;;  %v911_v16 = vadd.f32 %v2622_v52, %v2863_v13 }
 0x1c0   :  { %v915_v5 = vadd.f32 %v2666_v3, %v2863_v13  ;;  %v919_v47 = vadd.f32 %v2662_v1, %v2863_v13  ;;  %3358 = vst [vmem:[#allocation39_spill] sm:$0xff] %v2909_v28  ;;  %v540_v34 = vmul.f32 %v2863_v13, %v2863_v13  ;;  %v943_v46 = vadd.f32 %v3361_v37, %v2863_v13 }
 0x1c1   :  { %v2888_v2 = vmax.f32 %v1043_v33, %v947_v43  ;;  %v2890_v18 = vmax.f32 %v1199_v23, %v1103_v50  ;;  %527 = vmatpush.msrb.mxu1 %v2808_v53  ;;  %v2902_v23 = vmax.f32 %v2591_v32, 1.0  ;;  %v998_v33 = vmax.f32 %v997_v10, %v926_v22 }
 0x1c2   :  { %v2905_v43 = vmax.f32 %v1006_v48, %v930_v45  ;;  %v954_v50 = vmax.f32 %v953_v11, %v907_v31  ;;  %v963_v54 = vmax.f32 %v962_v21, %v911_v16  ;;  %v972_v6 = vmax.f32 %v971_v17, %v915_v5 }
 0x1c3   :  { %3357 = vst [vmem:[#allocation38_spill] sm:$0xff] %v2902_v23  ;;  %528 = vmatpush.msrb.mxu1 %v2703_v25  ;;  %v841_v44 = vpop.permute.xlu1 %840  ;;  %v981_v16 = vmax.f32 %v980_v12, %v919_v47  ;;  %v3359_v17 = vsub.f32 %v2671_v4, %v2700_v15  ;;  %v1016_v22 = vmax.f32 %v3360_v27, %v934_v8  ;;  %v3366_v27 = vld [vmem:[#allocation17_spill] sm:$0xff] }
 0x1c4   :  { %v941_v63 = vadd.f32 %v841_v44, %v2703_v25  ;;  %v1097_v23 = vsub.f32 %v841_v44, %v2703_v25  ;;  %v955_v10 = vrot.slane %v954_v50, 4  ;;  %v964_v48 = vrot.slane %v963_v54, 4 }
 0x1c5   :  { %529 = vmatpush.msrb.mxu1 %v2700_v15  ;;  %v973_v45 = vrot.slane %v972_v6, 4  ;;  %v982_v9 = vrot.slane %v981_v16, 4 }
 0x1c6   :  { %1987 = vmatmul.msk.f32.vlgmr.msrb.gmra.mxu1 %vm468_vm1, %v2439_v14  ;;  %v1033_v5 = vmax.f32 %v2727_v24, %v941_v63  ;;  %v1189_v38 = vmax.f32 %v3359_v17, %v1097_v23  ;;  %v956_v11 = vmax.f32 %v954_v50, %v955_v10  ;;  %v965_v21 = vmax.f32 %v963_v54, %v964_v48 }
 0x1c7   :  { %553 = vmatpush.msra.mxu1 %v540_v34  ;;  %v974_v31 = vmax.f32 %v972_v6, %v973_v45  ;;  %v923_v24 = vadd.f32 %v2651_v59, %v2863_v13  ;;  %v983_v63 = vmax.f32 %v981_v16, %v982_v9  ;;  %v1099_v6 = vsub.f32 %v3361_v37, %v2863_v13  ;;  %v3363_v45 = vld [vmem:[#allocation35_spill] sm:$0xff]  ;;  %v3364_v16 = vld [vmem:[#allocation36_spill] sm:$0xff] }
 0x1c8   :  { %v1190_v47 = vmax.f32 %v1189_v38, %v1098_v20  ;;  %v957_v4 = vrot.slane %v956_v11, 2  ;;  %v966_v12 = vrot.slane %v965_v21, 2  ;;  %v1034_v54 = vmax.f32 %v1033_v5, %v2867_v19  ;;  %v3362_v20 = vld [vmem:[#allocation33_spill] sm:$0xff]  ;;  %v3365_v19 = vld [vmem:[#allocation27_spill] sm:$0xff] }
 0x1c9   :  { %554 = vmatpush.msra.mxu1 %v539_v56  ;;  %v975_v23 = vrot.slane %v974_v31, 2  ;;  %v927_v56 = vadd.f32 %v3362_v20, %v2863_v13  ;;  %v984_v10 = vrot.slane %v983_v63, 2  ;;  %v931_v17 = vadd.f32 %v3364_v16, %v2863_v13 }
 0x1ca   :  { %v958_v8 = vmax.f32 %v956_v11, %v957_v4  ;;  %v967_v50 = vmax.f32 %v965_v21, %v966_v12  ;;  %v1191_v48 = vmax.f32 %v1190_v47, %v1099_v6  ;;  %v935_v5 = vadd.f32 %v3365_v19, %v2863_v13 }
 0x1cb   :  { %555 = vmatpush.msra.mxu1 %v2822_v61  ;;  %v976_v34 = vmax.f32 %v974_v31, %v975_v23  ;;  %v990_v38 = vmax.f32 %v989_v39, %v923_v24  ;;  %v985_v21 = vmax.f32 %v983_v63, %v984_v10  ;;  %v1045_v31 = vrot.slane %v2888_v2, 4 }
 0x1cc   :  { %v959_v61 = vrot.slane %v958_v8, 1  ;;  %v968_v9 = vrot.slane %v967_v50, 1  ;;  %v1201_v47 = vrot.slane %v2890_v18, 4  ;;  %v999_v12 = vmax.f32 %v998_v33, %v927_v56 }
 0x1cd   :  { %556 = vmatpush.msra.mxu1 %v3363_v45  ;;  %v977_v11 = vrot.slane %v976_v34, 1  ;;  %v991_v4 = vrot.slane %v990_v38, 4  ;;  %v2948_v23 = vmax.f32 %v1034_v54, %v943_v46  ;;  %v1192_v39 = vrot.slane %v1191_v48, 4 }
 0x1ce   :  { %1988 = vmatmul.msk.f32.gmra.mxu1 %vm468_vm1, %v3366_v27  ;;  %v960_v37 = vmax.f32 %v958_v8, %v959_v61  ;;  %v969_v6 = vmax.f32 %v967_v50, %v968_v9  ;;  %v986_v24 = vrot.slane %v985_v21, 1  ;;  %v1000_v28 = vrot.slane %v999_v12, 4 }
 0x1cf   :  { %v978_v45 = vmax.f32 %v976_v34, %v977_v11  ;;  %v992_v44 = vmax.f32 %v990_v38, %v991_v4  ;;  %v3368_v19 = vsub.f32 %v3367_v35, %v2700_v15  ;;  %v1008_v10 = vmax.f32 %v2905_v43, %v931_v17 }
 0x1d0   :  { %v1017_v58 = vmax.f32 %v1016_v22, %v935_v5  ;;  %v1247_v33 = vsel %vm1246_vm15, %v969_v6, %v960_v37  ;;  %v2958_v46 = vmax.f32 %v2888_v2, %v1045_v31  ;;  %v2961_v54 = vmax.f32 %v2890_v18, %v1201_v47 }
 0x1d1   :  { %v2953_v63 = vmax.f32 %v3368_v19, %v1093_v29  ;;  %v993_v56 = vrot.slane %v992_v44, 2  ;;  %v1001_v8 = vmax.f32 %v999_v12, %v1000_v28  ;;  %v1036_v50 = vrot.slane %v2948_v23, 4 }
 0x1d2   :  { %v1009_v35 = vrot.slane %v1008_v10, 4  ;;  %v1018_v29 = vrot.slane %v1017_v58, 4  ;;  %v1249_v19 = vsel %vm1248_vm0, %v978_v45, %v1247_v33  ;;  %v2967_v43 = vmax.f32 %v1191_v48, %v1192_v39  ;;  %v1474_v33 = vld [vmem:[#allocation7 + $0x378] sm:$0xff] }
 0x1d3   :  { %v2964_v34 = vpop.permute.xlu1 %821  ;;  %v987_v22 = vmax.f32 %v985_v21, %v986_v24  ;;  %v994_v17 = vmax.f32 %v992_v44, %v993_v56  ;;  %v1002_v5 = vrot.slane %v1001_v8, 2  ;;  %v1066_v12 = vsub.f32 %v2688_v30, %v2808_v53  ;;  %1693 = vmatpush.msrb.mxu0 %v1474_v33 }
 0x1d4   :  { %v2971_v2 = vadd.f32 %v2964_v34, %v2808_v53  ;;  %v1010_v18 = vmax.f32 %v1008_v10, %v1009_v35  ;;  %v1019_v28 = vmax.f32 %v1017_v58, %v1018_v29  ;;  %v1094_v38 = vsub.f32 %v2964_v34, %v2808_v53 }
 0x1d5   :  { %v995_v61 = vrot.slane %v994_v17, 1  ;;  %v1003_v9 = vmax.f32 %v1001_v8, %v1002_v5  ;;  %v1251_v48 = vsel %vm1250_vm3, %v987_v22, %v1249_v19  ;;  %v1063_v58 = vsub.f32 %v2653_v60, %v2863_v13  ;;  %v3371_v22 = vld [vmem:[#allocation31_spill] sm:$0xff] }
 0x1d6   :  { %1989 = vmatmul.msk.f32.vlgmr.msra.gmra.mxu1 %vm468_vm1, %v2439_v14  ;;  %v1011_v11 = vrot.slane %v1010_v18, 2  ;;  %v1020_v44 = vrot.slane %v1019_v28, 2  ;;  %v1062_v14 = vsub.f32 %v2631_v55, %v2808_v53  ;;  %v1067_v37 = vsub.f32 %v2622_v52, %v2863_v13 }
 0x1d7   :  { %v996_v21 = vmax.f32 %v994_v17, %v995_v61  ;;  %v1004_v31 = vrot.slane %v1003_v9, 1  ;;  %v1070_v39 = vsub.f32 %v2607_v41, %v2808_v53  ;;  %v1071_v55 = vsub.f32 %v2666_v3, %v2863_v13  ;;  %v3376_v61 = vld [vmem:[#allocation19_spill] sm:$0xff] }
 0x1d8   :  { %v1012_v47 = vmax.f32 %v1010_v18, %v1011_v11  ;;  %v1021_v4 = vmax.f32 %v1019_v28, %v1020_v44  ;;  %v1074_v60 = vsub.f32 %v2659_v0, %v2808_v53  ;;  %v1075_v30 = vsub.f32 %v2662_v1, %v2863_v13  ;;  %v3369_v1 = vld [vmem:[#allocation23_spill] sm:$0xff]  ;;  %v3373_v18 = vld [vmem:[#allocation18_spill] sm:$0xff]  ;;  %v3379_v44 = vld [vmem:[#allocation20_spill] sm:$0xff] }
 0x1d9   :  { %v1005_v6 = vmax.f32 %v1003_v9, %v1004_v31  ;;  %v1253_v45 = vsel %vm1252_vm4, %v996_v21, %v1251_v48  ;;  %v1078_v56 = vsub.f32 %v2635_v40, %v2808_v53  ;;  %v1079_v41 = vsub.f32 %v2651_v59, %v2863_v13 }
 0x1da   :  { %v1013_v24 = vrot.slane %v1012_v47, 1  ;;  %v1022_v10 = vrot.slane %v1021_v4, 1  ;;  %v1082_v3 = vsub.f32 %v2680_v7, %v2808_v53  ;;  %v1083_v0 = vsub.f32 %v3362_v20, %v2863_v13  ;;  %v3370_v7 = vld [vmem:[#allocation24_spill] sm:$0xff] }
 0x1db   :  { %v1255_v52 = vsel %vm1254_vm5, %v1005_v6, %v1253_v45  ;;  %v1085_v29 = vsub.f32 %v3369_v1, %v2703_v25  ;;  %v1086_v40 = vsub.f32 %v2705_v26, %v2808_v53  ;;  %v1087_v59 = vsub.f32 %v3364_v16, %v2863_v13  ;;  %v3385_v45 = vld [vmem:[#allocation25_spill] sm:$0xff] }
 0x1dc   :  { %v1014_v8 = vmax.f32 %v1012_v47, %v1013_v24  ;;  %v1023_v35 = vmax.f32 %v1021_v4, %v1022_v10  ;;  %v1088_v19 = vsub.f32 %v3370_v7, %v2700_v15  ;;  %v1089_v17 = vsub.f32 %v3371_v22, %v2703_v25  ;;  %v3382_v47 = vld [vmem:[#allocation22_spill] sm:$0xff]  ;;  %v3390_v1 = vld [vmem:[#allocation21_spill] sm:$0xff] }
 0x1dd   :  { %v1090_v5 = vsub.f32 %v2657_v62, %v2808_v53  ;;  %v3374_v26 = vsub.f32 %v3373_v18, %v2700_v15  ;;  %v3375_v16 = vsub.f32 %v2620_v51, %v2703_v25  ;;  %v3377_v9 = vsub.f32 %v3376_v61, %v2700_v15  ;;  %v3392_v18 = vld [vmem:[#allocation29_spill] sm:$0xff] }
 0x1de   :  { %1990 = vmatmul.msk.f32.gmra.mxu1 %vm468_vm1, %v3366_v27  ;;  %v1257_v20 = vsel %vm1256_vm6, %v1014_v8, %v1255_v52  ;;  %v3372_v27 = vsub.f32 %v2609_v42, %v2703_v25  ;;  %v3378_v62 = vsub.f32 %v2599_v36, %v2703_v25  ;;  %v3380_v42 = vsub.f32 %v3379_v44, %v2700_v15  ;;  %v3387_v36 = vld [vmem:[#allocation27_spill] sm:$0xff]  ;;  %v3388_v8 = vld [vmem:[#allocation30_spill] sm:$0xff] }
 0x1df   :  { %v1117_v48 = vmax.f32 %v3377_v9, %v3375_v16  ;;  %v3033_v11 = vsel %vm1258_vm7, %v1023_v35, %v1257_v20  ;;  %v3381_v31 = vsub.f32 %v2641_v57, %v2703_v25  ;;  %v3383_v51 = vsub.f32 %v3382_v47, %v2700_v15 }
 0x1e0   :  { %v1108_v28 = vmax.f32 %v3374_v26, %v3372_v27  ;;  %v1126_v21 = vmax.f32 %v3380_v42, %v3378_v62  ;;  %v3384_v6 = vsub.f32 %v2617_v49, %v2703_v25  ;;  %v3386_v24 = vsub.f32 %v3385_v45, %v2700_v15  ;;  %1995 = vmatmul.msk.f32.vlgmr.msra.gmra.mxu0 %vm1228_vm8, %v3033_v11 }
 0x1e1   :  { %v1135_v4 = vmax.f32 %v3383_v51, %v3381_v31  ;;  %v1091_v33 = vsub.f32 %v3387_v36, %v2863_v13  ;;  %v1118_v57 = vmax.f32 %v1117_v48, %v1066_v12  ;;  %v3389_v35 = vsub.f32 %v3388_v8, %v2703_v25 }
 0x1e2   :  { %v1144_v10 = vmax.f32 %v3386_v24, %v3384_v6  ;;  %v1109_v52 = vmax.f32 %v1108_v28, %v1062_v14  ;;  %v3391_v7 = vsub.f32 %v3390_v1, %v2700_v15  ;;  %v1127_v22 = vmax.f32 %v1126_v21, %v1070_v39  ;;  %v1458_v6 = vld [vmem:[#allocation7 + $0x2f8] sm:$0xff]  ;;  %v1473_v39 = vld [vmem:[#allocation7 + $0x370] sm:$0xff] }
 0x1e3   :  { %v1136_v20 = vmax.f32 %v1135_v4, %v1074_v60  ;;  %v3393_v26 = vsub.f32 %v3392_v18, %v2700_v15  ;;  %v1119_v9 = vmax.f32 %v1118_v57, %v1067_v37  ;;  %v1171_v44 = vmax.f32 %v1088_v19, %v1089_v17  ;;  %v1457_v60 = vld [vmem:[#allocation7 + $0x2f0] sm:$0xff]  ;;  %1670 = vmatpush.msra.mxu3 %v1458_v6 }
 0x1e4   :  { %v1153_v49 = vmax.f32 %v3391_v7, %v3389_v35  ;;  %v1145_v27 = vmax.f32 %v1144_v10, %v1078_v56  ;;  %v1110_v61 = vmax.f32 %v1109_v52, %v1063_v58  ;;  %v1128_v14 = vmax.f32 %v1127_v22, %v1071_v55  ;;  %1694 = vmatpush.msrb.mxu0 %v1473_v39  ;;  %v1472_v58 = vld [vmem:[#allocation7 + $0x368] sm:$0xff]  ;;  %v1470_v52 = vld [vmem:[#allocation7 + $0x358] sm:$0xff]  ;;  %v1469_v18 = vld [vmem:[#allocation7 + $0x350] sm:$0xff] }
 0x1e5   :  { %v1162_v16 = vmax.f32 %v3393_v26, %v1085_v29  ;;  %v1137_v12 = vmax.f32 %v1136_v20, %v1075_v30  ;;  %v1120_v31 = vrot.slane %v1119_v9, 4  ;;  %v1172_v51 = vmax.f32 %v1171_v44, %v1090_v5  ;;  %v1471_v29 = vld [vmem:[#allocation7 + $0x360] sm:$0xff]  ;;  %1671 = vmatpush.msra.mxu3 %v1457_v60  ;;  %v3067_v20 = vpop.permute.xlu1 %884 }
 0x1e6   :  { %v1154_v62 = vmax.f32 %v1153_v49, %v1082_v3  ;;  %v1146_v28 = vmax.f32 %v1145_v27, %v1079_v41  ;;  %v1111_v42 = vrot.slane %v1110_v61, 4  ;;  %v1129_v56 = vrot.slane %v1128_v14, 4  ;;  %v1456_v41 = vld [vmem:[#allocation7 + $0x2e8] sm:$0xff]  ;;  %1695 = vmatpush.msrb.mxu0 %v1472_v58  ;;  %v1454_v27 = vld [vmem:[#allocation7 + $0x2d8] sm:$0xff] }
 0x1e7   :  { %v1163_v48 = vmax.f32 %v1162_v16, %v1086_v40  ;;  %v1138_v21 = vrot.slane %v1137_v12, 4  ;;  %v1121_v3 = vmax.f32 %v1119_v9, %v1120_v31  ;;  %v1173_v30 = vmax.f32 %v1172_v51, %v1091_v33  ;;  %1672 = vmatpush.msra.mxu3 %v1456_v41 }
 0x1e8   :  { %v1155_v47 = vmax.f32 %v1154_v62, %v1083_v0  ;;  %v1147_v4 = vrot.slane %v1146_v28, 4  ;;  %v1112_v37 = vmax.f32 %v1110_v61, %v1111_v42  ;;  %v1130_v40 = vmax.f32 %v1128_v14, %v1129_v56  ;;  %1696 = vmatpush.msrb.mxu0 %v1471_v29 }
 0x1e9   :  { %v1164_v45 = vmax.f32 %v1163_v48, %v1087_v59  ;;  %v1139_v19 = vmax.f32 %v1137_v12, %v1138_v21  ;;  %v1122_v24 = vrot.slane %v1121_v3, 2  ;;  %v1174_v36 = vrot.slane %v1173_v30, 4  ;;  %v1455_v59 = vld [vmem:[#allocation7 + $0x2e0] sm:$0xff]  ;;  %v1468_v48 = vld [vmem:[#allocation7 + $0x348] sm:$0xff] }
 0x1ea   :  { %v1156_v55 = vrot.slane %v1155_v47, 4  ;;  %v1148_v0 = vmax.f32 %v1146_v28, %v1147_v4  ;;  %v1113_v5 = vrot.slane %v1112_v37, 2  ;;  %v1131_v57 = vrot.slane %v1130_v40, 2  ;;  %1673 = vmatpush.msra.mxu3 %v1455_v59  ;;  %1697 = vmatpush.msrb.mxu0 %v1470_v52  ;;  %v1453_v28 = vld [vmem:[#allocation7 + $0x2d0] sm:$0xff]  ;;  %v1452_v21 = vld [vmem:[#allocation7 + $0x2c8] sm:$0xff]  ;;  %v1467_v4 = vld [vmem:[#allocation7 + $0x340] sm:$0xff] }
 0x1eb   :  { %v1165_v17 = vrot.slane %v1164_v45, 4  ;;  %v1140_v8 = vrot.slane %v1139_v19, 2  ;;  %v1123_v7 = vmax.f32 %v1121_v3, %v1122_v24  ;;  %v1175_v22 = vmax.f32 %v1173_v30, %v1174_v36 }
 0x1ec   :  { %v1157_v10 = vmax.f32 %v1155_v47, %v1156_v55  ;;  %v1149_v35 = vrot.slane %v1148_v0, 2  ;;  %v1114_v33 = vmax.f32 %v1112_v37, %v1113_v5  ;;  %v1132_v26 = vmax.f32 %v1130_v40, %v1131_v57  ;;  %1674 = vmatpush.msra.mxu3 %v1454_v27  ;;  %1698 = vmatpush.msrb.mxu0 %v1469_v18  ;;  %v1451_v40 = vld [vmem:[#allocation7 + $0x2c0] sm:$0xff] }
 0x1ed   :  { %v1166_v1 = vmax.f32 %v1164_v45, %v1165_v17  ;;  %v1141_v16 = vmax.f32 %v1139_v19, %v1140_v8  ;;  %v1124_v44 = vrot.slane %v1123_v7, 1  ;;  %v1176_v12 = vrot.slane %v1175_v22, 2  ;;  %v1466_v19 = vld [vmem:[#allocation7 + $0x338] sm:$0xff] }
 0x1ee   :  { %v1158_v49 = vrot.slane %v1157_v10, 2  ;;  %v1150_v61 = vmax.f32 %v1148_v0, %v1149_v35  ;;  %v1115_v62 = vrot.slane %v1114_v33, 1  ;;  %v1133_v42 = vrot.slane %v1132_v26, 1  ;;  %1675 = vmatpush.msra.mxu3 %v1453_v28  ;;  %1699 = vmatpush.msrb.mxu0 %v1468_v48  ;;  %v1450_v35 = vld [vmem:[#allocation7 + $0x2b8] sm:$0xff] }
 0x1ef   :  { %v1167_v9 = vrot.slane %v1166_v1, 2  ;;  %v1142_v31 = vrot.slane %v1141_v16, 1  ;;  %v1125_v39 = vmax.f32 %v1123_v7, %v1124_v44  ;;  %v1177_v56 = vmax.f32 %v1175_v22, %v1176_v12  ;;  %v3394_v7 = vld [vmem:[#allocation34_spill] sm:$0xff] }
 0x1f0   :  { %v1159_v14 = vmax.f32 %v1157_v10, %v1158_v49  ;;  %v1151_v47 = vrot.slane %v1150_v61, 1  ;;  %v1116_v6 = vmax.f32 %v1114_v33, %v1115_v62  ;;  %v1134_v45 = vmax.f32 %v1132_v26, %v1133_v42  ;;  %1676 = vmatpush.msra.mxu3 %v1452_v21  ;;  %1700 = vmatpush.msrb.mxu0 %v1467_v4  ;;  %v1378_v10 = vld [vmem:[#allocation7 + $0x78] sm:$0xff]  ;;  %v1377_v33 = vld [vmem:[#allocation7 + $0x70] sm:$0xff]  ;;  %v1376_v26 = vld [vmem:[#allocation7 + $0x68] sm:$0xff] }
 0x1f1   :  { %v1168_v51 = vmax.f32 %v1166_v1, %v1167_v9  ;;  %v1143_v58 = vmax.f32 %v1141_v16, %v1142_v31  ;;  %v1178_v30 = vrot.slane %v1177_v56, 1  ;;  %v1217_v29 = vsub.f32 0.0, %v1125_v39  ;;  %v1465_v1 = vld [vmem:[#allocation7 + $0x330] sm:$0xff]  ;;  %1555 = vmatpush.msrb.mxu2 %v1378_v10  ;;  %v1375_v42 = vld [vmem:[#allocation7 + $0x60] sm:$0xff]  ;;  %v1448_v39 = vld [vmem:[#allocation7 + $0x2a8] sm:$0xff] }
 0x1f2   :  { %v1160_v60 = vrot.slane %v1159_v14, 1  ;;  %v1152_v37 = vmax.f32 %v1150_v61, %v1151_v47  ;;  %v1216_v41 = vsub.f32 0.0, %v1116_v6  ;;  %v1203_v0 = vrot.slane %v2961_v54, 2  ;;  %v3395_v49 = vld [vmem:[#allocation39_spill] sm:$0xff]  ;;  %1677 = vmatpush.msra.mxu3 %v1451_v40  ;;  %1701 = vmatpush.msrb.mxu0 %v1466_v19  ;;  %v1463_v47 = vld [vmem:[#allocation7 + $0x320] sm:$0xff]  ;;  %v1460_v10 = vld [vmem:[#allocation7 + $0x308] sm:$0xff] }
 0x1f3   :  { %v1169_v3 = vrot.slane %v1168_v51, 1  ;;  %v1037_v17 = vmax.f32 %v2948_v23, %v1036_v50  ;;  %v1218_v24 = vsub.f32 0.0, %v1134_v45  ;;  %v1194_v36 = vrot.slane %v2967_v43, 2  ;;  %v828_v8 = vpop.permute.xlu1 %827  ;;  %v1449_v44 = vld [vmem:[#allocation7 + $0x2b0] sm:$0xff]  ;;  %1556 = vmatpush.msrb.mxu2 %v1377_v33 }
 0x1f4   :  { %v1161_v55 = vmax.f32 %v1159_v14, %v1160_v60  ;;  %v1179_v59 = vmax.f32 %v1177_v56, %v1178_v30  ;;  %v1219_v52 = vsub.f32 0.0, %v1143_v58  ;;  %v1279_v57 = vsel %vm1246_vm15, %v1217_v29, %v1216_v41  ;;  %1678 = vmatpush.msra.mxu3 %v1450_v35  ;;  %1702 = vmatpush.msrb.mxu0 %v1465_v1  ;;  %v1374_v60 = vld [vmem:[#allocation7 + $0x58] sm:$0xff]  ;;  %v3397_v56 = vld [vmem:[#allocation38_spill] sm:$0xff]  ;;  %v1447_v29 = vld [vmem:[#allocation7 + $0x2a0] sm:$0xff] }
 0x1f5   :  { %v1170_v5 = vmax.f32 %v1168_v51, %v1169_v3  ;;  %v3396_v23 = vmax.f32 %v3394_v7, %v3395_v49  ;;  %v1220_v22 = vsub.f32 0.0, %v1152_v37  ;;  %v1280_v27 = vsel %vm1248_vm0, %v1218_v24, %v1279_v57  ;;  %1557 = vmatpush.msrb.mxu2 %v1376_v26  ;;  %v1462_v37 = vld [vmem:[#allocation7 + $0x318] sm:$0xff]  ;;  %v1373_v40 = vld [vmem:[#allocation7 + $0x50] sm:$0xff] }
 0x1f6   :  { %v939_v18 = vadd.f32 %v828_v8, %v2863_v13  ;;  %v1181_v16 = vmax.f32 %v2953_v63, %v1094_v38  ;;  %v1221_v61 = vsub.f32 0.0, %v1161_v55  ;;  %v1281_v9 = vsel %vm1250_vm3, %v1219_v52, %v1280_v27  ;;  %1679 = vmatpush.msra.mxu3 %v1449_v44  ;;  %v1445_v57 = vld [vmem:[#allocation7 + $0x290] sm:$0xff]  ;;  %v1444_v27 = vld [vmem:[#allocation7 + $0x288] sm:$0xff]  ;;  %v3399_v26 = vld [vmem:[#allocation32_spill] sm:$0xff] }
 0x1f7   :  { %v1025_v50 = vmax.f32 %v3396_v23, %v2971_v2  ;;  %v1095_v62 = vsub.f32 %v828_v8, %v2863_v13  ;;  %v1464_v2 = vld [vmem:[#allocation7 + $0x328] sm:$0xff]  ;;  %v1038_v14 = vrot.slane %v1037_v17, 2  ;;  %v1222_v12 = vsub.f32 0.0, %v1170_v5  ;;  %1558 = vmatpush.msrb.mxu2 %v1375_v42  ;;  %v1461_v5 = vld [vmem:[#allocation7 + $0x310] sm:$0xff]  ;;  %v1371_v8 = vld [vmem:[#allocation7 + $0x40] sm:$0xff] }
 0x1f8   :  { %v1282_v28 = vsel %vm1252_vm4, %v1220_v22, %v1281_v9  ;;  %v1047_v34 = vrot.slane %v2958_v46, 2  ;;  %v1223_v31 = vsub.f32 0.0, %v1179_v59  ;;  %1703 = vmatpush.msrb.mxu0 %v1464_v2  ;;  %v1293_v21 = vadd.f32 1.0, %v3397_v56  ;;  %1680 = vmatpush.msra.mxu3 %v1448_v39  ;;  %v3398_v35 = vld [vmem:[#allocation26_spill] sm:$0xff]  ;;  %v1459_v23 = vld [vmem:[#allocation7 + $0x300] sm:$0xff]  ;;  %v1370_v9 = vld [vmem:[#allocation7 + $0x38] sm:$0xff] }
 0x1f9   :  { %v1026_v48 = vmax.f32 %v1025_v50, %v939_v18  ;;  %v1283_v63 = vsel %vm1254_vm5, %v1221_v61, %v1282_v28  ;;  %v1182_v38 = vmax.f32 %v1181_v16, %v1095_v62  ;;  %v1195_v4 = vmax.f32 %v2967_v43, %v1194_v36  ;;  %1559 = vmatpush.msrb.mxu2 %v1374_v60  ;;  %v1538_v18 = vld [vmem:[#allocation7 + $0x578] sm:$0xff]  ;;  %v1536_v60 = vld [vmem:[#allocation7 + $0x568] sm:$0xff] }
 0x1fa   :  { %v1284_v51 = vsel %vm1256_vm6, %v1222_v12, %v1283_v63  ;;  %v1204_v3 = vmax.f32 %v2961_v54, %v1203_v0  ;;  %v1039_v55 = vmax.f32 %v1037_v17, %v1038_v14  ;;  %1704 = vmatpush.msrb.mxu0 %v1463_v47  ;;  %v1048_v43 = vmax.f32 %v2958_v46, %v1047_v34  ;;  %v1446_v54 = vld [vmem:[#allocation7 + $0x298] sm:$0xff]  ;;  %v1372_v0 = vld [vmem:[#allocation7 + $0x48] sm:$0xff]  ;;  %v903_v14 = vpop.permute.xlu0 %902  ;;  %v1369_v47 = vld [vmem:[#allocation7 + $0x30] sm:$0xff] }
 0x1fb   :  { %v1027_v6 = vrot.slane %v1026_v48, 4  ;;  %v1285_v45 = vsel %vm1258_vm7, %v1223_v31, %v1284_v51  ;;  %v1183_v58 = vrot.slane %v1182_v38, 4  ;;  %1681 = vmatpush.msra.mxu3 %v1447_v29  ;;  %1560 = vmatpush.msrb.mxu2 %v1373_v40  ;;  %v1196_v36 = vrot.slane %v1195_v4, 1  ;;  %v1522_v63 = vld [vmem:[#allocation7 + $0x4f8] sm:$0xff] }
 0x1fc   :  { %v3097_v30 = vsel %vm1228_vm8, %v1285_v45, 0.0  ;;  %1993 = vmatmul.msk.f32.vlgmr.msrb.gmra.mxu3 %vm1228_vm8, %v1285_v45  ;;  %1705 = vmatpush.msrb.mxu0 %v1462_v37  ;;  %2074 = vlog2.f32 %v1293_v21  ;;  %v1205_v59 = vrot.slane %v1204_v3, 1  ;;  %v1040_v46 = vrot.slane %v1039_v55, 1 }
 0x1fd   :  { %v1028_v41 = vmax.f32 %v1026_v48, %v1027_v6  ;;  %v1184_v19 = vmax.f32 %v1182_v38, %v1183_v58  ;;  %v3103_v1 = vmax.f32 %v3398_v35, 1.0  ;;  %v1049_v33 = vrot.slane %v1048_v43, 1  ;;  %1682 = vmatpush.msra.mxu3 %v1446_v54  ;;  %1561 = vmatpush.msrb.mxu2 %v1372_v0  ;;  %v1521_v58 = vld [vmem:[#allocation7 + $0x4f0] sm:$0xff] }
 0x1fe   :  { %1706 = vmatpush.msrb.mxu0 %v1461_v5  ;;  %v948_v7 = vadd.f32 %v3067_v20, %v2700_v15  ;;  %v1104_v50 = vsub.f32 %v3067_v20, %v2700_v15  ;;  %v949_v16 = vadd.f32 %v3399_v26, %v2703_v25  ;;  %v1197_v62 = vmax.f32 %v1195_v4, %v1196_v36  ;;  %v1443_v15 = vld [vmem:[#allocation7 + $0x280] sm:$0xff]  ;;  %v1537_v20 = vld [vmem:[#allocation7 + $0x570] sm:$0xff] }
 0x1ff   :  { %v1029_v24 = vrot.slane %v1028_v41, 2  ;;  %v1185_v17 = vrot.slane %v1184_v19, 2  ;;  %1683 = vmatpush.msra.mxu3 %v1445_v57  ;;  %1562 = vmatpush.msrb.mxu2 %v1371_v8  ;;  %v1105_v44 = vsub.f32 %v3399_v26, %v2703_v25  ;;  %v1206_v2 = vmax.f32 %v1204_v3, %v1205_v59  ;;  %v1519_v36 = vld [vmem:[#allocation7 + $0x4e0] sm:$0xff]  ;;  %v1366_v59 = vld [vmem:[#allocation7 + $0x18] sm:$0xff]  ;;  %v1533_v8 = vld [vmem:[#allocation7 + $0x550] sm:$0xff] }
 0x200   :  { %1707 = vmatpush.msrb.mxu0 %v1460_v10  ;;  %v1041_v28 = vmax.f32 %v1039_v55, %v1040_v46  ;;  %v1294_v48 = vadd.f32 1.0, %v3103_v1  ;;  %v1051_v42 = vmax.f32 %v948_v7, %v949_v16  ;;  %v1050_v38 = vmax.f32 %v1048_v43, %v1049_v33  ;;  %v1368_v55 = vld [vmem:[#allocation7 + $0x28] sm:$0xff]  ;;  %v1534_v10 = vld [vmem:[#allocation7 + $0x558] sm:$0xff]  ;;  %v1365_v33 = vld [vmem:[#allocation7 + $0x10] sm:$0xff] }
 0x201   :  { %v1030_v52 = vmax.f32 %v1028_v41, %v1029_v24  ;;  %v1186_v49 = vmax.f32 %v1184_v19, %v1185_v17  ;;  %1684 = vmatpush.msra.mxu3 %v1444_v27  ;;  %v1207_v6 = vmax.f32 %v1104_v50, %v1105_v44  ;;  %1563 = vmatpush.msrb.mxu2 %v1370_v9  ;;  %v1225_v3 = vsub.f32 0.0, %v1197_v62  ;;  %v1520_v19 = vld [vmem:[#allocation7 + $0x4e8] sm:$0xff]  ;;  %v1367_v24 = vld [vmem:[#allocation7 + $0x20] sm:$0xff]  ;;  %v1518_v46 = vld [vmem:[#allocation7 + $0x4d8] sm:$0xff] }
 0x202   :  { %1708 = vmatpush.msrb.mxu0 %v1459_v23  ;;  %v2075_v51 = vpop.eup %2074  ;;  %v951_v4 = vadd.f32 %v903_v14, %v2863_v13  ;;  %v1107_v41 = vsub.f32 %v903_v14, %v2863_v13  ;;  %v1226_v43 = vsub.f32 0.0, %v1206_v2  ;;  %2076 = vlog2.f32 %v1294_v48  ;;  %v1532_v23 = vld [vmem:[#allocation7 + $0x548] sm:$0xff]  ;;  %v1531_v16 = vld [vmem:[#allocation7 + $0x540] sm:$0xff]  ;;  %v1530_v14 = vld [vmem:[#allocation7 + $0x538] sm:$0xff] }
 0x203   :  { %v1031_v22 = vrot.slane %v1030_v52, 1  ;;  %v1187_v61 = vrot.slane %v1186_v49, 1  ;;  %v897_v31 = vpop.permute.xlu1 %896  ;;  %1685 = vmatpush.msra.mxu3 %v1443_v15  ;;  %1564 = vmatpush.msrb.mxu2 %v1369_v47  ;;  %v3123_v54 = vmul.f32 0.6931472, %v2075_v51  ;;  %v1364_v27 = vld [vmem:[#allocation7 + $0x8] sm:$0xff]  ;;  %v1363_v9 = vld [vmem:[#allocation7] sm:$0xff]  ;;  %vm498_vm7 = vweird.f32 %v3103_v1 }
 0x204   :  { %1785 = vmatpush.msra.mxu0 %v1538_v18  ;;  %v950_v25 = vadd.f32 %v897_v31, %v2808_v53  ;;  %v1106_v39 = vsub.f32 %v897_v31, %v2808_v53  ;;  %v1535_v53 = vld [vmem:[#allocation7 + $0x560] sm:$0xff]  ;;  %v1441_v31 = vld [vmem:[#allocation7 + $0x270] sm:$0xff]  ;;  %vm1229_vm1 = vcmp.gt.f32.partialorder %v3398_v35, 0.0  ;;  %v1436_v35 = vld [vmem:[#allocation7 + $0x248] sm:$0xff] }
 0x205   :  { %v1032_v12 = vmax.f32 %v1030_v52, %v1031_v22  ;;  %v1188_v34 = vmax.f32 %v1186_v49, %v1187_v61  ;;  %1762 = vmatpush.msrb.mxu3 %v1522_v63  ;;  %1565 = vmatpush.msrb.mxu2 %v1368_v55  ;;  %2078 = vrcp.f32 %v3123_v54  ;;  %v1517_v22 = vld [vmem:[#allocation7 + $0x4d0] sm:$0xff]  ;;  %v1516_v61 = vld [vmem:[#allocation7 + $0x4c8] sm:$0xff]  ;;  %v1515_v15 = vld [vmem:[#allocation7 + $0x4c0] sm:$0xff]  ;;  %vm1306_vm9 = vweird.f32 %v3123_v54 }
 0x206   :  { %1786 = vmatpush.msra.mxu0 %v1537_v20  ;;  %v1052_v29 = vmax.f32 %v1051_v42, %v950_v25  ;;  %v1208_v40 = vmax.f32 %v1207_v6, %v1106_v39  ;;  %v1426_v20 = vld [vmem:[#allocation7 + $0x1f8] sm:$0xff]  ;;  %v1440_v6 = vld [vmem:[#allocation7 + $0x268] sm:$0xff]  ;;  %v1513_v39 = vld [vmem:[#allocation7 + $0x4b0] sm:$0xff] }
 0x207   :  { %v1260_v21 = vsel %vm1246_vm15, %v1041_v28, %v1032_v12  ;;  %v1224_v45 = vsub.f32 0.0, %v1188_v34  ;;  %1763 = vmatpush.msrb.mxu3 %v1521_v58  ;;  %1566 = vmatpush.msrb.mxu2 %v1367_v24  ;;  %v1442_v12 = vld [vmem:[#allocation7 + $0x278] sm:$0xff]  ;;  %v1529_v34 = vld [vmem:[#allocation7 + $0x530] sm:$0xff]  ;;  %v1512_v58 = vld [vmem:[#allocation7 + $0x4a8] sm:$0xff]  ;;  %v3158_v24 = vsel %vm1228_vm8, %v3033_v11, 0.0 }
 0x208   :  { %v3119_v37 = vsel %vm1248_vm0, %v1050_v38, %v1260_v21  ;;  %1787 = vmatpush.msra.mxu0 %v1536_v60  ;;  %v1053_v0 = vmax.f32 %v1052_v29, %v951_v4  ;;  %v1209_v17 = vmax.f32 %v1208_v40, %v1107_v41  ;;  %v2077_v50 = vpop.eup %2076  ;;  %v1514_v63 = vld [vmem:[#allocation7 + $0x4b8] sm:$0xff]  ;;  %v1425_v38 = vld [vmem:[#allocation7 + $0x1f0] sm:$0xff]  ;;  %1624 = vmatpush.msrb.mxu1 %v1426_v20  ;;  %v1528_v60 = vld [vmem:[#allocation7 + $0x528] sm:$0xff] }
 0x209   :  { %v1286_v5 = vsel %vm1246_vm15, %v1225_v3, %v1224_v45  ;;  %1764 = vmatpush.msrb.mxu3 %v1520_v19  ;;  %1567 = vmatpush.msrb.mxu2 %v1366_v59  ;;  %v3129_v62 = vmul.f32 0.6931472, %v2077_v50  ;;  %v1439_v45 = vld [vmem:[#allocation7 + $0x260] sm:$0xff]  ;;  %v1424_v29 = vld [vmem:[#allocation7 + $0x1e8] sm:$0xff]  ;;  %v1509_v11 = vld [vmem:[#allocation7 + $0x490] sm:$0xff] }
 0x20a   :  { %v3126_v13 = vsel %vm1248_vm0, %v1226_v43, %v1286_v5  ;;  %1788 = vmatpush.msra.mxu0 %v1535_v53  ;;  %v1054_v52 = vrot.slane %v1053_v0, 4  ;;  %v1210_v57 = vrot.slane %v1209_v17, 4  ;;  %1625 = vmatpush.msrb.mxu1 %v1425_v38  ;;  %v1527_v3 = vld [vmem:[#allocation7 + $0x520] sm:$0xff]  ;;  %v1526_v43 = vld [vmem:[#allocation7 + $0x518] sm:$0xff]  ;;  %v1420_v20 = vld [vmem:[#allocation7 + $0x1c8] sm:$0xff] }
 0x20b   :  { %1765 = vmatpush.msrb.mxu3 %v1519_v36  ;;  %1568 = vmatpush.msrb.mxu2 %v1365_v33  ;;  %v3131_v28 = vpop.eup %2078  ;;  %2080 = vrcp.f32 %v3129_v62  ;;  %v1511_v53 = vld [vmem:[#allocation7 + $0x4a0] sm:$0xff]  ;;  %v1525_v36 = vld [vmem:[#allocation7 + $0x510] sm:$0xff]  ;;  %v1508_v33 = vld [vmem:[#allocation7 + $0x488] sm:$0xff]  ;;  %vm1321_vm13 = vweird.f32 %v3129_v62 }
 0x20c   :  { %1789 = vmatpush.msra.mxu0 %v1534_v10  ;;  %v1055_v7 = vmax.f32 %v1053_v0, %v1054_v52  ;;  %v1211_v49 = vmax.f32 %v1209_v17, %v1210_v57  ;;  %v1302_v25 = vmul.f32 %v3131_v28, %v3123_v54  ;;  %v1437_v0 = vld [vmem:[#allocation7 + $0x250] sm:$0xff]  ;;  %v1423_v17 = vld [vmem:[#allocation7 + $0x1e0] sm:$0xff]  ;;  %v3161_v10 = vmul.f32 0.80332905, %v3123_v54  ;;  %1626 = vmatpush.msrb.mxu1 %v1424_v29  ;;  %v1524_v52 = vld [vmem:[#allocation7 + $0x508] sm:$0xff] }
 0x20d   :  { %1766 = vmatpush.msrb.mxu3 %v1518_v46  ;;  %1569 = vmatpush.msrb.mxu2 %v1364_v27  ;;  %vm1307_vm10 = vweird.f32 %v3131_v28  ;;  %v1422_v50 = vld [vmem:[#allocation7 + $0x1d8] sm:$0xff]  ;;  %v1310_v27 = vand.u32 2147483647, %v3123_v54  ;;  %2082 = vrcp.f32 %v3397_v56 }
 0x20e   :  { %1790 = vmatpush.msra.mxu0 %v1533_v8  ;;  %v1056_v18 = vrot.slane %v1055_v7, 2  ;;  %v1212_v26 = vrot.slane %v1211_v49, 2  ;;  %v1303_v40 = vsub.f32 1.0, %v1302_v25  ;;  %v1333_v32 = vmul.f32 %v3161_v10, %v3158_v24  ;;  %1627 = vmatpush.msrb.mxu1 %v1423_v17  ;;  %v1435_v8 = vld [vmem:[#allocation7 + $0x240] sm:$0xff]  ;;  %vm3179_vm11 = vmor %vm1306_vm9, %vm1307_vm10  ;;  %v1429_v25 = vld [vmem:[#allocation7 + $0x210] sm:$0xff] }
 0x20f   :  { %1767 = vmatpush.msrb.mxu3 %v1517_v22  ;;  %1570 = vmatpush.msrb.mxu2 %v1363_v9  ;;  %v1332_v46 = vmul.f32 %v3161_v10, %v3097_v30  ;;  %v1421_v9 = vld [vmem:[#allocation7 + $0x1d0] sm:$0xff]  ;;  %vm1311_vm12 = vcmp.eq.f32.partialorder %v1310_v27, 8.507059e+37  ;;  %2084 = vrcp.f32 %v3103_v1  ;;  %v1487_v27 = vld [vmem:[#allocation7 + $0x3e0] sm:$0xff] }
 0x210   :  { %1791 = vmatpush.msra.mxu0 %v1532_v23  ;;  %v1213_v44 = vmax.f32 %v1211_v49, %v1212_v26  ;;  %v1057_v2 = vmax.f32 %v1055_v7, %v1056_v18  ;;  %v1304_v59 = vmul.f32 %v3131_v28, %v1303_v40  ;;  %v1523_v7 = vld [vmem:[#allocation7 + $0x500] sm:$0xff]  ;;  %v1312_v49 = vand.u32 2147483648, %v3123_v54  ;;  %v1434_v23 = vld [vmem:[#allocation7 + $0x238] sm:$0xff]  ;;  %1628 = vmatpush.msrb.mxu1 %v1422_v50 }
 0x211   :  { %1768 = vmatpush.msrb.mxu3 %v1516_v61  ;;  %1647 = vmatpush.msra.mxu2 %v1442_v12  ;;  %v3153_v5 = vpop.eup %2080  ;;  %v1507_v18 = vld [vmem:[#allocation7 + $0x480] sm:$0xff]  ;;  %v1433_v61 = vld [vmem:[#allocation7 + $0x230] sm:$0xff] }
 0x212   :  { %1792 = vmatpush.msra.mxu0 %v1531_v16  ;;  %v1058_v48 = vrot.slane %v1057_v2, 1  ;;  %v1214_v42 = vrot.slane %v1213_v44, 1  ;;  %v1317_v57 = vmul.f32 %v3153_v5, %v3129_v62  ;;  %v1305_v22 = vadd.f32 %v3131_v28, %v1304_v59  ;;  %1629 = vmatpush.msrb.mxu1 %v1421_v9  ;;  %v1415_v40 = vld [vmem:[#allocation7 + $0x1a0] sm:$0xff] }
 0x213   :  { %1769 = vmatpush.msrb.mxu3 %v1515_v15  ;;  %1648 = vmatpush.msra.mxu2 %v1441_v31  ;;  %vm1322_vm14 = vweird.f32 %v3153_v5  ;;  %v1327_v31 = vand.u32 2147483648, %v3129_v62  ;;  %v502_v16 = vand.u32 2147483647, %v3103_v1 }
 0x214   :  { %1793 = vmatpush.msra.mxu0 %v1530_v14  ;;  %v1059_v47 = vmax.f32 %v1057_v2, %v1058_v48  ;;  %v1215_v51 = vmax.f32 %v1213_v44, %v1214_v42  ;;  %v1318_v26 = vsub.f32 1.0, %v1317_v57  ;;  %v3184_v44 = vmul.f32 0.80332905, %v3129_v62  ;;  %v1432_v14 = vld [vmem:[#allocation7 + $0x228] sm:$0xff]  ;;  %v1431_v48 = vld [vmem:[#allocation7 + $0x220] sm:$0xff]  ;;  %1630 = vmatpush.msrb.mxu1 %v1420_v20  ;;  %vm3200_vm15 = vmor %vm1321_vm13, %vm1322_vm14 }
 0x215   :  { %1770 = vmatpush.msrb.mxu3 %v1514_v63  ;;  %1649 = vmatpush.msra.mxu2 %v1440_v6  ;;  %v1313_v2 = vor.u32 1.1754944e-38, %v1312_v49  ;;  %v1309_v54 = vsel %vm3179_vm11, %v3131_v28, %v1305_v22  ;;  %v1419_v28 = vld [vmem:[#allocation7 + $0x1c0] sm:$0xff]  ;;  %v1430_v63 = vld [vmem:[#allocation7 + $0x218] sm:$0xff]  ;;  %v1488_v49 = vld [vmem:[#allocation7 + $0x3e8] sm:$0xff]  ;;  %v504_v22 = vand.u32 2147483648, %v3103_v1  ;;  %vm503_vm9 = vcmp.eq.f32.partialorder %v502_v16, 8.507059e+37 }
 0x216   :  { %1794 = vmatpush.msra.mxu0 %v1529_v34  ;;  %v1262_v21 = vsel %vm1250_vm3, %v1059_v47, %v3119_v37  ;;  %v1227_v4 = vsub.f32 0.0, %v1215_v51  ;;  %v1438_v37 = vld [vmem:[#allocation7 + $0x258] sm:$0xff]  ;;  %v1319_v15 = vmul.f32 %v3153_v5, %v1318_v26  ;;  %v1325_v47 = vand.u32 2147483647, %v3129_v62  ;;  %1631 = vmatpush.msrb.mxu1 %v1419_v28  ;;  %v1499_v28 = vld [vmem:[#allocation7 + $0x440] sm:$0xff]  ;;  %v1497_v6 = vld [vmem:[#allocation7 + $0x430] sm:$0xff] }
 0x217   :  { %1996 = vmatmul.msk.f32.gmra.mxu0 %vm1229_vm1, %v1262_v21  ;;  %v3143_v55 = vsel %vm1229_vm1, %v1262_v21, 0.0  ;;  %1771 = vmatpush.msrb.mxu3 %v1513_v39  ;;  %v1314_v34 = vsel %vm1311_vm12, %v1313_v2, %v1309_v54  ;;  %v1418_v51 = vld [vmem:[#allocation7 + $0x1b8] sm:$0xff]  ;;  %v2083_v21 = vpop.eup %2082  ;;  %v505_v9 = vor.u32 1.1754944e-38, %v504_v22  ;;  %v1503_v54 = vld [vmem:[#allocation7 + $0x460] sm:$0xff] }
 0x218   :  { %v1288_v41 = vsel %vm1250_vm3, %v1227_v4, %v3126_v13  ;;  %1795 = vmatpush.msra.mxu0 %v1528_v60  ;;  %1650 = vmatpush.msra.mxu2 %v1439_v45  ;;  %v1510_v13 = vld [vmem:[#allocation7 + $0x498] sm:$0xff]  ;;  %v1337_v12 = vmul.f32 %v3184_v44, %v3143_v55  ;;  %v1320_v38 = vadd.f32 %v3153_v5, %v1319_v15  ;;  %v3204_v39 = vmul.f32 1.24482, %v1314_v34  ;;  %v1417_v60 = vld [vmem:[#allocation7 + $0x1b0] sm:$0xff]  ;;  %v1428_v45 = vld [vmem:[#allocation7 + $0x208] sm:$0xff]  ;;  %v2085_v17 = vpop.eup %2084 }
 0x219   :  { %1994 = vmatmul.msk.f32.gmra.mxu3 %vm1229_vm1, %v1288_v41  ;;  %v3151_v19 = vsel %vm1229_vm1, %v1288_v41, 0.0  ;;  %v1328_v4 = vor.u32 1.1754944e-38, %v1327_v31  ;;  %1632 = vmatpush.msrb.mxu1 %v1418_v51  ;;  %vm1326_vm0 = vcmp.eq.f32.partialorder %v1325_v47, 8.507059e+37  ;;  %v1427_v41 = vld [vmem:[#allocation7 + $0x200] sm:$0xff]  ;;  %v479_v29 = vmul.f32 %v2083_v21, %v3397_v56  ;;  %v1498_v47 = vld [vmem:[#allocation7 + $0x438] sm:$0xff] }
 0x21a   :  { %1772 = vmatpush.msrb.mxu3 %v1512_v58  ;;  %1796 = vmatpush.msra.mxu0 %v1527_v3  ;;  %v1336_v42 = vmul.f32 %v3184_v44, %v3151_v19  ;;  %v1341_v58 = vmul.f32 %v3204_v39, %v3158_v24  ;;  %v1324_v62 = vsel %vm3200_vm15, %v3153_v5, %v1320_v38  ;;  %v1416_v3 = vld [vmem:[#allocation7 + $0x1a8] sm:$0xff]  ;;  %vm483_vm3 = vweird.f32 %v3397_v56  ;;  %v1478_v22 = vld [vmem:[#allocation7 + $0x398] sm:$0xff] }
 0x21b   :  { %1651 = vmatpush.msra.mxu2 %v1438_v37  ;;  %1633 = vmatpush.msrb.mxu1 %v1417_v60  ;;  %v1340_v37 = vmul.f32 %v3204_v39, %v3097_v30  ;;  %v480_v24 = vsub.f32 1.0, %v479_v29  ;;  %v494_v59 = vmul.f32 %v2085_v17, %v3103_v1  ;;  %vm484_vm4 = vweird.f32 %v2083_v21  ;;  %v1501_v1 = vld [vmem:[#allocation7 + $0x450] sm:$0xff]  ;;  %v1495_v29 = vld [vmem:[#allocation7 + $0x420] sm:$0xff] }
 0x21c   :  { %1773 = vmatpush.msrb.mxu3 %v1511_v53  ;;  %1797 = vmatpush.msra.mxu0 %v1526_v43  ;;  %v1329_v53 = vsel %vm1326_vm0, %v1328_v4, %v1324_v62  ;;  %v1414_v43 = vld [vmem:[#allocation7 + $0x198] sm:$0xff]  ;;  %vm485_vm5 = vmor %vm483_vm3, %vm484_vm4  ;;  %vm499_vm8 = vweird.f32 %v2085_v17 }
 0x21d   :  { %1652 = vmatpush.msra.mxu2 %v1437_v0  ;;  %1634 = vmatpush.msrb.mxu1 %v1416_v3  ;;  %v3215_v5 = vmul.f32 1.24482, %v1329_v53  ;;  %v1413_v0 = vld [vmem:[#allocation7 + $0x190] sm:$0xff]  ;;  %v495_v57 = vsub.f32 1.0, %v494_v59  ;;  %vm500_vm1 = vmor %vm498_vm7, %vm499_vm8  ;;  %v1486_v62 = vld [vmem:[#allocation7 + $0x3d8] sm:$0xff] }
 0x21e   :  { %1774 = vmatpush.msrb.mxu3 %v1510_v13  ;;  %1798 = vmatpush.msra.mxu0 %v1525_v36  ;;  %v1412_v13 = vld [vmem:[#allocation7 + $0x188] sm:$0xff]  ;;  %v1361_v59 = vld [vmem:[#allocation6 + $0x70] sm:$0xff] }
 0x21f   :  { %1709 = vmatmul.f32.vlgmr.msrb.gmra.mxu0 %v1333_v32  ;;  %1653 = vmatpush.msra.mxu2 %v1436_v35  ;;  %v1345_v30 = vmul.f32 %v3215_v5, %v3143_v55  ;;  %v1344_v36 = vmul.f32 %v3215_v5, %v3151_v19  ;;  %v481_v35 = vmul.f32 %v2083_v21, %v480_v24  ;;  %v1411_v32 = vld [vmem:[#allocation7 + $0x180] sm:$0xff]  ;;  %v487_v55 = vand.u32 2147483647, %v3397_v56  ;;  %v1489_v19 = vld [vmem:[#allocation7 + $0x3f0] sm:$0xff]  ;;  %v1496_v3 = vld [vmem:[#allocation7 + $0x428] sm:$0xff] }
 0x220   :  { %1775 = vmatpush.msrb.mxu3 %v1509_v11  ;;  %1799 = vmatpush.msra.mxu0 %v1524_v52  ;;  %v489_v11 = vand.u32 2147483648, %v3397_v56  ;;  %v1484_v53 = vld [vmem:[#allocation7 + $0x3c8] sm:$0xff] }
 0x221   :  { %1686 = vmatmul.f32.vlgmr.msra.gmra.mxu3 %v1332_v46  ;;  %1654 = vmatpush.msra.mxu2 %v1435_v8  ;;  %v482_v52 = vadd.f32 %v2083_v21, %v481_v35  ;;  %v1490_v46 = vld [vmem:[#allocation7 + $0x3f8] sm:$0xff]  ;;  %vm488_vm6 = vcmp.eq.f32.partialorder %v487_v55, 8.507059e+37  ;;  %v1360_v55 = vld [vmem:[#allocation6 + $0x68] sm:$0xff] }
 0x222   :  { %1776 = vmatpush.msrb.mxu3 %v1508_v33  ;;  %1800 = vmatpush.msra.mxu0 %v1523_v7  ;;  %v490_v8 = vor.u32 1.1754944e-38, %v489_v11  ;;  %v496_v7 = vmul.f32 %v2085_v17, %v495_v57  ;;  %v1491_v11 = vld [vmem:[#allocation7 + $0x400] sm:$0xff] }
 0x223   :  { %1655 = vmatpush.msra.mxu2 %v1434_v23  ;;  %1635 = vmatpush.msrb.mxu1 %v1415_v40  ;;  %v486_v33 = vsel %vm485_vm5, %v2083_v21, %v482_v52 }
 0x224   :  { %1777 = vmatpush.msrb.mxu3 %v1507_v18  ;;  %v491_v23 = vsel %vm488_vm6, %v490_v8, %v486_v33  ;;  %v1506_v18 = vld [vmem:[#allocation7 + $0x478] sm:$0xff]  ;;  %v497_v26 = vadd.f32 %v2085_v17, %v496_v7  ;;  %v1480_v8 = vld [vmem:[#allocation7 + $0x3a8] sm:$0xff]  ;;  %v1479_v7 = vld [vmem:[#allocation7 + $0x3a0] sm:$0xff] }
 0x225   :  { %1656 = vmatpush.msra.mxu2 %v1433_v61  ;;  %1636 = vmatpush.msrb.mxu1 %v1414_v43  ;;  %v1505_v61 = vld [vmem:[#allocation7 + $0x470] sm:$0xff]  ;;  %v1494_v43 = vld [vmem:[#allocation7 + $0x418] sm:$0xff] }
 0x226   :  { %v501_v2 = vsel %vm500_vm1, %v2085_v17, %v497_v26  ;;  %v1493_v17 = vld [vmem:[#allocation7 + $0x410] sm:$0xff] }
 0x227   :  { %1712 = vmatmul.f32.gmra.mxu0 %v1337_v12  ;;  %1657 = vmatpush.msra.mxu2 %v1432_v14  ;;  %v1504_v14 = vld [vmem:[#allocation7 + $0x468] sm:$0xff]  ;;  %v506_v12 = vsel %vm503_vm9, %v505_v9, %v501_v2  ;;  %v1477_v26 = vld [vmem:[#allocation7 + $0x390] sm:$0xff] }
 0x228   :  { %1637 = vmatpush.msrb.mxu1 %v1413_v0  ;;  %v1483_v0 = vld [vmem:[#allocation7 + $0x3c0] sm:$0xff]  ;;  %v1356_v9 = vld [vmem:[#allocation6 + $0x48] sm:$0xff] }
 0x229   :  { %1689 = vmatmul.f32.gmra.mxu3 %v1336_v42  ;;  %1658 = vmatpush.msra.mxu2 %v1431_v48  ;;  %v1502_v48 = vld [vmem:[#allocation7 + $0x458] sm:$0xff]  ;;  %v1500_v42 = vld [vmem:[#allocation7 + $0x448] sm:$0xff] }
 0x22a   :  { %1638 = vmatpush.msrb.mxu1 %v1412_v13  ;;  %v1492_v13 = vld [vmem:[#allocation7 + $0x408] sm:$0xff] }
 0x22b   :  { %1659 = vmatpush.msra.mxu2 %v1430_v63 }
 0x22c   :  { %1639 = vmatpush.msrb.mxu1 %v1411_v32  ;;  %v1481_v32 = vld [vmem:[#allocation7 + $0x3b0] sm:$0xff] }
 0x22d   :  { %1660 = vmatpush.msra.mxu2 %v1429_v25 }
 0x22e   :  { %1716 = vmatpush.msra.mxu1 %v1490_v46 }
 0x22f   :  { %1801 = vmatmul.f32.vlgmr.msra.gmra.mxu0 %v1341_v58  ;;  %1661 = vmatpush.msra.mxu2 %v1428_v45 }
 0x230   :  { %1717 = vmatpush.msra.mxu1 %v1489_v19  ;;  %v1359_v19 = vld [vmem:[#allocation6 + $0x60] sm:$0xff] }
 0x231   :  { %1778 = vmatmul.f32.vlgmr.msrb.gmra.mxu3 %v1340_v37  ;;  %1662 = vmatpush.msra.mxu2 %v1427_v41  ;;  %v1485_v41 = vld [vmem:[#allocation7 + $0x3d0] sm:$0xff] }
 0x232   :  { %1718 = vmatpush.msra.mxu1 %v1488_v49 }
 0x234   :  { %1719 = vmatpush.msra.mxu1 %v1487_v27 }
 0x236   :  { %1720 = vmatpush.msra.mxu1 %v1486_v62  ;;  %v1350_v62 = vld [vmem:[#allocation6 + $0x18] sm:$0xff] }
 0x237   :  { %1804 = vmatmul.f32.gmra.mxu0 %v1345_v30  ;;  %v1482_v30 = vld [vmem:[#allocation7 + $0x3b8] sm:$0xff] }
 0x238   :  { %1721 = vmatpush.msra.mxu1 %v1485_v41  ;;  %v1349_v41 = vld [vmem:[#allocation6 + $0x10] sm:$0xff] }
 0x239   :  { %1781 = vmatmul.f32.gmra.mxu3 %v1344_v36  ;;  %v1362_v36 = vld [vmem:[#allocation6 + $0x78] sm:$0xff] }
 0x23a   :  { %1722 = vmatpush.msra.mxu1 %v1484_v53  ;;  %1831 = vmatpush.msrb.mxu0 %v1362_v36  ;;  %v1347_v53 = vld [vmem:[#allocation6] sm:$0xff] }
 0x23c   :  { %1723 = vmatpush.msra.mxu1 %v1483_v0  ;;  %1832 = vmatpush.msrb.mxu0 %v1361_v59  ;;  %v1545_v0 = vld [vmem:[#allocation7 + $0x5b0] sm:$0xff] }
 0x23e   :  { %1724 = vmatpush.msra.mxu1 %v1482_v30  ;;  %1833 = vmatpush.msrb.mxu0 %v1360_v55  ;;  %v1544_v30 = vld [vmem:[#allocation7 + $0x5a8] sm:$0xff] }
 0x240   :  { %1725 = vmatpush.msra.mxu1 %v1481_v32  ;;  %1834 = vmatpush.msrb.mxu0 %v1359_v19  ;;  %v1540_v32 = vld [vmem:[#allocation7 + $0x588] sm:$0xff] }
 0x242   :  { %1726 = vmatpush.msra.mxu1 %v1480_v8  ;;  %v1875_v8 = vld [vmem:[#allocation9 + $0x78] sm:$0xff] }
 0x243   :  { %v531_v50 = vpop.f32.mrf.mxu1  ;;  %1880 = vmatpush.msra.mxu3 %v1875_v8 }
 0x244   :  { %v3227_v56 = vmul.f32 %v531_v50, %v491_v23  ;;  %v1358_v50 = vld [vmem:[#allocation6 + $0x58] sm:$0xff]  ;;  %1727 = vmatpush.msra.mxu1 %v1479_v7 }
 0x245   :  { %1835 = vmatpush.msrb.mxu0 %v1358_v50 }
 0x246   :  { %1571 = vmatmul.f32.vlgmr.msrb.gmra.mxu2 %v3227_v56  ;;  %v568_v63 = vmul.f32 %v3227_v56, %v3227_v56  ;;  %v1331_v38 = vmul.f32 %v3161_v10, %v3227_v56  ;;  %v1339_v57 = vmul.f32 %v3204_v39, %v3227_v56  ;;  %1728 = vmatpush.msra.mxu1 %v1478_v22 }
 0x247   :  { %1739 = vmatpush.msrb.mxu2 %v1506_v18  ;;  %v1357_v18 = vld [vmem:[#allocation6 + $0x50] sm:$0xff] }
 0x248   :  { %1836 = vmatpush.msrb.mxu0 %v1357_v18  ;;  %1729 = vmatpush.msra.mxu1 %v1477_v26  ;;  %v1866_v26 = vld [vmem:[#allocation9 + $0x30] sm:$0xff] }
 0x249   :  { %1740 = vmatpush.msrb.mxu2 %v1505_v61 }
 0x24a   :  { %1837 = vmatpush.msrb.mxu0 %v1356_v9 }
 0x24b   :  { %v534_v15 = vpop.f32.mrf.mxu1  ;;  %1741 = vmatpush.msrb.mxu2 %v1504_v14  ;;  %v1476_v14 = vld [vmem:[#allocation7 + $0x388] sm:$0xff] }
 0x24c   :  { %v3231_v20 = vmul.f32 %v534_v15, %v506_v12  ;;  %1730 = vmatpush.msra.mxu1 %v1476_v14 }
 0x24d   :  { %1742 = vmatpush.msrb.mxu2 %v1503_v54 }
 0x24e   :  { %1574 = vmatmul.f32.gmra.mxu2 %v3231_v20  ;;  %v569_v45 = vmul.f32 %v3231_v20, %v3231_v20  ;;  %v1335_v37 = vmul.f32 %v3184_v44, %v3231_v20  ;;  %v1343_v2 = vmul.f32 %v3215_v5, %v3231_v20 }
 0x24f   :  { %1743 = vmatpush.msrb.mxu2 %v1502_v48  ;;  %v1355_v48 = vld [vmem:[#allocation6 + $0x40] sm:$0xff] }
 0x250   :  { %1838 = vmatpush.msrb.mxu0 %v1355_v48 }
 0x251   :  { %1744 = vmatpush.msrb.mxu2 %v1501_v1 }
 0x253   :  { %v558_v34 = vpop.f32.mrf.mxu1  ;;  %1745 = vmatpush.msrb.mxu2 %v1500_v42  ;;  %v1475_v42 = vld [vmem:[#allocation7 + $0x380] sm:$0xff] }
 0x254   :  { %v566_v31 = vmul.f32 %v558_v34, %v491_v23  ;;  %1731 = vmatpush.msra.mxu1 %v1475_v42  ;;  %v1862_v42 = vld [vmem:[#allocation9 + $0x10] sm:$0xff] }
 0x255   :  { %1746 = vmatpush.msrb.mxu2 %v1499_v28  ;;  %v1554_v28 = vld [vmem:[#allocation7 + $0x5f8] sm:$0xff] }
 0x256   :  { %v570_v51 = vsub.f32 %v566_v31, %v568_v63  ;;  %1663 = vmatmul.f32.vlgmr.msra.gmra.mxu2 %v1331_v38  ;;  %v1354_v31 = vld [vmem:[#allocation6 + $0x38] sm:$0xff]  ;;  %v1553_v63 = vld [vmem:[#allocation7 + $0x5f0] sm:$0xff] }
 0x257   :  { %1747 = vmatpush.msrb.mxu2 %v1498_v47  ;;  %v1353_v47 = vld [vmem:[#allocation6 + $0x30] sm:$0xff]  ;;  %1839 = vmatpush.msrb.mxu0 %v1354_v31 }
 0x258   :  { %v572_v25 = vmax.f32 %v570_v51, 0.0  ;;  %v1552_v51 = vld [vmem:[#allocation7 + $0x5e8] sm:$0xff] }
 0x259   :  { %1748 = vmatpush.msrb.mxu2 %v1497_v6  ;;  %1840 = vmatpush.msrb.mxu0 %v1353_v47 }
 0x25a   :  { %v3238_v60 = vadd.f32 1e-05, %v572_v25  ;;  %v1352_v25 = vld [vmem:[#allocation6 + $0x28] sm:$0xff] }
 0x25b   :  { %v561_v21 = vpop.f32.mrf.mxu1  ;;  %1749 = vmatpush.msrb.mxu2 %v1496_v3  ;;  %1841 = vmatpush.msrb.mxu0 %v1352_v25  ;;  %v1549_v3 = vld [vmem:[#allocation7 + $0x5d0] sm:$0xff] }
 0x25c   :  { %v567_v4 = vmul.f32 %v561_v21, %v506_v12  ;;  %2086 = vrsqrt.f32 %v3238_v60  ;;  %vm583_vm10 = vcmp.eq.f32.partialorder %v3238_v60, inf  ;;  %v586_v12 = vand.u32 2147483648, %v3238_v60  ;;  %v1551_v21 = vld [vmem:[#allocation7 + $0x5e0] sm:$0xff] }
 0x25d   :  { %1750 = vmatpush.msrb.mxu2 %v1495_v29  ;;  %vm585_vm11 = vcmp.eq.f32.partialorder %v3238_v60, 0.0  ;;  %v1348_v29 = vld [vmem:[#allocation6 + $0x8] sm:$0xff] }
 0x25e   :  { %v571_v58 = vsub.f32 %v567_v4, %v569_v45  ;;  %1666 = vmatmul.f32.gmra.mxu2 %v1335_v37  ;;  %v1351_v4 = vld [vmem:[#allocation6 + $0x20] sm:$0xff]  ;;  %v1548_v37 = vld [vmem:[#allocation7 + $0x5c8] sm:$0xff] }
 0x25f   :  { %1751 = vmatpush.msrb.mxu2 %v1494_v43  ;;  %1842 = vmatpush.msrb.mxu0 %v1351_v4 }
 0x260   :  { %v573_v40 = vmax.f32 %v571_v58, 0.0  ;;  %v1550_v58 = vld [vmem:[#allocation7 + $0x5d8] sm:$0xff] }
 0x261   :  { %1752 = vmatpush.msrb.mxu2 %v1493_v17  ;;  %1843 = vmatpush.msrb.mxu0 %v1350_v62  ;;  %v2092_v17 = vld [vmem:[%s3335_s4] sm:$0xff] }
 0x262   :  { %v3245_v24 = vadd.f32 1e-05, %v573_v40  ;;  %v2087_v35 = vpop.eup %2086  ;;  %v1547_v40 = vld [vmem:[#allocation7 + $0x5c0] sm:$0xff] }
 0x263   :  { %v577_v52 = vmul.f32 %v2087_v35, %v3238_v60  ;;  %1753 = vmatpush.msrb.mxu2 %v1492_v13  ;;  %1844 = vmatpush.msrb.mxu0 %v1349_v41  ;;  %v1543_v13 = vld [vmem:[#allocation7 + $0x5a0] sm:$0xff] }
 0x264   :  { %2088 = vrsqrt.f32 %v3245_v24  ;;  %vm595_vm12 = vcmp.eq.f32.partialorder %v3245_v24, inf  ;;  %vm597_vm13 = vcmp.eq.f32.partialorder %v3245_v24, 0.0 }
 0x265   :  { %v578_v46 = vmul.f32 %v2087_v35, %v577_v52  ;;  %1754 = vmatpush.msrb.mxu2 %v1491_v11  ;;  %1845 = vmatpush.msrb.mxu0 %v1348_v29  ;;  %v1539_v11 = vld [vmem:[#allocation7 + $0x580] sm:$0xff] }
 0x266   :  { %1755 = vmatmul.f32.vlgmr.msrb.gmra.mxu2 %v1339_v57  ;;  %v1618_v57 = vpop.f32.mrf.mxu0 }
 0x267   :  { %v579_v49 = vmul.f32 0.5, %v578_v46  ;;  %1997 = vmatpush.msra.mxu2 %v1362_v36  ;;  %1846 = vmatpush.msrb.mxu0 %v1347_v53 }
 0x268   :  { %1847 = vmatmul.f32.vlgmr.msrb.gmra.mxu0 %v2092_v17 }
 0x269   :  { %v580_v27 = vsub.f32 1.5, %v579_v49  ;;  %1998 = vmatpush.msra.mxu2 %v1361_v59  ;;  %v1541_v59 = vld [vmem:[#allocation7 + $0x590] sm:$0xff] }
 0x26a   :  { %v2089_v33 = vpop.eup %2088 }
 0x26b   :  { %v589_v23 = vmul.f32 %v2089_v33, %v3245_v24  ;;  %v581_v16 = vmul.f32 %v2087_v35, %v580_v27  ;;  %1999 = vmatpush.msra.mxu2 %v1360_v55  ;;  %v1542_v35 = vld [vmem:[#allocation7 + $0x598] sm:$0xff] }
 0x26d   :  { %v590_v56 = vmul.f32 %v2089_v33, %v589_v23  ;;  %v582_v54 = vmul.f32 %v581_v16, %v3238_v60  ;;  %2000 = vmatpush.msra.mxu2 %v1359_v19  ;;  %v1873_v19 = vld [vmem:[#allocation9 + $0x68] sm:$0xff]  ;;  %v1871_v23 = vld [vmem:[#allocation9 + $0x58] sm:$0xff] }
 0x26e   :  { %1758 = vmatmul.f32.gmra.mxu2 %v1343_v2  ;;  %v1865_v16 = vld [vmem:[#allocation9 + $0x28] sm:$0xff]  ;;  %v1864_v2 = vld [vmem:[#allocation9 + $0x20] sm:$0xff] }
 0x26f   :  { %v591_v61 = vmul.f32 0.5, %v590_v56  ;;  %v584_v1 = vsel %vm583_vm10, %v3238_v60, %v582_v54  ;;  %2001 = vmatpush.msra.mxu2 %v1358_v50  ;;  %v598_v60 = vand.u32 2147483648, %v3245_v24  ;;  %v1870_v50 = vld [vmem:[#allocation9 + $0x50] sm:$0xff]  ;;  %v1863_v54 = vld [vmem:[#allocation9 + $0x18] sm:$0xff] }
 0x270   :  { %v3259_v20 = vsel %vm585_vm11, %v586_v12, %v584_v1 }
 0x271   :  { %v592_v15 = vsub.f32 1.5, %v591_v61  ;;  %1640 = vmatmul.f32.vlgmr.msrb.gmra.mxu1 %v3259_v20  ;;  %2002 = vmatpush.msra.mxu2 %v1357_v18  ;;  %v1334_v43 = vmul.f32 %v3161_v10, %v3259_v20  ;;  %v2093_v10 = vld [vmem:[%s3335_s4 + $0x8] sm:$0xf]  ;;  %v1342_v52 = vmul.f32 %v3204_v39, %v3259_v20  ;;  %v1867_v18 = vld [vmem:[#allocation9 + $0x38] sm:$0xff] }
 0x272   :  { %1808 = vmatpush.msrb.mxu1 %v1554_v28  ;;  %v1869_v39 = vld [vmem:[#allocation9 + $0x48] sm:$0xff] }
 0x273   :  { %v593_v34 = vmul.f32 %v2089_v33, %v592_v15  ;;  %2003 = vmatpush.msra.mxu2 %v1356_v9  ;;  %v1872_v33 = vld [vmem:[#allocation9 + $0x60] sm:$0xff]  ;;  %v1861_v20 = vld [vmem:[#allocation9 + $0x8] sm:$0xff] }
 0x274   :  { %1809 = vmatpush.msrb.mxu1 %v1553_v63 }
 0x275   :  { %v594_v38 = vmul.f32 %v593_v34, %v3245_v24  ;;  %2004 = vmatpush.msra.mxu2 %v1355_v48  ;;  %v1860_v34 = vld [vmem:[#allocation9] sm:$0xff] }
 0x276   :  { %1810 = vmatpush.msrb.mxu1 %v1552_v51 }
 0x277   :  { %v596_v6 = vsel %vm595_vm12, %v3245_v24, %v594_v38  ;;  %2005 = vmatpush.msra.mxu2 %v1354_v31  ;;  %v1546_v24 = vld [vmem:[#allocation7 + $0x5b8] sm:$0xff] }
 0x278   :  { %v599_v45 = vsel %vm597_vm13, %v598_v60, %v596_v6  ;;  %1811 = vmatpush.msrb.mxu1 %v1551_v21 }
 0x279   :  { %1643 = vmatmul.f32.gmra.mxu1 %v599_v45  ;;  %2006 = vmatpush.msra.mxu2 %v1353_v47  ;;  %v1338_v36 = vmul.f32 %v3184_v44, %v599_v45  ;;  %v1346_v55 = vmul.f32 %v3215_v5, %v599_v45  ;;  %v1874_v44 = vld [vmem:[#allocation9 + $0x70] sm:$0xff]  ;;  %v1868_v5 = vld [vmem:[#allocation9 + $0x40] sm:$0xff] }
 0x27a   :  { %1812 = vmatpush.msrb.mxu1 %v1550_v58  ;;  %1881 = vmatpush.msra.mxu3 %v1874_v44 }
 0x27b   :  { %2007 = vmatpush.msra.mxu2 %v1352_v25 }
 0x27c   :  { %1813 = vmatpush.msrb.mxu1 %v1549_v3  ;;  %1882 = vmatpush.msra.mxu3 %v1873_v19 }
 0x27d   :  { %2008 = vmatpush.msra.mxu2 %v1351_v4 }
 0x27e   :  { %1814 = vmatpush.msrb.mxu1 %v1548_v37  ;;  %1883 = vmatpush.msra.mxu3 %v1872_v33 }
 0x27f   :  { %2009 = vmatpush.msra.mxu2 %v1350_v62  ;;  %v1595_v49 = vpop.f32.mrf.mxu3 }
 0x280   :  { %1815 = vmatpush.msrb.mxu1 %v1547_v40  ;;  %1884 = vmatpush.msra.mxu3 %v1871_v23 }
 0x281   :  { %1732 = vmatmul.f32.vlgmr.msra.gmra.mxu1 %v1334_v43  ;;  %2010 = vmatpush.msra.mxu2 %v1349_v41 }
 0x282   :  { %1816 = vmatpush.msrb.mxu1 %v1546_v24  ;;  %1885 = vmatpush.msra.mxu3 %v1870_v50 }
 0x283   :  { %2011 = vmatpush.msra.mxu2 %v1348_v29 }
 0x284   :  { %1817 = vmatpush.msrb.mxu1 %v1545_v0  ;;  %1886 = vmatpush.msra.mxu3 %v1869_v39 }
 0x285   :  { %2012 = vmatpush.msra.mxu2 %v1347_v53 }
 0x286   :  { %1818 = vmatpush.msrb.mxu1 %v1544_v30  ;;  %1850 = vmatmul.f32.vlgmr.msra.gmra.mxu2 %v2093_v10 }
 0x287   :  { %1887 = vmatpush.msra.mxu3 %v1868_v5 }
 0x288   :  { %1819 = vmatpush.msrb.mxu1 %v1543_v13 }
 0x289   :  { %1735 = vmatmul.f32.gmra.mxu1 %v1338_v36  ;;  %1888 = vmatpush.msra.mxu3 %v1867_v18 }
 0x28a   :  { %1820 = vmatpush.msrb.mxu1 %v1542_v35  ;;  %v2070_v35 = vld [vmem:[%s3304_s11] ss:$0 sm:$0xff] }
 0x28b   :  { %1889 = vmatpush.msra.mxu3 %v1866_v26 }
 0x28c   :  { %1821 = vmatpush.msrb.mxu1 %v1541_v59 }
 0x28d   :  { %1890 = vmatpush.msra.mxu3 %v1865_v16 }
 0x28e   :  { %1822 = vmatpush.msrb.mxu1 %v1540_v32 }
 0x28f   :  { %1891 = vmatpush.msra.mxu3 %v1864_v2 }
 0x290   :  { %1823 = vmatpush.msrb.mxu1 %v1539_v11 }
 0x291   :  { %1824 = vmatmul.f32.vlgmr.msrb.gmra.mxu1 %v1342_v52  ;;  %1892 = vmatpush.msra.mxu3 %v1863_v54 }
 0x293   :  { %1893 = vmatpush.msra.mxu3 %v1862_v42 }
 0x294   :  { %v1621_v7 = vpop.f32.mrf.mxu0 }
 0x295   :  { %1894 = vmatpush.msra.mxu3 %v1861_v20 }
 0x297   :  { %1895 = vmatpush.msra.mxu3 %v1860_v34 }
 0x299   :  { %1827 = vmatmul.f32.gmra.mxu1 %v1346_v55 }
 0x29c   :  { %v1598_v27 = vpop.f32.mrf.mxu3  ;;  %v1710_v56 = vpop.f32.mrf.mxu0 }
 0x2a4   :  { %v1687_v12 = vpop.f32.mrf.mxu3  ;;  %v1713_v48 = vpop.f32.mrf.mxu0 }
 0x2ac   :  { %v1690_v51 = vpop.f32.mrf.mxu3  ;;  %v1802_v60 = vpop.f32.mrf.mxu0 }
 0x2b4   :  { %v1779_v41 = vpop.f32.mrf.mxu3  ;;  %v1805_v29 = vpop.f32.mrf.mxu0 }
 0x2bc   :  { %v1782_v59 = vpop.f32.mrf.mxu3 }
 0x2c9   :  { %v1572_v46 = vpop.f32.mrf.mxu2 }
 0x2ca   :  { %v1596_v61 = vadd.f32 %v1595_v49, %v1572_v46 }
 0x2cc   :  { %v1619_v15 = vadd.f32 %v1618_v57, %v1596_v61 }
 0x2d1   :  { %v1575_v22 = vpop.f32.mrf.mxu2 }
 0x2d2   :  { %v1599_v28 = vadd.f32 %v1598_v27, %v1575_v22 }
 0x2d4   :  { %v1622_v47 = vadd.f32 %v1621_v7, %v1599_v28  ;;  %v2071_v7 = vld [vmem:[%s3306_s13] ss:$0 sm:$0xff] }
 0x2d9   :  { %v1664_v14 = vpop.f32.mrf.mxu2 }
 0x2e1   :  { %v1667_v38 = vpop.f32.mrf.mxu2 }
 0x2e5   :  { %v1848_v10 = vpop.f32.mrf.mxu0 }
 0x2e9   :  { %v1756_v62 = vpop.f32.mrf.mxu2 }
 0x2ee   :  { %v1641_v9 = vpop.f32.mrf.mxu1 }
 0x2ef   :  { %v1642_v1 = vadd.f32 %v1641_v9, %v1619_v15 }
 0x2f1   :  { %v1665_v63 = vadd.f32 %v1664_v14, %v1642_v1  ;;  %v1759_v0 = vpop.f32.mrf.mxu2 }
 0x2f3   :  { %v1688_v25 = vadd.f32 %v1687_v12, %v1665_v63 }
 0x2f5   :  { %v1711_v45 = vadd.f32 %v1710_v56, %v1688_v25 }
 0x2f6   :  { %v1644_v31 = vpop.f32.mrf.mxu1 }
 0x2f7   :  { %v1645_v6 = vadd.f32 %v1644_v31, %v1622_v47 }
 0x2f9   :  { %v1668_v4 = vadd.f32 %v1667_v38, %v1645_v6 }
 0x2fb   :  { %v1691_v3 = vadd.f32 %v1690_v51, %v1668_v4 }
 0x2fd   :  { %v1714_v53 = vadd.f32 %v1713_v48, %v1691_v3 }
 0x2fe   :  { %v1733_v21 = vpop.f32.mrf.mxu1 }
 0x2ff   :  { %v1734_v58 = vadd.f32 %v1733_v21, %v1711_v45  ;;  %v2072_v21 = vld [vmem:[#allocation10] ss:$0 sm:$0xff] }
 0x301   :  { %v1757_v37 = vadd.f32 %v1756_v62, %v1734_v58  ;;  %v2073_v62 = vld [vmem:[#allocation12] ss:$0 sm:$0xff] }
 0x303   :  { %v1780_v24 = vadd.f32 %v1779_v41, %v1757_v37 }
 0x305   :  { %v1803_v30 = vadd.f32 %v1802_v60, %v1780_v24 }
 0x306   :  { %v1736_v40 = vpop.f32.mrf.mxu1 }
 0x307   :  { %v1737_v43 = vadd.f32 %v1736_v40, %v1714_v53 }
 0x309   :  { %v1760_v17 = vadd.f32 %v1759_v0, %v1737_v43  ;;  %v1851_v8 = vpop.f32.mrf.mxu2 }
 0x30b   :  { %v1783_v11 = vadd.f32 %v1782_v59, %v1760_v17 }
 0x30d   :  { %v1806_v55 = vadd.f32 %v1805_v29, %v1783_v11 }
 0x30e   :  { %v1825_v13 = vpop.f32.mrf.mxu1 }
 0x30f   :  { %v1826_v36 = vadd.f32 %v1825_v13, %v1803_v30 }
 0x311   :  { %v1849_v32 = vadd.f32 %v1848_v10, %v1826_v36 }
 0x313   :  { %v1858_v52 = vadd.f32 %v2070_v35, %v1849_v32 }
 0x315   :  { %1896 = vmatmul.f32.vlgmr.msra.gmra.mxu3 %v1858_v52 }
 0x316   :  { %v1828_v57 = vpop.f32.mrf.mxu1 }
 0x317   :  { %v1829_v44 = vadd.f32 %v1828_v57, %v1806_v55 }
 0x319   :  { %v1852_v46 = vadd.f32 %v1851_v8, %v1829_v44 }
 0x31b   :  { %v1859_v19 = vadd.f32 %v2070_v35, %v1852_v46 }
 0x31d   :  { %1899 = vmatmul.f32.gmra.mxu3 %v1859_v19 }
 0x398   :  { %v1897_v33 = vpop.f32.mrf.mxu3 }
 0x399   :  { %v1898_v50 = vadd.f32 %v2071_v7, %v1897_v33 }
 0x3a0   :  { %v1900_v49 = vpop.f32.mrf.mxu3 }
 0x3a1   :  { %v1901_v23 = vadd.f32 %v2071_v7, %v1900_v49 }
 0x3a3   :  { %v1903_v39 = vsel %vm246_vm2, %v1901_v23, 0.0 }
 0x3a4   :  { %v1904_v22 = vadd.f32 %v1903_v39, %v1898_v50 }
 0x3a6   :  { %v1905_v5 = vrot.slane %v1904_v22, 4 }
 0x3a8   :  { %v1906_v27 = vadd.f32 %v1905_v5, %v1904_v22 }
 0x3aa   :  { %v1907_v56 = vrot.slane %v1906_v27, 2 }
 0x3ac   :  { %v1908_v18 = vadd.f32 %v1907_v56, %v1906_v27 }
 0x3ae   :  { %v1909_v26 = vrot.slane %v1908_v18, 1 }
 0x3b0   :  { %v1910_v16 = vadd.f32 %v1909_v26, %v1908_v18 }
 0x3b2   :  { %v1911_v61 = vmul.f32 0.083333336, %v1910_v16 }
 0x3b4   :  { %v1912_v9 = vsub.f32 %v1898_v50, %v1911_v61  ;;  %v1913_v2 = vsub.f32 %v1901_v23, %v1911_v61 }
 0x3b6   :  { %v1914_v14 = vmul.f32 %v1912_v9, %v1912_v9  ;;  %v1915_v54 = vmul.f32 %v1913_v2, %v1913_v2 }
 0x3b8   :  { %v1916_v12 = vsel %vm246_vm2, %v1915_v54, 0.0 }
 0x3b9   :  { %v1917_v15 = vadd.f32 %v1916_v12, %v1914_v14 }
 0x3bb   :  { %v1918_v48 = vrot.slane %v1917_v15, 4 }
 0x3bd   :  { %v1919_v1 = vadd.f32 %v1918_v48, %v1917_v15 }
 0x3bf   :  { %v1920_v42 = vrot.slane %v1919_v1, 2 }
 0x3c1   :  { %v1921_v20 = vadd.f32 %v1920_v42, %v1919_v1 }
 0x3c3   :  { %v1922_v28 = vrot.slane %v1921_v20, 1 }
 0x3c5   :  { %v1923_v34 = vadd.f32 %v1922_v28, %v1921_v20 }
 0x3c7   :  { %v1924_v31 = vmul.f32 0.083333336, %v1923_v34 }
 0x3c9   :  { %v1925_v63 = vadd.f32 1e-05, %v1924_v31 }
 0x3cb   :  { %2090 = vrsqrt.f32 %v1925_v63  ;;  %vm1932_vm15 = vweird.f32 %v1925_v63 }
 0x3d1   :  { %v2091_v38 = vpop.eup %2090 }
 0x3d2   :  { %v1927_v47 = vmul.f32 %v2091_v38, %v1925_v63  ;;  %vm1933_vm14 = vweird.f32 %v2091_v38 }
 0x3d3   :  { %vm1934_vm0 = vmor %vm1932_vm15, %vm1933_vm14 }
 0x3d4   :  { %v1928_v51 = vmul.f32 %v2091_v38, %v1927_v47 }
 0x3d6   :  { %v1929_v6 = vmul.f32 0.5, %v1928_v51 }
 0x3d8   :  { %v1930_v25 = vsub.f32 1.5, %v1929_v6 }
 0x3da   :  { %v1931_v60 = vmul.f32 %v2091_v38, %v1930_v25 }
 0x3dc   :  { %v1935_v4 = vsel %vm1934_vm0, %v2091_v38, %v1931_v60 }
 0x3dd   :  { %v1936_v45 = vmul.f32 %v1935_v4, %v1912_v9  ;;  %v1937_v58 = vmul.f32 %v1935_v4, %v1913_v2 }
 0x3df   :  { %v1942_v3 = vmul.f32 %v2072_v21, %v1936_v45  ;;  %v1943_v41 = vmul.f32 %v2072_v21, %v1937_v58 }
 0x3e1   :  { %v1948_v37 = vadd.f32 %v2073_v62, %v1942_v3  ;;  %v1949_v29 = vadd.f32 %v2073_v62, %v1943_v41 }
 0x3e3   :  { %v1950_v40 = vmax.f32 %v1948_v37, 0.0  ;;  %v1951_v53 = vmax.f32 %v1949_v29, 0.0 }
 0x3e5   :  { %1952 = vst [vmem:[%s3309_s16] sm:$0xff] %v1950_v40 }
 0x3e6   :  { %1953 = vst [vmem:[%s3309_s16 + $0x8] sm:$0xf] %v1951_v53 }
 0x3e7   :  { %1958 = vsyncpa [#allocation3], 1 }
 0x3e8   :  { %1959 = vsyncpa [#allocation5], 1 }
 0x3e9   :  { %1960 = vsyncpa [#allocation8], 1 }
 0x3ea   :  { %1961 = vsyncpa [#allocation11], 1 }

</bundles_post_ra>
